<compile_context>
chip_gen: v7x
topology: tpu7x:2x2x1
jax: 0.10.0
libtpu: 0.0.40
codegen_flags: <defaults>
</compile_context>

<pallas_src>
import functools

import jax
import jax.numpy as jnp
from jax.experimental import pallas as pl
from jax.experimental.pallas import tpu as pltpu


def _round_up(n, m):
    return ((n + m - 1) // m) * m


def mlp_kernel(x_ref, w1_ref, b_ref, w2_hbm, w3_hbm, w4_hbm,
               o_ref, w2_v, w3_v, w4_v, sem, *, out_p):
    step = pl.program_id(0)

    # Kick off the big weight streams; they land while layers 1..3 compute.
    # Only on the first batch tile -- afterwards the weights are VMEM-resident.
    @pl.when(step == 0)
    def _start_weight_streams():
        pltpu.make_async_copy(w2_hbm, w2_v, sem.at[0]).start()
        pltpu.make_async_copy(w3_hbm, w3_v, sem.at[1]).start()
        pltpu.make_async_copy(w4_hbm, w4_v, sem.at[2]).start()

    # layer 1: Linear -> (Dropout = identity, eval mode) -> Tanh
    h = jnp.dot(x_ref[...], w1_ref[...], preferred_element_type=jnp.float32)
    h = jnp.tanh(h + b_ref[0:1, :]).astype(jnp.bfloat16)

    # layer 2
    @pl.when(step == 0)
    def _wait_w2():
        pltpu.make_async_copy(w2_hbm, w2_v, sem.at[0]).wait()

    h = jnp.dot(h, w2_v[...], preferred_element_type=jnp.float32)
    h = jnp.tanh(h + b_ref[1:2, :]).astype(jnp.bfloat16)

    # layer 3
    @pl.when(step == 0)
    def _wait_w3():
        pltpu.make_async_copy(w3_hbm, w3_v, sem.at[1]).wait()

    h = jnp.dot(h, w3_v[...], preferred_element_type=jnp.float32)
    h = jnp.tanh(h + b_ref[2:3, :]).astype(jnp.bfloat16)

    # output layer (no activation)
    @pl.when(step == 0)
    def _wait_w4():
        pltpu.make_async_copy(w4_hbm, w4_v, sem.at[2]).wait()

    o_ref[...] = (jnp.dot(h, w4_v[...], preferred_element_type=jnp.float32)
                  + b_ref[3:4, 0:out_p])


def make_params(key, cell_in, mol_in, hidden, out_size):
    """Deterministic synthetic f32 parameters, PyTorch-style init, stored as (in, out)."""
    d_in = cell_in + mol_in
    dims = [(d_in, hidden), (hidden, hidden), (hidden, hidden), (hidden, out_size)]
    params = []
    for (fin, fout) in dims:
        kw, kb, key = jax.random.split(key, 3)
        bound = 1.0 / jnp.sqrt(jnp.float32(fin))
        w = jax.random.uniform(kw, (fin, fout), jnp.float32, -bound, bound)  # == torch weight.T
        b = jax.random.uniform(kb, (fout,), jnp.float32, -bound, bound)
        params.append((w, b))
    return params


def prepare_params(params):
    """One-time (outside jit) padding + bf16 cast of the weights + bias packing."""
    (w1, b1), (w2, b2), (w3, b3), (w4, b4) = params
    d_in, hidden = w1.shape
    out_size = w4.shape[1]
    d_in_p = _round_up(d_in, 16)          # bf16 sublane packing
    h_p = _round_up(hidden, 128)
    out_p = _round_up(out_size, 128)

    def pad_w(w, rp, cp):
        return (jnp.zeros((rp, cp), jnp.float32)
                .at[:w.shape[0], :w.shape[1]].set(w)
                .astype(jnp.bfloat16))

    w1_p = pad_w(w1, d_in_p, h_p)
    w2_p = pad_w(w2, h_p, h_p)
    w3_p = pad_w(w3, h_p, h_p)
    w4_p = pad_w(w4, h_p, out_p)

    # Pack all four biases into one (4, h_p) f32 buffer (single DMA descriptor).
    b_pack = jnp.zeros((4, h_p), jnp.float32)
    b_pack = b_pack.at[0, :hidden].set(b1)
    b_pack = b_pack.at[1, :hidden].set(b2)
    b_pack = b_pack.at[2, :hidden].set(b3)
    b_pack = b_pack.at[3, :out_size].set(b4)
    return (w1_p, w2_p, w3_p, w4_p, b_pack)


@functools.partial(jax.jit, static_argnames=("out_size",))
def baseline_forward(x_cell, x_mol, padded_params, out_size):
    w1, w2, w3, w4, b_pack = padded_params
    d_in_p, h_p = w1.shape
    out_p = w4.shape[1]

    # tiny glue: concat + pad of the activations only (weights pre-padded/cast)
    x = jnp.concatenate([x_cell, x_mol], axis=1)
    B, D = x.shape
    tb = min(256, _round_up(B, 8))        # batch tile
    Bp = _round_up(B, tb)
    nb = Bp // tb
    x_p = jnp.zeros((Bp, d_in_p), jnp.bfloat16).at[:B, :D].set(x.astype(jnp.bfloat16))

    kernel = functools.partial(mlp_kernel, out_p=out_p)

    grid_spec = pltpu.PrefetchScalarGridSpec(
        num_scalar_prefetch=0,
        grid=(nb,),
        in_specs=[
            pl.BlockSpec((tb, d_in_p), lambda i: (i, 0)),     # x tile
            pl.BlockSpec((d_in_p, h_p), lambda i: (0, 0)),    # w1, resident
            pl.BlockSpec((4, h_p), lambda i: (0, 0)),         # packed biases, resident
            pl.BlockSpec(memory_space=pl.ANY),                # w2 (manual DMA)
            pl.BlockSpec(memory_space=pl.ANY),                # w3 (manual DMA)
            pl.BlockSpec(memory_space=pl.ANY),                # w4 (manual DMA)
        ],
        out_specs=pl.BlockSpec((tb, out_p), lambda i: (i, 0)),
        scratch_shapes=[
            pltpu.VMEM((h_p, h_p), jnp.bfloat16),             # w2 VMEM buffer
            pltpu.VMEM((h_p, h_p), jnp.bfloat16),             # w3 VMEM buffer
            pltpu.VMEM((h_p, out_p), jnp.bfloat16),           # w4 VMEM buffer
            pltpu.SemaphoreType.DMA((3,)),
        ],
    )

    out = pl.pallas_call(
        kernel,
        out_shape=jax.ShapeDtypeStruct((Bp, out_p), jnp.float32),
        grid_spec=grid_spec,
        compiler_params=pltpu.CompilerParams(
            dimension_semantics=("arbitrary",),   # step-0 weight prefetch needs sequential grid
            vmem_limit_bytes=16 << 20,
        ),
    )(x_p, w1, b_pack, w2, w3, w4)

    # un-pad
    return out[:B, :out_size]


def reference_forward(x_cell, x_mol, params):
    """Pure-JAX f32 reference (eval-mode dropout = identity)."""
    x = jnp.concatenate([x_cell, x_mol], axis=1).astype(jnp.float32)
    (w1, b1), (w2, b2), (w3, b3), (w4, b4) = params
    h = jnp.tanh(x @ w1 + b1)
    h = jnp.tanh(h @ w2 + b2)
    h = jnp.tanh(h @ w3 + b3)
    return h @ w4 + b4


if __name__ == "__main__":
    cell_in, mol_in, out_size = 20, 12, 10
    hidden = 1000
    batch = 4

    key = jax.random.PRNGKey(0)
    k_cell, k_mol, k_par = jax.random.split(key, 3)
    x_cell = jax.random.normal(k_cell, (batch, cell_in), jnp.float32)
    x_mol = jax.random.normal(k_mol, (batch, mol_in), jnp.float32)

    params = make_params(k_par, cell_in, mol_in, hidden, out_size)
    # One-time preparation (padding + bf16 cast + bias packing) outside jit.
    padded_params = jax.block_until_ready(prepare_params(params))

    y = baseline_forward(x_cell, x_mol, padded_params, out_size=out_size)
    y = jax.block_until_ready(y)

    y_ref = reference_forward(x_cell, x_mol, params)
    assert y.shape == (batch, out_size)
    # bf16 weights/activations with f32 accumulation: loosened tolerance.
    assert jnp.allclose(y, y_ref, atol=3e-2, rtol=3e-2), (
        "max abs err = %f" % float(jnp.max(jnp.abs(y - y_ref))))

    print("KERNEL_OK")
</pallas_src>

<mosaic_0001>
module attributes {stable_mosaic.version = 11 : i64} {
  func.func @mlp_kernel(%arg0: i32, %arg1: memref<8x32xbf16, #tpu.memory_space<vmem>>, %arg2: memref<32x1024xbf16, #tpu.memory_space<vmem>>, %arg3: memref<4x1024xf32, #tpu.memory_space<vmem>>, %arg4: memref<1024x1024xbf16, #tpu.memory_space<any>>, %arg5: memref<1024x1024xbf16, #tpu.memory_space<any>>, %arg6: memref<1024x128xbf16, #tpu.memory_space<any>>, %arg7: memref<8x128xf32, #tpu.memory_space<vmem>>, %arg8: memref<1024x1024xbf16, #tpu.memory_space<vmem>>, %arg9: memref<1024x1024xbf16, #tpu.memory_space<vmem>>, %arg10: memref<1024x128xbf16, #tpu.memory_space<vmem>>, %arg11: memref<3x!tpu.dma_semaphore, #tpu.memory_space<semaphore_mem>>) attributes {dimension_semantics = [#tpu.dimension_semantics<arbitrary>], iteration_bounds = array<i64: 1>, scalar_prefetch = 0 : i64, scratch_operands = 4 : i64, tpu.core_type = #tpu.core_type<tc>, window_params = [{transform_indices = @transform_0, window_bounds = array<i64: 8, 32>}, {pipeline_mode = #tpu.pipeline_mode<synchronous>, transform_indices = @transform_1, window_bounds = array<i64: 32, 1024>}, {pipeline_mode = #tpu.pipeline_mode<synchronous>, transform_indices = @transform_2, window_bounds = array<i64: 4, 1024>}, {}, {}, {}, {transform_indices = @transform_6, window_bounds = array<i64: 8, 128>}]} {
    %c0_i32 = arith.constant 0 : i32
    %0 = arith.cmpi eq, %arg0, %c0_i32 : i32
    %1 = arith.extui %0 : i1 to i32
    %c0_i32_0 = arith.constant 0 : i32
    %2 = arith.cmpi ne, %1, %c0_i32_0 : i32
    scf.if %2 {
      %c0_i32_26 = arith.constant 0 : i32
      %40 = tpu.memref_slice %arg11[%c0_i32_26] : memref<3x!tpu.dma_semaphore, #tpu.memory_space<semaphore_mem>> -> memref<1x!tpu.dma_semaphore, #tpu.memory_space<semaphore_mem>>
      %41 = tpu.memref_squeeze %40 : memref<1x!tpu.dma_semaphore, #tpu.memory_space<semaphore_mem>> -> memref<!tpu.dma_semaphore, #tpu.memory_space<semaphore_mem>>
      tpu.enqueue_dma source(%arg4 : memref<1024x1024xbf16, #tpu.memory_space<any>>) target(%arg8 : memref<1024x1024xbf16, #tpu.memory_space<vmem>>) target_semaphore(%41 : memref<!tpu.dma_semaphore, #tpu.memory_space<semaphore_mem>>)
      %c1_i32 = arith.constant 1 : i32
      %42 = tpu.memref_slice %arg11[%c1_i32] : memref<3x!tpu.dma_semaphore, #tpu.memory_space<semaphore_mem>> -> memref<1x!tpu.dma_semaphore, #tpu.memory_space<semaphore_mem>>
      %43 = tpu.memref_squeeze %42 : memref<1x!tpu.dma_semaphore, #tpu.memory_space<semaphore_mem>> -> memref<!tpu.dma_semaphore, #tpu.memory_space<semaphore_mem>>
      tpu.enqueue_dma source(%arg5 : memref<1024x1024xbf16, #tpu.memory_space<any>>) target(%arg9 : memref<1024x1024xbf16, #tpu.memory_space<vmem>>) target_semaphore(%43 : memref<!tpu.dma_semaphore, #tpu.memory_space<semaphore_mem>>)
      %c2_i32 = arith.constant 2 : i32
      %44 = tpu.memref_slice %arg11[%c2_i32] : memref<3x!tpu.dma_semaphore, #tpu.memory_space<semaphore_mem>> -> memref<1x!tpu.dma_semaphore, #tpu.memory_space<semaphore_mem>>
      %45 = tpu.memref_squeeze %44 : memref<1x!tpu.dma_semaphore, #tpu.memory_space<semaphore_mem>> -> memref<!tpu.dma_semaphore, #tpu.memory_space<semaphore_mem>>
      tpu.enqueue_dma source(%arg6 : memref<1024x128xbf16, #tpu.memory_space<any>>) target(%arg10 : memref<1024x128xbf16, #tpu.memory_space<vmem>>) target_semaphore(%45 : memref<!tpu.dma_semaphore, #tpu.memory_space<semaphore_mem>>)
    } else {
    }
    %c0 = arith.constant 0 : index
    %c0_1 = arith.constant 0 : index
    %3 = vector.load %arg1[%c0, %c0_1] : memref<8x32xbf16, #tpu.memory_space<vmem>>, vector<8x32xbf16>
    %c0_2 = arith.constant 0 : index
    %c0_3 = arith.constant 0 : index
    %4 = vector.load %arg2[%c0_2, %c0_3] : memref<32x1024xbf16, #tpu.memory_space<vmem>>, vector<32x1024xbf16>
    %cst = arith.constant dense<0.000000e+00> : vector<8x1024xf32>
    %5 = tpu.matmul %3, %4, %cst {dimension_numbers = #tpu.dot_dimension_numbers<[1], [0], [0], [1], [0, 0, 1, 1], [], []>} : vector<8x32xbf16>, vector<32x1024xbf16>, vector<8x1024xf32> -> vector<8x1024xf32>
    %c0_4 = arith.constant 0 : index
    %c0_5 = arith.constant 0 : index
    %6 = vector.load %arg3[%c0_4, %c0_5] : memref<4x1024xf32, #tpu.memory_space<vmem>>, vector<1x1024xf32>
    %7 = vector.broadcast %6 : vector<1x1024xf32> to vector<8x1024xf32>
    %8 = arith.addf %5, %7 : vector<8x1024xf32>
    %9 = math.tanh %8 : vector<8x1024xf32>
    %10 = arith.truncf %9 : vector<8x1024xf32> to vector<8x1024xbf16>
    %c0_i32_6 = arith.constant 0 : i32
    %11 = arith.cmpi eq, %arg0, %c0_i32_6 : i32
    %12 = arith.extui %11 : i1 to i32
    %c0_i32_7 = arith.constant 0 : i32
    %13 = arith.cmpi ne, %12, %c0_i32_7 : i32
    scf.if %13 {
      %c0_i32_26 = arith.constant 0 : i32
      %40 = tpu.memref_slice %arg11[%c0_i32_26] : memref<3x!tpu.dma_semaphore, #tpu.memory_space<semaphore_mem>> -> memref<1x!tpu.dma_semaphore, #tpu.memory_space<semaphore_mem>>
      %41 = tpu.memref_squeeze %40 : memref<1x!tpu.dma_semaphore, #tpu.memory_space<semaphore_mem>> -> memref<!tpu.dma_semaphore, #tpu.memory_space<semaphore_mem>>
      tpu.wait_dma2 semaphore(%41 : memref<!tpu.dma_semaphore, #tpu.memory_space<semaphore_mem>>) src(%arg4 : memref<1024x1024xbf16, #tpu.memory_space<any>>) dst(%arg8 : memref<1024x1024xbf16, #tpu.memory_space<vmem>>)
    } else {
    }
    %c0_8 = arith.constant 0 : index
    %c0_9 = arith.constant 0 : index
    %14 = vector.load %arg8[%c0_8, %c0_9] : memref<1024x1024xbf16, #tpu.memory_space<vmem>>, vector<1024x1024xbf16>
    %cst_10 = arith.constant dense<0.000000e+00> : vector<8x1024xf32>
    %15 = tpu.matmul %10, %14, %cst_10 {dimension_numbers = #tpu.dot_dimension_numbers<[1], [0], [0], [1], [0, 0, 1, 1], [], []>} : vector<8x1024xbf16>, vector<1024x1024xbf16>, vector<8x1024xf32> -> vector<8x1024xf32>
    %c1 = arith.constant 1 : index
    %c0_11 = arith.constant 0 : index
    %16 = vector.load %arg3[%c1, %c0_11] : memref<4x1024xf32, #tpu.memory_space<vmem>>, vector<1x1024xf32>
    %17 = vector.broadcast %16 : vector<1x1024xf32> to vector<8x1024xf32>
    %18 = arith.addf %15, %17 : vector<8x1024xf32>
    %19 = math.tanh %18 : vector<8x1024xf32>
    %20 = arith.truncf %19 : vector<8x1024xf32> to vector<8x1024xbf16>
    %c0_i32_12 = arith.constant 0 : i32
    %21 = arith.cmpi eq, %arg0, %c0_i32_12 : i32
    %22 = arith.extui %21 : i1 to i32
    %c0_i32_13 = arith.constant 0 : i32
    %23 = arith.cmpi ne, %22, %c0_i32_13 : i32
    scf.if %23 {
      %c1_i32 = arith.constant 1 : i32
      %40 = tpu.memref_slice %arg11[%c1_i32] : memref<3x!tpu.dma_semaphore, #tpu.memory_space<semaphore_mem>> -> memref<1x!tpu.dma_semaphore, #tpu.memory_space<semaphore_mem>>
      %41 = tpu.memref_squeeze %40 : memref<1x!tpu.dma_semaphore, #tpu.memory_space<semaphore_mem>> -> memref<!tpu.dma_semaphore, #tpu.memory_space<semaphore_mem>>
      tpu.wait_dma2 semaphore(%41 : memref<!tpu.dma_semaphore, #tpu.memory_space<semaphore_mem>>) src(%arg5 : memref<1024x1024xbf16, #tpu.memory_space<any>>) dst(%arg9 : memref<1024x1024xbf16, #tpu.memory_space<vmem>>)
    } else {
    }
    %c0_14 = arith.constant 0 : index
    %c0_15 = arith.constant 0 : index
    %24 = vector.load %arg9[%c0_14, %c0_15] : memref<1024x1024xbf16, #tpu.memory_space<vmem>>, vector<1024x1024xbf16>
    %cst_16 = arith.constant dense<0.000000e+00> : vector<8x1024xf32>
    %25 = tpu.matmul %20, %24, %cst_16 {dimension_numbers = #tpu.dot_dimension_numbers<[1], [0], [0], [1], [0, 0, 1, 1], [], []>} : vector<8x1024xbf16>, vector<1024x1024xbf16>, vector<8x1024xf32> -> vector<8x1024xf32>
    %c2 = arith.constant 2 : index
    %c0_17 = arith.constant 0 : index
    %26 = vector.load %arg3[%c2, %c0_17] : memref<4x1024xf32, #tpu.memory_space<vmem>>, vector<1x1024xf32>
    %27 = vector.broadcast %26 : vector<1x1024xf32> to vector<8x1024xf32>
    %28 = arith.addf %25, %27 : vector<8x1024xf32>
    %29 = math.tanh %28 : vector<8x1024xf32>
    %30 = arith.truncf %29 : vector<8x1024xf32> to vector<8x1024xbf16>
    %c0_i32_18 = arith.constant 0 : i32
    %31 = arith.cmpi eq, %arg0, %c0_i32_18 : i32
    %32 = arith.extui %31 : i1 to i32
    %c0_i32_19 = arith.constant 0 : i32
    %33 = arith.cmpi ne, %32, %c0_i32_19 : i32
    scf.if %33 {
      %c2_i32 = arith.constant 2 : i32
      %40 = tpu.memref_slice %arg11[%c2_i32] : memref<3x!tpu.dma_semaphore, #tpu.memory_space<semaphore_mem>> -> memref<1x!tpu.dma_semaphore, #tpu.memory_space<semaphore_mem>>
      %41 = tpu.memref_squeeze %40 : memref<1x!tpu.dma_semaphore, #tpu.memory_space<semaphore_mem>> -> memref<!tpu.dma_semaphore, #tpu.memory_space<semaphore_mem>>
      tpu.wait_dma2 semaphore(%41 : memref<!tpu.dma_semaphore, #tpu.memory_space<semaphore_mem>>) src(%arg6 : memref<1024x128xbf16, #tpu.memory_space<any>>) dst(%arg10 : memref<1024x128xbf16, #tpu.memory_space<vmem>>)
    } else {
    }
    %c0_20 = arith.constant 0 : index
    %c0_21 = arith.constant 0 : index
    %34 = vector.load %arg10[%c0_20, %c0_21] : memref<1024x128xbf16, #tpu.memory_space<vmem>>, vector<1024x128xbf16>
    %cst_22 = arith.constant dense<0.000000e+00> : vector<8x128xf32>
    %35 = tpu.matmul %30, %34, %cst_22 {dimension_numbers = #tpu.dot_dimension_numbers<[1], [0], [0], [1], [0, 0, 1, 1], [], []>} : vector<8x1024xbf16>, vector<1024x128xbf16>, vector<8x128xf32> -> vector<8x128xf32>
    %c3 = arith.constant 3 : index
    %c0_23 = arith.constant 0 : index
    %36 = vector.load %arg3[%c3, %c0_23] : memref<4x1024xf32, #tpu.memory_space<vmem>>, vector<1x128xf32>
    %37 = vector.broadcast %36 : vector<1x128xf32> to vector<8x128xf32>
    %38 = arith.addf %35, %37 : vector<8x128xf32>
    %c0_24 = arith.constant 0 : index
    %c0_25 = arith.constant 0 : index
    %39 = vector.load %arg7[%c0_24, %c0_25] : memref<8x128xf32, #tpu.memory_space<vmem>>, vector<8x128xf32>
    tpu.vector_store %arg7[%c0_24, %c0_25], %38 {strides = array<i32>} : memref<8x128xf32, #tpu.memory_space<vmem>>, vector<8x128xf32>,
    return
  }
  func.func @transform_0(%arg0: i32) -> (i32, i32) {
    %c0_i32 = arith.constant 0 : i32
    %c0_i32_0 = arith.constant 0 : i32
    return %arg0, %c0_i32 : i32, i32
  }
  func.func @transform_1(%arg0: i32) -> (i32, i32) {
    %c0_i32 = arith.constant 0 : i32
    %c0_i32_0 = arith.constant 0 : i32
    %c0_i32_1 = arith.constant 0 : i32
    return %c0_i32, %c0_i32_0 : i32, i32
  }
  func.func @transform_2(%arg0: i32) -> (i32, i32) {
    %c0_i32 = arith.constant 0 : i32
    %c0_i32_0 = arith.constant 0 : i32
    %c0_i32_1 = arith.constant 0 : i32
    return %c0_i32, %c0_i32_0 : i32, i32
  }
  func.func @transform_6(%arg0: i32) -> (i32, i32) {
    %c0_i32 = arith.constant 0 : i32
    %c0_i32_0 = arith.constant 0 : i32
    return %arg0, %c0_i32 : i32, i32
  }
}

</mosaic_0001>

<bundles_post_ra>
// kernel: baseline_forward.1
= control target key start
LH: loop header
LB: loop body
LE: loop exit
PB: predicated region body
PF: predicated region fallthrough
CT: control target
= control target key end

     0   :  { %11 = vsyncpa [#allocation7], 0  ;;  %s3879_s0 = inlined_call_operand.vmem [shape: bf16[8,32], index: 0, kind: input, shape index: {}]   ;;  %s3880_s1 = inlined_call_operand.hbm [shape: bf16[32,1024], index: 1, kind: input, shape index: {}]   ;;  %s3881_s2 = inlined_call_operand.hbm [shape: f32[4,1024], index: 2, kind: input, shape index: {}]   ;;  %s3882_s3 = inlined_call_operand.hbm [shape: bf16[1024,1024], index: 3, kind: input, shape index: {}]   ;;  %s3883_s4 = inlined_call_operand.hbm [shape: bf16[1024,1024], index: 4, kind: input, shape index: {}]   ;;  %s3884_s5 = inlined_call_operand.hbm [shape: bf16[1024,128], index: 5, kind: input, shape index: {}]   ;;  %s3885_s6 = inlined_call_operand.vmem [shape: f32[8,128], index: 6, kind: output, shape index: {}]  }
   0x1   :  { %12 = vsyncpa [#allocation9], 0  ;;  %s3557_s21 = smov [#allocation6]   ;;  %s3481_s25 = scalar_lea.hbm %s3880_s1, 2048 }
   0x2   :  { %s20_s22 = sshll.u32 %s3557_s21, 4  ;;  %p3482_p0 = scmp.ne.s32.totalorder %s3880_s1, %s3481_s25  ;;  %s21_s22 = int_to_ptr.vmem [resolvable:$true] %s20_s22 }
   0x3   :  { %p3485_p1 = scmp.lt.u32.totalorder %s3481_s25, %s3880_s1 }
   0x5   :  { %p3487_p2 = pnand %p3485_p1, %p3482_p0 }
   0x7   :  { %3490 = shalt.err (!%p3487_p2)
}
   0x8   :  { %s3491_s30 = scalar_lea.vmem %s21_s22, 2048  ;;  %p3496_p4 = scmp.lt.s32.totalorder %s21_s22, %s21_s22 }
   0x9   :  { %p3492_p3 = scmp.ne.s32.totalorder %s21_s22, %s3491_s30  ;;  %p3497_p5 = scmp.lt.s32.totalorder %s3491_s30, %s3491_s30 }
   0xb   :  { %p3498_p6 = por %p3497_p5, %p3496_p4 }
   0xd   :  { %p3499_p7 = pnand %p3498_p6, %p3492_p3 }
   0xf   :  { %3502 = shalt.err (!%p3499_p7)
}
  0x10   :  { %s3558_s7 = smov 512   ;;  %s3559_s8 = smov 32  }
  0x11   :  { %26 = dma.hbm_to_vmem [thread:$0]  %s3880_s1, 2048, %s21_s22, [#allocation7], %s3558_s7, %s3558_s7, %s3559_s8  }
  0x12   :  { %s3560_s11 = smov [#allocation8]   ;;  %s3503_s15 = scalar_lea.hbm %s3881_s2, 512 }
  0x13   :  { %s33_s12 = sshll.u32 %s3560_s11, 4  ;;  %p3504_p8 = scmp.ne.s32.totalorder %s3881_s2, %s3503_s15  ;;  %s34_s12 = int_to_ptr.vmem [resolvable:$true] %s33_s12 }
  0x14   :  { %p3507_p9 = scmp.lt.u32.totalorder %s3503_s15, %s3881_s2 }
  0x16   :  { %p3509_p10 = pnand %p3507_p9, %p3504_p8 }
  0x18   :  { %3512 = shalt.err (!%p3509_p10)
}
  0x19   :  { %s3513_s20 = scalar_lea.vmem %s34_s12, 512  ;;  %p3518_p12 = scmp.lt.s32.totalorder %s34_s12, %s34_s12 }
  0x1a   :  { %p3514_p11 = scmp.ne.s32.totalorder %s34_s12, %s3513_s20  ;;  %p3519_p13 = scmp.lt.s32.totalorder %s3513_s20, %s3513_s20 }
  0x1c   :  { %p3520_p0 = por %p3519_p13, %p3518_p12 }
  0x1e   :  { %p3521_p1 = pnand %p3520_p0, %p3514_p11 }
  0x20   :  { %3524 = shalt.err (!%p3521_p1)
}
  0x21   :  { %36 = dma.hbm_to_vmem [thread:$0]  %s3881_s2, 512, %s34_s12, [#allocation9]  }
  0x22   :  { %3547 = dma.done.wait [#allocation7], 2048  }
  0x23   :  { %3548 = vsyncadd [#allocation7], 4294965248 }
  0x24   :  { %3549 = dma.done.wait [#allocation9], 512  }
  0x25   :  { %3550 = vsyncadd [#allocation9], 4294966784 }
  0x26   :  { %s52_s22 = sld [smem:[#allocation0]]   ;;  %s3561_s23 = smov [#allocation2]  }
  0x27   :  { %s60_s24 = sshll.u32 %s3561_s23, 4  ;;  %s3562_s25 = smov 1024   ;;  %s61_s24 = int_to_ptr.vmem [resolvable:$true] %s60_s24 }
  0x28   :  { %64 = sst [smem:[#allocation11]] %s3562_s25  ;;  %s3563_s26 = smov 8  }
  0x29   :  { %66 = sst [smem:[#allocation11 + $0x1]] %s3562_s25  ;;  %s3564_s27 = smov 64  }
  0x2a   :  { %68 = sst [smem:[#allocation11 + $0x2]] %s3563_s26  ;;  %s3565_s29 = smov 128  }
  0x2b   :  { %70 = sst [smem:[#allocation11 + $0x3]] %s3564_s27  ;;  %s3566_s2 = smov 2  }
  0x2c   :  { %s3186_s28 = sshll.u32 %s52_s22, 26  ;;  %72 = sst [smem:[#allocation11 + $0x4]] %s3565_s29 }
  0x2d   :  { %s3635_s30 = sadd.s32 134217728, %s3186_s28  ;;  %74 = sst [smem:[#allocation11 + $0x5]] %s3566_s2 }
  0x2e   :  { %s3567_s7 = smov 512   ;;  %78 = sst [smem:[#allocation11 + $0x7]] %s3564_s27 }
  0x2f   :  { %76 = sst [smem:[#allocation11 + $0x6]] %s3567_s7  ;;  %s3568_s8 = smov 4  }
  0x30   :  { %80 = sst [smem:[#allocation11 + $0x8]] %s3568_s8  ;;  %s3569_s9 = smov [#allocation5]  }
  0x31   :  { %s3570_s10 = smov [#allocation10]   ;;  %s3571_s13 = smov [#allocation3]  }
  0x32   :  { %82 = dma.general %s3882_s3, 65536, %s61_s24, %s3569_s9, %s3570_s10, [#allocation11], %s3635_s30, 0  }
  0x33   :  { %99 = sst [smem:[#allocation13]] %s3562_s25  ;;  %s95_s14 = sshll.u32 %s3571_s13, 4  ;;  %s96_s14 = int_to_ptr.vmem [resolvable:$true] %s95_s14 }
  0x34   :  { %101 = sst [smem:[#allocation13 + $0x1]] %s3562_s25  ;;  %s3572_s15 = smov [#allocation4]  }
  0x35   :  { %103 = sst [smem:[#allocation13 + $0x2]] %s3563_s26  ;;  %s126_s16 = sshll.u32 %s3572_s15, 4  ;;  %s127_s16 = int_to_ptr.vmem [resolvable:$true] %s126_s16 }
  0x36   :  { %105 = sst [smem:[#allocation13 + $0x3]] %s3564_s27  ;;  %s3573_s17 = smov [#allocation5 + $0x1]  }
  0x37   :  { %107 = sst [smem:[#allocation13 + $0x4]] %s3565_s29  ;;  %s3574_s18 = smov [#allocation12]  }
  0x38   :  { %109 = sst [smem:[#allocation13 + $0x5]] %s3566_s2  ;;  %s3525_s21 = scalar_lea.hbm %s3884_s5, 8192 }
  0x39   :  { %111 = sst [smem:[#allocation13 + $0x6]] %s3567_s7  ;;  %p3526_p2 = scmp.ne.s32.totalorder %s3884_s5, %s3525_s21 }
  0x3a   :  { %113 = sst [smem:[#allocation13 + $0x7]] %s3564_s27  ;;  %p3529_p3 = scmp.lt.u32.totalorder %s3525_s21, %s3884_s5 }
  0x3b   :  { %115 = sst [smem:[#allocation13 + $0x8]] %s3568_s8 }
  0x3c   :  { %117 = dma.general %s3883_s4, 65536, %s96_s14, %s3573_s17, %s3574_s18, [#allocation13], %s3635_s30, 0  }
  0x3d   :  { %p3531_p4 = pnand %p3529_p3, %p3526_p2 }
  0x3f   :  { %3534 = shalt.err (!%p3531_p4)  }
  0x40   :  { %s3535_s26 = scalar_lea.vmem %s127_s16, 8192  ;;  %p3540_p6 = scmp.lt.s32.totalorder %s127_s16, %s127_s16 }
  0x41   :  { %p3536_p5 = scmp.ne.s32.totalorder %s127_s16, %s3535_s26  ;;  %p3541_p7 = scmp.lt.s32.totalorder %s3535_s26, %s3535_s26 }
  0x43   :  { %p3542_p8 = por %p3541_p7, %p3540_p6 }
  0x45   :  { %p3543_p9 = pnand %p3542_p8, %p3536_p5 }
  0x47   :  { %3546 = shalt.err (!%p3543_p9)  }
  0x48   :  { %129 = dma.hbm_to_vmem [thread:$0]  %s3884_s5, 8192, %s127_s16, [#allocation5 + $0x2]  ;;  %v131_v0 = vld [vmem:[#allocation6] sm:$0xff]  ;;  %v132_v2 = vld [vmem:[#allocation6 + $0x8] sm:$0xff]  ;;  %v3575_v8 = vmov 0   ;;  %v133_v15 = vld [vmem:[#allocation6 + $0x10] sm:$0xff]  ;;  %v149_v34 = vlaneseq }
  0x49   :  { %v135_v1 = vld [vmem:[#allocation6 + $0x20] sm:$0xff]  ;;  %v136_v4 = vld [vmem:[#allocation6 + $0x28] sm:$0xff]  ;;  %305 = vmatprep.mubr.bf16.mxu0 %v3575_v8  ;;  %346 = vmatprep.mubr.bf16.mxu1 %v3575_v8  ;;  %v137_v16 = vld [vmem:[#allocation6 + $0x30] sm:$0xff]  ;;  %vm269_vm0 = vcmask 261120  }
  0x4a   :  { %v3191_v3 = vcombine.high %v131_v0, %v135_v1  ;;  %v3190_v5 = vcombine.low %v131_v0, %v135_v1  ;;  %v139_v6 = vld [vmem:[#allocation6 + $0x40] sm:$0xff]  ;;  %v3193_v9 = vcombine.high %v132_v2, %v136_v4  ;;  %v3192_v10 = vcombine.low %v132_v2, %v136_v4  ;;  %v140_v12 = vld [vmem:[#allocation6 + $0x48] sm:$0xff]  ;;  %v134_v17 = vld [vmem:[#allocation6 + $0x18] sm:$0xff] }
  0x4b   :  { %v143_v7 = vld [vmem:[#allocation6 + $0x60] sm:$0xff]  ;;  %v144_v13 = vld [vmem:[#allocation6 + $0x68] sm:$0xff]  ;;  %v138_v19 = vld [vmem:[#allocation6 + $0x38] sm:$0xff]  ;;  %v3195_v21 = vcombine.high %v133_v15, %v137_v16  ;;  %v3194_v28 = vcombine.low %v133_v15, %v137_v16  ;;  %v150_v35 = vshrl.u32 %v149_v34, 7 }
  0x4c   :  { %v3199_v11 = vcombine.high %v139_v6, %v143_v7  ;;  %273 = vmatprep.subr.bf16.mxu0 %v3191_v3  ;;  %v3201_v14 = vcombine.high %v140_v12, %v144_v13  ;;  %314 = vmatprep.subr.bf16.mxu1 %v3193_v9  ;;  %v3198_v18 = vcombine.low %v139_v6, %v143_v7  ;;  %v141_v23 = vld [vmem:[#allocation6 + $0x50] sm:$0xff]  ;;  %v142_v25 = vld [vmem:[#allocation6 + $0x58] sm:$0xff]  ;;  %v130_v27 = vld [vmem:[%s3879_s0] sm:$0xf] }
  0x4d   :  { %274 = vmatpush1.bf16.msra.mxu0 %v3190_v5  ;;  %315 = vmatpush1.bf16.msra.mxu1 %v3192_v10  ;;  %v3200_v20 = vcombine.low %v140_v12, %v144_v13  ;;  %v3197_v22 = vcombine.high %v134_v17, %v138_v19  ;;  %v145_v24 = vld [vmem:[#allocation6 + $0x70] sm:$0xff]  ;;  %v146_v26 = vld [vmem:[#allocation6 + $0x78] sm:$0xff]  ;;  %v3196_v29 = vcombine.low %v134_v17, %v138_v19  ;;  %v3664_v36 = vsub.s32 0, %v150_v35 }
  0x4e   :  { %275 = vmatprep.subr.bf16.mxu0 %v3199_v11  ;;  %316 = vmatprep.subr.bf16.mxu1 %v3201_v14  ;;  %v3203_v30 = vcombine.high %v141_v23, %v145_v24  ;;  %v3205_v31 = vcombine.high %v142_v25, %v146_v26  ;;  %v3202_v32 = vcombine.low %v141_v23, %v145_v24  ;;  %v147_v37 = vld [vmem:[#allocation8] ss:$4 sm:$0xff]  ;;  %v3666_v38 = vsub.s32 2, %v150_v35 }
  0x4f   :  { %v3204_v33 = vcombine.low %v142_v25, %v146_v26  ;;  %v3668_v39 = vsub.s32 1, %v150_v35  ;;  %v3670_v40 = vsub.s32 3, %v150_v35  ;;  %v152_v41 = vrot.slane %v147_v37, %v3664_v36 }
  0x50   :  { %v160_v42 = vrot.slane %v147_v37, %v3666_v38  ;;  %v3676_v49 = vsub.s32 4, %v150_v35  ;;  %v3678_v54 = vsub.s32 6, %v150_v35  ;;  %v3680_v55 = vsub.s32 5, %v150_v35 }
  0x51   :  { %276 = vmatpush1.bf16.msra.mxu0 %v3198_v18  ;;  %317 = vmatpush1.bf16.msra.mxu1 %v3200_v20  ;;  %v156_v43 = vrot.slane %v147_v37, %v3668_v39  ;;  %v164_v44 = vrot.slane %v147_v37, %v3670_v40  ;;  %v3682_v59 = vsub.s32 7, %v150_v35 }
  0x52   :  { %355 = vmatprep.subr.bf16.mxu0 %v3195_v21  ;;  %396 = vmatprep.subr.bf16.mxu1 %v3197_v22  ;;  %v168_v61 = vrot.slane %v147_v37, %v3676_v49  ;;  %v176_v62 = vrot.slane %v147_v37, %v3678_v54  ;;  %v172_v63 = vrot.slane %v147_v37, %v3680_v55 }
  0x53   :  { %v180_v0 = vrot.slane %v147_v37, %v3682_v59 }
  0x54   :  { %3206 = vmatmul.mubr.msk.bf16.vlgmr.msra.gmra.mrb[0].mxu0 %vm269_vm0, %v130_v27  ;;  %3207 = vmatmul.mubr.msk.bf16.vlgmr.msra.gmra.mrb[0].mxu1 %vm269_vm0, %v130_v27 }
  0x55   :  { %356 = vmatpush1.bf16.msra.mxu0 %v3194_v28  ;;  %397 = vmatpush1.bf16.msra.mxu1 %v3196_v29 }
  0x56   :  { %357 = vmatprep.subr.bf16.mxu0 %v3203_v30  ;;  %398 = vmatprep.subr.bf16.mxu1 %v3205_v31 }
  0x57   :  { %387 = vmatprep.mubr.bf16.mxu0 %v3575_v8  ;;  %428 = vmatprep.mubr.bf16.mxu1 %v3575_v8 }
  0x59   :  { %358 = vmatpush1.bf16.msra.mxu0 %v3202_v32  ;;  %399 = vmatpush1.bf16.msra.mxu1 %v3204_v33 }
  0x5c   :  { %3208 = vmatmul.mubr.msk.bf16.vlgmr.msra.gmra.mrb[4].mxu0 %vm269_vm0, %v130_v27  ;;  %3209 = vmatmul.mubr.msk.bf16.vlgmr.msra.gmra.mrb[4].mxu1 %vm269_vm0, %v130_v27 }
 0x127   :  { %v307_v45 = vpop.f32.mrb[0].mxu0  ;;  %v348_v47 = vpop.f32.mrb[0].mxu1 }
 0x128   :  { %v308_v46 = vadd.f32 %v307_v45, %v152_v41  ;;  %v309_v48 = vpop.f32.mrb[1].mxu0  ;;  %v349_v50 = vadd.f32 %v348_v47, %v160_v42  ;;  %v350_v52 = vpop.f32.mrb[1].mxu1 }
 0x129   :  { %v310_v51 = vadd.f32 %v309_v48, %v156_v43  ;;  %v311_v53 = vpop.f32.mrb[2].mxu0  ;;  %v351_v56 = vadd.f32 %v350_v52, %v164_v44  ;;  %v352_v57 = vpop.f32.mrb[2].mxu1 }
 0x12a   :  { %3433 = vtanh.f32 %v308_v46  ;;  %v312_v58 = vpop.f32.mrb[3].mxu0  ;;  %v353_v60 = vpop.f32.mrb[3].mxu1 }
 0x12b   :  { %3435 = vtanh.f32 %v349_v50 }
 0x12c   :  { %3437 = vtanh.f32 %v310_v51 }
 0x12d   :  { %3439 = vtanh.f32 %v351_v56 }
 0x12f   :  { %v389_v1 = vpop.f32.mrb[4].mxu0  ;;  %v430_v3 = vpop.f32.mrb[4].mxu1 }
 0x130   :  { %v390_v2 = vadd.f32 %v389_v1, %v168_v61  ;;  %v391_v4 = vpop.f32.mrb[5].mxu0  ;;  %v431_v5 = vadd.f32 %v430_v3, %v176_v62  ;;  %v432_v7 = vpop.f32.mrb[5].mxu1 }
 0x131   :  { %v392_v6 = vadd.f32 %v391_v4, %v172_v63  ;;  %v393_v8 = vpop.f32.mrb[6].mxu0  ;;  %v433_v9 = vadd.f32 %v432_v7, %v180_v0  ;;  %v434_v10 = vpop.f32.mrb[6].mxu1 }
 0x132   :  { %3441 = vtanh.f32 %v390_v2  ;;  %v394_v11 = vpop.f32.mrb[7].mxu0  ;;  %v435_v12 = vpop.f32.mrb[7].mxu1 }
 0x133   :  { %3443 = vtanh.f32 %v431_v5 }
 0x134   :  { %v3434_v13 = vpop.eup %3433  ;;  %3445 = vtanh.f32 %v392_v6 }
 0x135   :  { %v3436_v14 = vpop.eup %3435  ;;  %v3688_v15 = vpack.c.bf16 %v3434_v13, %v3434_v13  ;;  %3447 = vtanh.f32 %v433_v9 }
 0x136   :  { %v3438_v16 = vpop.eup %3437  ;;  %v3690_v17 = vpack.c.bf16 %v3436_v14, %v3436_v14 }
 0x137   :  { %v3440_v18 = vpop.eup %3439  ;;  %v3692_v19 = vpack.c.bf16 %v3438_v16, %v3438_v16 }
 0x138   :  { %v3694_v20 = vpack.c.bf16 %v3440_v18, %v3440_v18 }
 0x13c   :  { %v3442_v21 = vpop.eup %3441 }
 0x13d   :  { %v3444_v22 = vpop.eup %3443  ;;  %v3696_v23 = vpack.c.bf16 %v3442_v21, %v3442_v21 }
 0x13e   :  { %v3446_v24 = vpop.eup %3445  ;;  %v3698_v25 = vpack.c.bf16 %v3444_v22, %v3444_v22 }
 0x13f   :  { %v3448_v26 = vpop.eup %3447  ;;  %v3700_v27 = vpack.c.bf16 %v3446_v24, %v3446_v24 }
 0x140   :  { %v3702_v28 = vpack.c.bf16 %v3448_v26, %v3448_v26 }
 0x141   :  { %3551 = dma.done.wait [#allocation5], 65536 }
 0x142   :  { %3552 = vsyncadd [#allocation5], 4294901760  ;;  %1047 = vmatprep.mubr.bf16.mxu0 %v3692_v19  ;;  %1211 = vmatprep.mubr.bf16.mxu1 %v3692_v19  ;;  %v461_v29 = vld [vmem:[#allocation2 + $0x8] sm:$0xff]  ;;  %v463_v30 = vld [vmem:[#allocation2 + $0x18] sm:$0xff] }
 0x143   :  { %v460_v31 = vld [vmem:[#allocation2] sm:$0xff]  ;;  %1015 = vmatprep.subr.bf16.mxu0 %v461_v29  ;;  %1179 = vmatprep.subr.bf16.mxu1 %v463_v30  ;;  %v462_v32 = vld [vmem:[#allocation2 + $0x10] sm:$0xff]  ;;  %v469_v33 = vld [vmem:[#allocation2 + $0x48] sm:$0xff] }
 0x144   :  { %v471_v34 = vld [vmem:[#allocation2 + $0x58] sm:$0xff]  ;;  %1016 = vmatpush1.bf16.msra.mxu0 %v460_v31  ;;  %1180 = vmatpush1.bf16.msra.mxu1 %v462_v32  ;;  %v468_v35 = vld [vmem:[#allocation2 + $0x40] sm:$0xff]  ;;  %v470_v37 = vld [vmem:[#allocation2 + $0x50] sm:$0xff] }
 0x145   :  { %1017 = vmatprep.subr.bf16.mxu0 %v469_v33  ;;  %1181 = vmatprep.subr.bf16.mxu1 %v471_v34  ;;  %v477_v41 = vld [vmem:[#allocation2 + $0x88] sm:$0xff]  ;;  %v479_v42 = vld [vmem:[#allocation2 + $0x98] sm:$0xff]  ;;  %v476_v43 = vld [vmem:[#allocation2 + $0x80] sm:$0xff] }
 0x146   :  { %v478_v44 = vld [vmem:[#allocation2 + $0x90] sm:$0xff]  ;;  %v485_v45 = vld [vmem:[#allocation2 + $0xc8] sm:$0xff]  ;;  %v487_v46 = vld [vmem:[#allocation2 + $0xd8] sm:$0xff] }
 0x147   :  { %v484_v47 = vld [vmem:[#allocation2 + $0xc0] sm:$0xff]  ;;  %v486_v48 = vld [vmem:[#allocation2 + $0xd0] sm:$0xff]  ;;  %v493_v50 = vld [vmem:[#allocation2 + $0x108] sm:$0xff] }
 0x148   :  { %1018 = vmatpush1.bf16.msra.mxu0 %v468_v35  ;;  %1182 = vmatpush1.bf16.msra.mxu1 %v470_v37  ;;  %v495_v51 = vld [vmem:[#allocation2 + $0x118] sm:$0xff]  ;;  %v492_v52 = vld [vmem:[#allocation2 + $0x100] sm:$0xff]  ;;  %v494_v53 = vld [vmem:[#allocation2 + $0x110] sm:$0xff] }
 0x149   :  { %1019 = vmatprep.subr.bf16.mxu0 %v477_v41  ;;  %1183 = vmatprep.subr.bf16.mxu1 %v479_v42  ;;  %v501_v56 = vld [vmem:[#allocation2 + $0x148] sm:$0xff]  ;;  %v503_v57 = vld [vmem:[#allocation2 + $0x158] sm:$0xff]  ;;  %v500_v58 = vld [vmem:[#allocation2 + $0x140] sm:$0xff] }
 0x14a   :  { %v502_v60 = vld [vmem:[#allocation2 + $0x150] sm:$0xff]  ;;  %v509_v61 = vld [vmem:[#allocation2 + $0x188] sm:$0xff]  ;;  %v511_v62 = vld [vmem:[#allocation2 + $0x198] sm:$0xff] }
 0x14b   :  { %v508_v63 = vld [vmem:[#allocation2 + $0x180] sm:$0xff]  ;;  %v510_v0 = vld [vmem:[#allocation2 + $0x190] sm:$0xff]  ;;  %v517_v1 = vld [vmem:[#allocation2 + $0x1c8] sm:$0xff] }
 0x14c   :  { %1020 = vmatpush1.bf16.msra.mxu0 %v476_v43  ;;  %1184 = vmatpush1.bf16.msra.mxu1 %v478_v44  ;;  %v519_v2 = vld [vmem:[#allocation2 + $0x1d8] sm:$0xff]  ;;  %v516_v3 = vld [vmem:[#allocation2 + $0x1c0] sm:$0xff]  ;;  %v518_v4 = vld [vmem:[#allocation2 + $0x1d0] sm:$0xff] }
 0x14d   :  { %1021 = vmatprep.subr.bf16.mxu0 %v485_v45  ;;  %1185 = vmatprep.subr.bf16.mxu1 %v487_v46  ;;  %v525_v5 = vld [vmem:[#allocation2 + $0x208] sm:$0xff]  ;;  %v527_v6 = vld [vmem:[#allocation2 + $0x218] sm:$0xff]  ;;  %v524_v7 = vld [vmem:[#allocation2 + $0x200] sm:$0xff] }
 0x14e   :  { %v526_v8 = vld [vmem:[#allocation2 + $0x210] sm:$0xff]  ;;  %v533_v9 = vld [vmem:[#allocation2 + $0x248] sm:$0xff]  ;;  %v535_v10 = vld [vmem:[#allocation2 + $0x258] sm:$0xff] }
 0x14f   :  { %v532_v11 = vld [vmem:[#allocation2 + $0x240] sm:$0xff]  ;;  %v534_v12 = vld [vmem:[#allocation2 + $0x250] sm:$0xff]  ;;  %v541_v13 = vld [vmem:[#allocation2 + $0x288] sm:$0xff] }
 0x150   :  { %1022 = vmatpush1.bf16.msra.mxu0 %v484_v47  ;;  %1186 = vmatpush1.bf16.msra.mxu1 %v486_v48  ;;  %v543_v14 = vld [vmem:[#allocation2 + $0x298] sm:$0xff]  ;;  %v540_v16 = vld [vmem:[#allocation2 + $0x280] sm:$0xff]  ;;  %v542_v18 = vld [vmem:[#allocation2 + $0x290] sm:$0xff] }
 0x151   :  { %1023 = vmatprep.subr.bf16.mxu0 %v493_v50  ;;  %1187 = vmatprep.subr.bf16.mxu1 %v495_v51  ;;  %v549_v21 = vld [vmem:[#allocation2 + $0x2c8] sm:$0xff]  ;;  %v551_v22 = vld [vmem:[#allocation2 + $0x2d8] sm:$0xff]  ;;  %v548_v24 = vld [vmem:[#allocation2 + $0x2c0] sm:$0xff] }
 0x152   :  { %v550_v26 = vld [vmem:[#allocation2 + $0x2d0] sm:$0xff]  ;;  %v557_v29 = vld [vmem:[#allocation2 + $0x308] sm:$0xff]  ;;  %v559_v30 = vld [vmem:[#allocation2 + $0x318] sm:$0xff] }
 0x153   :  { %v556_v31 = vld [vmem:[#allocation2 + $0x300] sm:$0xff]  ;;  %v558_v32 = vld [vmem:[#allocation2 + $0x310] sm:$0xff]  ;;  %v565_v33 = vld [vmem:[#allocation2 + $0x348] sm:$0xff] }
 0x154   :  { %1024 = vmatpush1.bf16.msra.mxu0 %v492_v52  ;;  %1188 = vmatpush1.bf16.msra.mxu1 %v494_v53  ;;  %v567_v34 = vld [vmem:[#allocation2 + $0x358] sm:$0xff]  ;;  %v564_v35 = vld [vmem:[#allocation2 + $0x340] sm:$0xff]  ;;  %v566_v37 = vld [vmem:[#allocation2 + $0x350] sm:$0xff] }
 0x155   :  { %1025 = vmatprep.subr.bf16.mxu0 %v501_v56  ;;  %1189 = vmatprep.subr.bf16.mxu1 %v503_v57  ;;  %v573_v41 = vld [vmem:[#allocation2 + $0x388] sm:$0xff]  ;;  %v575_v42 = vld [vmem:[#allocation2 + $0x398] sm:$0xff]  ;;  %v572_v43 = vld [vmem:[#allocation2 + $0x380] sm:$0xff] }
 0x156   :  { %v574_v44 = vld [vmem:[#allocation2 + $0x390] sm:$0xff]  ;;  %v581_v45 = vld [vmem:[#allocation2 + $0x3c8] sm:$0xff]  ;;  %v583_v46 = vld [vmem:[#allocation2 + $0x3d8] sm:$0xff] }
 0x157   :  { %v580_v47 = vld [vmem:[#allocation2 + $0x3c0] sm:$0xff]  ;;  %v582_v48 = vld [vmem:[#allocation2 + $0x3d0] sm:$0xff]  ;;  %v589_v50 = vld [vmem:[#allocation2 + $0x408] sm:$0xff] }
 0x158   :  { %1026 = vmatpush1.bf16.msra.mxu0 %v500_v58  ;;  %1190 = vmatpush1.bf16.msra.mxu1 %v502_v60  ;;  %v591_v51 = vld [vmem:[#allocation2 + $0x418] sm:$0xff]  ;;  %v588_v52 = vld [vmem:[#allocation2 + $0x400] sm:$0xff]  ;;  %v590_v53 = vld [vmem:[#allocation2 + $0x410] sm:$0xff] }
 0x159   :  { %1027 = vmatprep.subr.bf16.mxu0 %v509_v61  ;;  %1191 = vmatprep.subr.bf16.mxu1 %v511_v62  ;;  %v597_v56 = vld [vmem:[#allocation2 + $0x448] sm:$0xff]  ;;  %v599_v57 = vld [vmem:[#allocation2 + $0x458] sm:$0xff]  ;;  %v596_v58 = vld [vmem:[#allocation2 + $0x440] sm:$0xff] }
 0x15a   :  { %v598_v60 = vld [vmem:[#allocation2 + $0x450] sm:$0xff]  ;;  %v605_v61 = vld [vmem:[#allocation2 + $0x488] sm:$0xff]  ;;  %v607_v62 = vld [vmem:[#allocation2 + $0x498] sm:$0xff] }
 0x15c   :  { %1028 = vmatpush1.bf16.msra.mxu0 %v508_v63  ;;  %1192 = vmatpush1.bf16.msra.mxu1 %v510_v0  ;;  %v604_v63 = vld [vmem:[#allocation2 + $0x480] sm:$0xff]  ;;  %v606_v0 = vld [vmem:[#allocation2 + $0x490] sm:$0xff] }
 0x15d   :  { %1029 = vmatprep.subr.bf16.mxu0 %v517_v1  ;;  %1193 = vmatprep.subr.bf16.mxu1 %v519_v2  ;;  %v613_v1 = vld [vmem:[#allocation2 + $0x4c8] sm:$0xff]  ;;  %v615_v2 = vld [vmem:[#allocation2 + $0x4d8] sm:$0xff] }
 0x160   :  { %1030 = vmatpush1.bf16.msra.mxu0 %v516_v3  ;;  %1194 = vmatpush1.bf16.msra.mxu1 %v518_v4  ;;  %v612_v3 = vld [vmem:[#allocation2 + $0x4c0] sm:$0xff]  ;;  %v614_v4 = vld [vmem:[#allocation2 + $0x4d0] sm:$0xff] }
 0x161   :  { %1031 = vmatprep.subr.bf16.mxu0 %v525_v5  ;;  %1195 = vmatprep.subr.bf16.mxu1 %v527_v6  ;;  %v621_v5 = vld [vmem:[#allocation2 + $0x508] sm:$0xff]  ;;  %v623_v6 = vld [vmem:[#allocation2 + $0x518] sm:$0xff] }
 0x164   :  { %1032 = vmatpush1.bf16.msra.mxu0 %v524_v7  ;;  %1196 = vmatpush1.bf16.msra.mxu1 %v526_v8  ;;  %v620_v7 = vld [vmem:[#allocation2 + $0x500] sm:$0xff]  ;;  %v622_v8 = vld [vmem:[#allocation2 + $0x510] sm:$0xff] }
 0x165   :  { %1033 = vmatprep.subr.bf16.mxu0 %v533_v9  ;;  %1197 = vmatprep.subr.bf16.mxu1 %v535_v10  ;;  %v629_v9 = vld [vmem:[#allocation2 + $0x548] sm:$0xff]  ;;  %v631_v10 = vld [vmem:[#allocation2 + $0x558] sm:$0xff] }
 0x168   :  { %1034 = vmatpush1.bf16.msra.mxu0 %v532_v11  ;;  %1198 = vmatpush1.bf16.msra.mxu1 %v534_v12  ;;  %v628_v11 = vld [vmem:[#allocation2 + $0x540] sm:$0xff]  ;;  %v630_v12 = vld [vmem:[#allocation2 + $0x550] sm:$0xff] }
 0x169   :  { %1035 = vmatprep.subr.bf16.mxu0 %v541_v13  ;;  %1199 = vmatprep.subr.bf16.mxu1 %v543_v14  ;;  %v637_v13 = vld [vmem:[#allocation2 + $0x588] sm:$0xff]  ;;  %v639_v14 = vld [vmem:[#allocation2 + $0x598] sm:$0xff] }
 0x16c   :  { %1036 = vmatpush1.bf16.msra.mxu0 %v540_v16  ;;  %1200 = vmatpush1.bf16.msra.mxu1 %v542_v18  ;;  %v636_v16 = vld [vmem:[#allocation2 + $0x580] sm:$0xff]  ;;  %v638_v18 = vld [vmem:[#allocation2 + $0x590] sm:$0xff] }
 0x16d   :  { %1037 = vmatprep.subr.bf16.mxu0 %v549_v21  ;;  %1201 = vmatprep.subr.bf16.mxu1 %v551_v22  ;;  %v645_v21 = vld [vmem:[#allocation2 + $0x5c8] sm:$0xff]  ;;  %v647_v22 = vld [vmem:[#allocation2 + $0x5d8] sm:$0xff] }
 0x170   :  { %1038 = vmatpush1.bf16.msra.mxu0 %v548_v24  ;;  %1202 = vmatpush1.bf16.msra.mxu1 %v550_v26  ;;  %v644_v24 = vld [vmem:[#allocation2 + $0x5c0] sm:$0xff]  ;;  %v646_v26 = vld [vmem:[#allocation2 + $0x5d0] sm:$0xff] }
 0x171   :  { %1039 = vmatprep.subr.bf16.mxu0 %v557_v29  ;;  %1203 = vmatprep.subr.bf16.mxu1 %v559_v30  ;;  %v653_v29 = vld [vmem:[#allocation2 + $0x608] sm:$0xff]  ;;  %v655_v30 = vld [vmem:[#allocation2 + $0x618] sm:$0xff] }
 0x174   :  { %1040 = vmatpush1.bf16.msra.mxu0 %v556_v31  ;;  %1204 = vmatpush1.bf16.msra.mxu1 %v558_v32  ;;  %v652_v31 = vld [vmem:[#allocation2 + $0x600] sm:$0xff]  ;;  %v654_v32 = vld [vmem:[#allocation2 + $0x610] sm:$0xff] }
 0x175   :  { %1041 = vmatprep.subr.bf16.mxu0 %v565_v33  ;;  %1205 = vmatprep.subr.bf16.mxu1 %v567_v34  ;;  %v661_v33 = vld [vmem:[#allocation2 + $0x648] sm:$0xff]  ;;  %v663_v34 = vld [vmem:[#allocation2 + $0x658] sm:$0xff] }
 0x178   :  { %1042 = vmatpush1.bf16.msra.mxu0 %v564_v35  ;;  %1206 = vmatpush1.bf16.msra.mxu1 %v566_v37  ;;  %v660_v35 = vld [vmem:[#allocation2 + $0x640] sm:$0xff]  ;;  %v662_v37 = vld [vmem:[#allocation2 + $0x650] sm:$0xff] }
 0x179   :  { %1043 = vmatprep.subr.bf16.mxu0 %v573_v41  ;;  %1207 = vmatprep.subr.bf16.mxu1 %v575_v42  ;;  %v669_v41 = vld [vmem:[#allocation2 + $0x688] sm:$0xff]  ;;  %v671_v42 = vld [vmem:[#allocation2 + $0x698] sm:$0xff] }
 0x17c   :  { %1044 = vmatpush1.bf16.msra.mxu0 %v572_v43  ;;  %1208 = vmatpush1.bf16.msra.mxu1 %v574_v44  ;;  %v668_v43 = vld [vmem:[#allocation2 + $0x680] sm:$0xff]  ;;  %v670_v44 = vld [vmem:[#allocation2 + $0x690] sm:$0xff] }
 0x17d   :  { %1045 = vmatprep.subr.bf16.mxu0 %v581_v45  ;;  %1209 = vmatprep.subr.bf16.mxu1 %v583_v46  ;;  %v677_v45 = vld [vmem:[#allocation2 + $0x6c8] sm:$0xff]  ;;  %v679_v46 = vld [vmem:[#allocation2 + $0x6d8] sm:$0xff] }
 0x180   :  { %1046 = vmatpush1.bf16.msra.mxu0 %v580_v47  ;;  %1210 = vmatpush1.bf16.msra.mxu1 %v582_v48  ;;  %v676_v47 = vld [vmem:[#allocation2 + $0x6c0] sm:$0xff]  ;;  %v678_v48 = vld [vmem:[#allocation2 + $0x6d0] sm:$0xff] }
 0x181   :  { %1056 = vmatprep.subr.bf16.mxu0 %v589_v50  ;;  %1220 = vmatprep.subr.bf16.mxu1 %v591_v51  ;;  %v685_v50 = vld [vmem:[#allocation2 + $0x708] sm:$0xff]  ;;  %v687_v51 = vld [vmem:[#allocation2 + $0x718] sm:$0xff] }
 0x183   :  { %1048 = vmatmul.mubr.bf16.vlgmr.msra.gmra.mrb[8].mxu0 %v3688_v15  ;;  %1212 = vmatmul.mubr.bf16.vlgmr.msra.gmra.mrb[8].mxu1 %v3688_v15 }
 0x184   :  { %1057 = vmatpush1.bf16.msra.mxu0 %v588_v52  ;;  %1221 = vmatpush1.bf16.msra.mxu1 %v590_v53  ;;  %v684_v52 = vld [vmem:[#allocation2 + $0x700] sm:$0xff]  ;;  %v686_v53 = vld [vmem:[#allocation2 + $0x710] sm:$0xff] }
 0x185   :  { %1058 = vmatprep.subr.bf16.mxu0 %v597_v56  ;;  %1222 = vmatprep.subr.bf16.mxu1 %v599_v57  ;;  %v693_v56 = vld [vmem:[#allocation2 + $0x748] sm:$0xff]  ;;  %v695_v57 = vld [vmem:[#allocation2 + $0x758] sm:$0xff] }
 0x186   :  { %1088 = vmatprep.mubr.bf16.mxu0 %v3694_v20  ;;  %1252 = vmatprep.mubr.bf16.mxu1 %v3694_v20 }
 0x188   :  { %1059 = vmatpush1.bf16.msra.mxu0 %v596_v58  ;;  %1223 = vmatpush1.bf16.msra.mxu1 %v598_v60  ;;  %v692_v58 = vld [vmem:[#allocation2 + $0x740] sm:$0xff]  ;;  %v694_v60 = vld [vmem:[#allocation2 + $0x750] sm:$0xff] }
 0x189   :  { %1060 = vmatprep.subr.bf16.mxu0 %v605_v61  ;;  %1224 = vmatprep.subr.bf16.mxu1 %v607_v62  ;;  %v701_v61 = vld [vmem:[#allocation2 + $0x788] sm:$0xff]  ;;  %v703_v62 = vld [vmem:[#allocation2 + $0x798] sm:$0xff] }
 0x18c   :  { %1061 = vmatpush1.bf16.msra.mxu0 %v604_v63  ;;  %1225 = vmatpush1.bf16.msra.mxu1 %v606_v0  ;;  %v700_v63 = vld [vmem:[#allocation2 + $0x780] sm:$0xff]  ;;  %v702_v0 = vld [vmem:[#allocation2 + $0x790] sm:$0xff] }
 0x18d   :  { %1062 = vmatprep.subr.bf16.mxu0 %v613_v1  ;;  %1226 = vmatprep.subr.bf16.mxu1 %v615_v2  ;;  %v709_v1 = vld [vmem:[#allocation2 + $0x7c8] sm:$0xff]  ;;  %v711_v2 = vld [vmem:[#allocation2 + $0x7d8] sm:$0xff] }
 0x190   :  { %1063 = vmatpush1.bf16.msra.mxu0 %v612_v3  ;;  %1227 = vmatpush1.bf16.msra.mxu1 %v614_v4  ;;  %v708_v3 = vld [vmem:[#allocation2 + $0x7c0] sm:$0xff]  ;;  %v710_v4 = vld [vmem:[#allocation2 + $0x7d0] sm:$0xff] }
 0x191   :  { %1064 = vmatprep.subr.bf16.mxu0 %v621_v5  ;;  %1228 = vmatprep.subr.bf16.mxu1 %v623_v6  ;;  %v717_v5 = vld [vmem:[#allocation2 + $0x808] sm:$0xff]  ;;  %v719_v6 = vld [vmem:[#allocation2 + $0x818] sm:$0xff] }
 0x194   :  { %1065 = vmatpush1.bf16.msra.mxu0 %v620_v7  ;;  %1229 = vmatpush1.bf16.msra.mxu1 %v622_v8  ;;  %v716_v7 = vld [vmem:[#allocation2 + $0x800] sm:$0xff]  ;;  %v718_v8 = vld [vmem:[#allocation2 + $0x810] sm:$0xff] }
 0x195   :  { %1066 = vmatprep.subr.bf16.mxu0 %v629_v9  ;;  %1230 = vmatprep.subr.bf16.mxu1 %v631_v10  ;;  %v725_v9 = vld [vmem:[#allocation2 + $0x848] sm:$0xff]  ;;  %v727_v10 = vld [vmem:[#allocation2 + $0x858] sm:$0xff] }
 0x198   :  { %1067 = vmatpush1.bf16.msra.mxu0 %v628_v11  ;;  %1231 = vmatpush1.bf16.msra.mxu1 %v630_v12  ;;  %v724_v11 = vld [vmem:[#allocation2 + $0x840] sm:$0xff]  ;;  %v726_v12 = vld [vmem:[#allocation2 + $0x850] sm:$0xff] }
 0x199   :  { %1068 = vmatprep.subr.bf16.mxu0 %v637_v13  ;;  %1232 = vmatprep.subr.bf16.mxu1 %v639_v14  ;;  %v733_v13 = vld [vmem:[#allocation2 + $0x888] sm:$0xff]  ;;  %v735_v14 = vld [vmem:[#allocation2 + $0x898] sm:$0xff] }
 0x19c   :  { %1069 = vmatpush1.bf16.msra.mxu0 %v636_v16  ;;  %1233 = vmatpush1.bf16.msra.mxu1 %v638_v18  ;;  %v732_v16 = vld [vmem:[#allocation2 + $0x880] sm:$0xff]  ;;  %v734_v18 = vld [vmem:[#allocation2 + $0x890] sm:$0xff] }
 0x19d   :  { %1070 = vmatprep.subr.bf16.mxu0 %v645_v21  ;;  %1234 = vmatprep.subr.bf16.mxu1 %v647_v22  ;;  %v741_v21 = vld [vmem:[#allocation2 + $0x8c8] sm:$0xff]  ;;  %v743_v22 = vld [vmem:[#allocation2 + $0x8d8] sm:$0xff] }
 0x1a0   :  { %1071 = vmatpush1.bf16.msra.mxu0 %v644_v24  ;;  %1235 = vmatpush1.bf16.msra.mxu1 %v646_v26  ;;  %v740_v24 = vld [vmem:[#allocation2 + $0x8c0] sm:$0xff]  ;;  %v742_v26 = vld [vmem:[#allocation2 + $0x8d0] sm:$0xff] }
 0x1a1   :  { %1072 = vmatprep.subr.bf16.mxu0 %v653_v29  ;;  %1236 = vmatprep.subr.bf16.mxu1 %v655_v30  ;;  %v749_v29 = vld [vmem:[#allocation2 + $0x908] sm:$0xff]  ;;  %v751_v30 = vld [vmem:[#allocation2 + $0x918] sm:$0xff] }
 0x1a4   :  { %1073 = vmatpush1.bf16.msra.mxu0 %v652_v31  ;;  %1237 = vmatpush1.bf16.msra.mxu1 %v654_v32  ;;  %v748_v31 = vld [vmem:[#allocation2 + $0x900] sm:$0xff]  ;;  %v750_v32 = vld [vmem:[#allocation2 + $0x910] sm:$0xff] }
 0x1a5   :  { %1074 = vmatprep.subr.bf16.mxu0 %v661_v33  ;;  %1238 = vmatprep.subr.bf16.mxu1 %v663_v34  ;;  %v757_v33 = vld [vmem:[#allocation2 + $0x948] sm:$0xff]  ;;  %v759_v34 = vld [vmem:[#allocation2 + $0x958] sm:$0xff] }
 0x1a8   :  { %1075 = vmatpush1.bf16.msra.mxu0 %v660_v35  ;;  %1239 = vmatpush1.bf16.msra.mxu1 %v662_v37  ;;  %v756_v35 = vld [vmem:[#allocation2 + $0x940] sm:$0xff]  ;;  %v758_v37 = vld [vmem:[#allocation2 + $0x950] sm:$0xff] }
 0x1a9   :  { %1076 = vmatprep.subr.bf16.mxu0 %v669_v41  ;;  %1240 = vmatprep.subr.bf16.mxu1 %v671_v42  ;;  %v765_v41 = vld [vmem:[#allocation2 + $0x988] sm:$0xff]  ;;  %v767_v42 = vld [vmem:[#allocation2 + $0x998] sm:$0xff] }
 0x1ac   :  { %1077 = vmatpush1.bf16.msra.mxu0 %v668_v43  ;;  %1241 = vmatpush1.bf16.msra.mxu1 %v670_v44  ;;  %v764_v43 = vld [vmem:[#allocation2 + $0x980] sm:$0xff]  ;;  %v766_v44 = vld [vmem:[#allocation2 + $0x990] sm:$0xff] }
 0x1ad   :  { %1078 = vmatprep.subr.bf16.mxu0 %v677_v45  ;;  %1242 = vmatprep.subr.bf16.mxu1 %v679_v46  ;;  %v773_v45 = vld [vmem:[#allocation2 + $0x9c8] sm:$0xff]  ;;  %v775_v46 = vld [vmem:[#allocation2 + $0x9d8] sm:$0xff] }
 0x1b0   :  { %1079 = vmatpush1.bf16.msra.mxu0 %v676_v47  ;;  %1243 = vmatpush1.bf16.msra.mxu1 %v678_v48  ;;  %v772_v47 = vld [vmem:[#allocation2 + $0x9c0] sm:$0xff]  ;;  %v774_v48 = vld [vmem:[#allocation2 + $0x9d0] sm:$0xff] }
 0x1b1   :  { %1080 = vmatprep.subr.bf16.mxu0 %v685_v50  ;;  %1244 = vmatprep.subr.bf16.mxu1 %v687_v51  ;;  %v781_v50 = vld [vmem:[#allocation2 + $0xa08] sm:$0xff]  ;;  %v783_v51 = vld [vmem:[#allocation2 + $0xa18] sm:$0xff] }
 0x1b4   :  { %1081 = vmatpush1.bf16.msra.mxu0 %v684_v52  ;;  %1245 = vmatpush1.bf16.msra.mxu1 %v686_v53  ;;  %v780_v52 = vld [vmem:[#allocation2 + $0xa00] sm:$0xff]  ;;  %v782_v53 = vld [vmem:[#allocation2 + $0xa10] sm:$0xff] }
 0x1b5   :  { %1082 = vmatprep.subr.bf16.mxu0 %v693_v56  ;;  %1246 = vmatprep.subr.bf16.mxu1 %v695_v57  ;;  %v789_v56 = vld [vmem:[#allocation2 + $0xa48] sm:$0xff]  ;;  %v791_v57 = vld [vmem:[#allocation2 + $0xa58] sm:$0xff] }
 0x1b8   :  { %1083 = vmatpush1.bf16.msra.mxu0 %v692_v58  ;;  %1247 = vmatpush1.bf16.msra.mxu1 %v694_v60  ;;  %v788_v58 = vld [vmem:[#allocation2 + $0xa40] sm:$0xff]  ;;  %v790_v60 = vld [vmem:[#allocation2 + $0xa50] sm:$0xff] }
 0x1b9   :  { %1084 = vmatprep.subr.bf16.mxu0 %v701_v61  ;;  %1248 = vmatprep.subr.bf16.mxu1 %v703_v62  ;;  %v797_v61 = vld [vmem:[#allocation2 + $0xa88] sm:$0xff]  ;;  %v799_v62 = vld [vmem:[#allocation2 + $0xa98] sm:$0xff] }
 0x1bc   :  { %1085 = vmatpush1.bf16.msra.mxu0 %v700_v63  ;;  %1249 = vmatpush1.bf16.msra.mxu1 %v702_v0  ;;  %v796_v63 = vld [vmem:[#allocation2 + $0xa80] sm:$0xff]  ;;  %v798_v0 = vld [vmem:[#allocation2 + $0xa90] sm:$0xff] }
 0x1bd   :  { %1086 = vmatprep.subr.bf16.mxu0 %v709_v1  ;;  %1250 = vmatprep.subr.bf16.mxu1 %v711_v2  ;;  %v805_v1 = vld [vmem:[#allocation2 + $0xac8] sm:$0xff]  ;;  %v807_v2 = vld [vmem:[#allocation2 + $0xad8] sm:$0xff] }
 0x1c0   :  { %1087 = vmatpush1.bf16.msra.mxu0 %v708_v3  ;;  %1251 = vmatpush1.bf16.msra.mxu1 %v710_v4  ;;  %v804_v3 = vld [vmem:[#allocation2 + $0xac0] sm:$0xff]  ;;  %v806_v4 = vld [vmem:[#allocation2 + $0xad0] sm:$0xff] }
 0x1c1   :  { %1097 = vmatprep.subr.bf16.mxu0 %v717_v5  ;;  %1261 = vmatprep.subr.bf16.mxu1 %v719_v6  ;;  %v813_v5 = vld [vmem:[#allocation2 + $0xb08] sm:$0xff]  ;;  %v815_v6 = vld [vmem:[#allocation2 + $0xb18] sm:$0xff] }
 0x1c3   :  { %1089 = vmatmul.mubr.bf16.vlgmr.msra.gmra.mrb[8].mxu0 %v3690_v17  ;;  %1253 = vmatmul.mubr.bf16.vlgmr.msra.gmra.mrb[8].mxu1 %v3690_v17 }
 0x1c4   :  { %1098 = vmatpush1.bf16.msra.mxu0 %v716_v7  ;;  %1262 = vmatpush1.bf16.msra.mxu1 %v718_v8  ;;  %v812_v7 = vld [vmem:[#allocation2 + $0xb00] sm:$0xff]  ;;  %v814_v8 = vld [vmem:[#allocation2 + $0xb10] sm:$0xff] }
 0x1c5   :  { %1099 = vmatprep.subr.bf16.mxu0 %v725_v9  ;;  %1263 = vmatprep.subr.bf16.mxu1 %v727_v10  ;;  %v821_v9 = vld [vmem:[#allocation2 + $0xb48] sm:$0xff]  ;;  %v823_v10 = vld [vmem:[#allocation2 + $0xb58] sm:$0xff] }
 0x1c6   :  { %1129 = vmatprep.mubr.bf16.mxu0 %v3700_v27  ;;  %1293 = vmatprep.mubr.bf16.mxu1 %v3700_v27 }
 0x1c8   :  { %1100 = vmatpush1.bf16.msra.mxu0 %v724_v11  ;;  %1264 = vmatpush1.bf16.msra.mxu1 %v726_v12  ;;  %v820_v11 = vld [vmem:[#allocation2 + $0xb40] sm:$0xff]  ;;  %v822_v12 = vld [vmem:[#allocation2 + $0xb50] sm:$0xff] }
 0x1c9   :  { %1101 = vmatprep.subr.bf16.mxu0 %v733_v13  ;;  %1265 = vmatprep.subr.bf16.mxu1 %v735_v14  ;;  %v829_v13 = vld [vmem:[#allocation2 + $0xb88] sm:$0xff]  ;;  %v831_v14 = vld [vmem:[#allocation2 + $0xb98] sm:$0xff] }
 0x1cc   :  { %1102 = vmatpush1.bf16.msra.mxu0 %v732_v16  ;;  %1266 = vmatpush1.bf16.msra.mxu1 %v734_v18  ;;  %v828_v16 = vld [vmem:[#allocation2 + $0xb80] sm:$0xff]  ;;  %v830_v18 = vld [vmem:[#allocation2 + $0xb90] sm:$0xff] }
 0x1cd   :  { %1103 = vmatprep.subr.bf16.mxu0 %v741_v21  ;;  %1267 = vmatprep.subr.bf16.mxu1 %v743_v22  ;;  %v837_v21 = vld [vmem:[#allocation2 + $0xbc8] sm:$0xff]  ;;  %v839_v22 = vld [vmem:[#allocation2 + $0xbd8] sm:$0xff] }
 0x1d0   :  { %1104 = vmatpush1.bf16.msra.mxu0 %v740_v24  ;;  %1268 = vmatpush1.bf16.msra.mxu1 %v742_v26  ;;  %v836_v24 = vld [vmem:[#allocation2 + $0xbc0] sm:$0xff]  ;;  %v838_v26 = vld [vmem:[#allocation2 + $0xbd0] sm:$0xff] }
 0x1d1   :  { %1105 = vmatprep.subr.bf16.mxu0 %v749_v29  ;;  %1269 = vmatprep.subr.bf16.mxu1 %v751_v30  ;;  %v845_v29 = vld [vmem:[#allocation2 + $0xc08] sm:$0xff]  ;;  %v847_v30 = vld [vmem:[#allocation2 + $0xc18] sm:$0xff] }
 0x1d4   :  { %1106 = vmatpush1.bf16.msra.mxu0 %v748_v31  ;;  %1270 = vmatpush1.bf16.msra.mxu1 %v750_v32  ;;  %v844_v31 = vld [vmem:[#allocation2 + $0xc00] sm:$0xff]  ;;  %v846_v32 = vld [vmem:[#allocation2 + $0xc10] sm:$0xff] }
 0x1d5   :  { %1107 = vmatprep.subr.bf16.mxu0 %v757_v33  ;;  %1271 = vmatprep.subr.bf16.mxu1 %v759_v34  ;;  %v853_v33 = vld [vmem:[#allocation2 + $0xc48] sm:$0xff]  ;;  %v855_v34 = vld [vmem:[#allocation2 + $0xc58] sm:$0xff] }
 0x1d8   :  { %1108 = vmatpush1.bf16.msra.mxu0 %v756_v35  ;;  %1272 = vmatpush1.bf16.msra.mxu1 %v758_v37  ;;  %v852_v35 = vld [vmem:[#allocation2 + $0xc40] sm:$0xff]  ;;  %v854_v37 = vld [vmem:[#allocation2 + $0xc50] sm:$0xff] }
 0x1d9   :  { %1109 = vmatprep.subr.bf16.mxu0 %v765_v41  ;;  %1273 = vmatprep.subr.bf16.mxu1 %v767_v42  ;;  %v861_v41 = vld [vmem:[#allocation2 + $0xc88] sm:$0xff]  ;;  %v863_v42 = vld [vmem:[#allocation2 + $0xc98] sm:$0xff] }
 0x1dc   :  { %1110 = vmatpush1.bf16.msra.mxu0 %v764_v43  ;;  %1274 = vmatpush1.bf16.msra.mxu1 %v766_v44  ;;  %v860_v43 = vld [vmem:[#allocation2 + $0xc80] sm:$0xff]  ;;  %v862_v44 = vld [vmem:[#allocation2 + $0xc90] sm:$0xff] }
 0x1dd   :  { %1111 = vmatprep.subr.bf16.mxu0 %v773_v45  ;;  %1275 = vmatprep.subr.bf16.mxu1 %v775_v46  ;;  %v869_v45 = vld [vmem:[#allocation2 + $0xcc8] sm:$0xff]  ;;  %v871_v46 = vld [vmem:[#allocation2 + $0xcd8] sm:$0xff] }
 0x1e0   :  { %1112 = vmatpush1.bf16.msra.mxu0 %v772_v47  ;;  %1276 = vmatpush1.bf16.msra.mxu1 %v774_v48  ;;  %v868_v47 = vld [vmem:[#allocation2 + $0xcc0] sm:$0xff]  ;;  %v870_v48 = vld [vmem:[#allocation2 + $0xcd0] sm:$0xff] }
 0x1e1   :  { %1113 = vmatprep.subr.bf16.mxu0 %v781_v50  ;;  %1277 = vmatprep.subr.bf16.mxu1 %v783_v51  ;;  %v877_v50 = vld [vmem:[#allocation2 + $0xd08] sm:$0xff]  ;;  %v879_v51 = vld [vmem:[#allocation2 + $0xd18] sm:$0xff] }
 0x1e4   :  { %1114 = vmatpush1.bf16.msra.mxu0 %v780_v52  ;;  %1278 = vmatpush1.bf16.msra.mxu1 %v782_v53  ;;  %v876_v52 = vld [vmem:[#allocation2 + $0xd00] sm:$0xff]  ;;  %v878_v53 = vld [vmem:[#allocation2 + $0xd10] sm:$0xff] }
 0x1e5   :  { %1115 = vmatprep.subr.bf16.mxu0 %v789_v56  ;;  %1279 = vmatprep.subr.bf16.mxu1 %v791_v57  ;;  %v885_v56 = vld [vmem:[#allocation2 + $0xd48] sm:$0xff]  ;;  %v887_v57 = vld [vmem:[#allocation2 + $0xd58] sm:$0xff] }
 0x1e8   :  { %1116 = vmatpush1.bf16.msra.mxu0 %v788_v58  ;;  %1280 = vmatpush1.bf16.msra.mxu1 %v790_v60  ;;  %v884_v58 = vld [vmem:[#allocation2 + $0xd40] sm:$0xff]  ;;  %v886_v60 = vld [vmem:[#allocation2 + $0xd50] sm:$0xff] }
 0x1e9   :  { %1117 = vmatprep.subr.bf16.mxu0 %v797_v61  ;;  %1281 = vmatprep.subr.bf16.mxu1 %v799_v62  ;;  %v893_v61 = vld [vmem:[#allocation2 + $0xd88] sm:$0xff]  ;;  %v895_v62 = vld [vmem:[#allocation2 + $0xd98] sm:$0xff] }
 0x1ec   :  { %1118 = vmatpush1.bf16.msra.mxu0 %v796_v63  ;;  %1282 = vmatpush1.bf16.msra.mxu1 %v798_v0  ;;  %v892_v63 = vld [vmem:[#allocation2 + $0xd80] sm:$0xff]  ;;  %v894_v0 = vld [vmem:[#allocation2 + $0xd90] sm:$0xff] }
 0x1ed   :  { %1119 = vmatprep.subr.bf16.mxu0 %v805_v1  ;;  %1283 = vmatprep.subr.bf16.mxu1 %v807_v2  ;;  %v901_v1 = vld [vmem:[#allocation2 + $0xdc8] sm:$0xff]  ;;  %v903_v2 = vld [vmem:[#allocation2 + $0xdd8] sm:$0xff] }
 0x1f0   :  { %1120 = vmatpush1.bf16.msra.mxu0 %v804_v3  ;;  %1284 = vmatpush1.bf16.msra.mxu1 %v806_v4  ;;  %v900_v3 = vld [vmem:[#allocation2 + $0xdc0] sm:$0xff]  ;;  %v902_v4 = vld [vmem:[#allocation2 + $0xdd0] sm:$0xff] }
 0x1f1   :  { %1121 = vmatprep.subr.bf16.mxu0 %v813_v5  ;;  %1285 = vmatprep.subr.bf16.mxu1 %v815_v6  ;;  %v909_v5 = vld [vmem:[#allocation2 + $0xe08] sm:$0xff]  ;;  %v911_v6 = vld [vmem:[#allocation2 + $0xe18] sm:$0xff] }
 0x1f4   :  { %1122 = vmatpush1.bf16.msra.mxu0 %v812_v7  ;;  %1286 = vmatpush1.bf16.msra.mxu1 %v814_v8  ;;  %v908_v7 = vld [vmem:[#allocation2 + $0xe00] sm:$0xff]  ;;  %v910_v8 = vld [vmem:[#allocation2 + $0xe10] sm:$0xff] }
 0x1f5   :  { %1123 = vmatprep.subr.bf16.mxu0 %v821_v9  ;;  %1287 = vmatprep.subr.bf16.mxu1 %v823_v10  ;;  %v917_v9 = vld [vmem:[#allocation2 + $0xe48] sm:$0xff]  ;;  %v919_v10 = vld [vmem:[#allocation2 + $0xe58] sm:$0xff] }
 0x1f8   :  { %1124 = vmatpush1.bf16.msra.mxu0 %v820_v11  ;;  %1288 = vmatpush1.bf16.msra.mxu1 %v822_v12  ;;  %v916_v11 = vld [vmem:[#allocation2 + $0xe40] sm:$0xff]  ;;  %v918_v12 = vld [vmem:[#allocation2 + $0xe50] sm:$0xff] }
 0x1f9   :  { %1125 = vmatprep.subr.bf16.mxu0 %v829_v13  ;;  %1289 = vmatprep.subr.bf16.mxu1 %v831_v14  ;;  %v925_v13 = vld [vmem:[#allocation2 + $0xe88] sm:$0xff]  ;;  %v927_v14 = vld [vmem:[#allocation2 + $0xe98] sm:$0xff] }
 0x1fc   :  { %1126 = vmatpush1.bf16.msra.mxu0 %v828_v16  ;;  %1290 = vmatpush1.bf16.msra.mxu1 %v830_v18  ;;  %v924_v16 = vld [vmem:[#allocation2 + $0xe80] sm:$0xff]  ;;  %v926_v18 = vld [vmem:[#allocation2 + $0xe90] sm:$0xff] }
 0x1fd   :  { %1127 = vmatprep.subr.bf16.mxu0 %v837_v21  ;;  %1291 = vmatprep.subr.bf16.mxu1 %v839_v22  ;;  %v933_v21 = vld [vmem:[#allocation2 + $0xec8] sm:$0xff]  ;;  %v935_v22 = vld [vmem:[#allocation2 + $0xed8] sm:$0xff] }
 0x200   :  { %1128 = vmatpush1.bf16.msra.mxu0 %v836_v24  ;;  %1292 = vmatpush1.bf16.msra.mxu1 %v838_v26  ;;  %v932_v24 = vld [vmem:[#allocation2 + $0xec0] sm:$0xff]  ;;  %v934_v26 = vld [vmem:[#allocation2 + $0xed0] sm:$0xff] }
 0x201   :  { %1138 = vmatprep.subr.bf16.mxu0 %v845_v29  ;;  %1302 = vmatprep.subr.bf16.mxu1 %v847_v30  ;;  %v941_v29 = vld [vmem:[#allocation2 + $0xf08] sm:$0xff]  ;;  %v943_v30 = vld [vmem:[#allocation2 + $0xf18] sm:$0xff] }
 0x203   :  { %1130 = vmatmul.mubr.bf16.vlgmr.msra.gmra.mrb[8].mxu0 %v3696_v23  ;;  %1294 = vmatmul.mubr.bf16.vlgmr.msra.gmra.mrb[8].mxu1 %v3696_v23 }
 0x204   :  { %1139 = vmatpush1.bf16.msra.mxu0 %v844_v31  ;;  %1303 = vmatpush1.bf16.msra.mxu1 %v846_v32  ;;  %v940_v31 = vld [vmem:[#allocation2 + $0xf00] sm:$0xff]  ;;  %v942_v32 = vld [vmem:[#allocation2 + $0xf10] sm:$0xff] }
 0x205   :  { %1140 = vmatprep.subr.bf16.mxu0 %v853_v33  ;;  %1304 = vmatprep.subr.bf16.mxu1 %v855_v34  ;;  %v949_v33 = vld [vmem:[#allocation2 + $0xf48] sm:$0xff]  ;;  %v951_v34 = vld [vmem:[#allocation2 + $0xf58] sm:$0xff] }
 0x206   :  { %1170 = vmatprep.mubr.bf16.mxu0 %v3702_v28  ;;  %1334 = vmatprep.mubr.bf16.mxu1 %v3702_v28 }
 0x208   :  { %1141 = vmatpush1.bf16.msra.mxu0 %v852_v35  ;;  %1305 = vmatpush1.bf16.msra.mxu1 %v854_v37  ;;  %v948_v35 = vld [vmem:[#allocation2 + $0xf40] sm:$0xff]  ;;  %v950_v37 = vld [vmem:[#allocation2 + $0xf50] sm:$0xff] }
 0x209   :  { %1142 = vmatprep.subr.bf16.mxu0 %v861_v41  ;;  %1306 = vmatprep.subr.bf16.mxu1 %v863_v42  ;;  %v957_v41 = vld [vmem:[#allocation2 + $0xf88] sm:$0xff]  ;;  %v959_v42 = vld [vmem:[#allocation2 + $0xf98] sm:$0xff] }
 0x20c   :  { %1143 = vmatpush1.bf16.msra.mxu0 %v860_v43  ;;  %1307 = vmatpush1.bf16.msra.mxu1 %v862_v44  ;;  %v956_v43 = vld [vmem:[#allocation2 + $0xf80] sm:$0xff]  ;;  %v958_v44 = vld [vmem:[#allocation2 + $0xf90] sm:$0xff] }
 0x20d   :  { %1144 = vmatprep.subr.bf16.mxu0 %v869_v45  ;;  %1308 = vmatprep.subr.bf16.mxu1 %v871_v46  ;;  %v965_v45 = vld [vmem:[#allocation2 + $0xfc8] sm:$0xff]  ;;  %v967_v46 = vld [vmem:[#allocation2 + $0xfd8] sm:$0xff] }
 0x210   :  { %1145 = vmatpush1.bf16.msra.mxu0 %v868_v47  ;;  %1309 = vmatpush1.bf16.msra.mxu1 %v870_v48  ;;  %v964_v47 = vld [vmem:[#allocation2 + $0xfc0] sm:$0xff]  ;;  %v966_v48 = vld [vmem:[#allocation2 + $0xfd0] sm:$0xff] }
 0x211   :  { %1146 = vmatprep.subr.bf16.mxu0 %v877_v50  ;;  %1310 = vmatprep.subr.bf16.mxu1 %v879_v51  ;;  %v465_v50 = vld [vmem:[#allocation2 + $0x28] sm:$0xff]  ;;  %v467_v51 = vld [vmem:[#allocation2 + $0x38] sm:$0xff] }
 0x214   :  { %1147 = vmatpush1.bf16.msra.mxu0 %v876_v52  ;;  %1311 = vmatpush1.bf16.msra.mxu1 %v878_v53  ;;  %v464_v52 = vld [vmem:[#allocation2 + $0x20] sm:$0xff]  ;;  %v466_v53 = vld [vmem:[#allocation2 + $0x30] sm:$0xff] }
 0x215   :  { %1148 = vmatprep.subr.bf16.mxu0 %v885_v56  ;;  %1312 = vmatprep.subr.bf16.mxu1 %v887_v57  ;;  %v473_v56 = vld [vmem:[#allocation2 + $0x68] sm:$0xff]  ;;  %v475_v57 = vld [vmem:[#allocation2 + $0x78] sm:$0xff] }
 0x218   :  { %1149 = vmatpush1.bf16.msra.mxu0 %v884_v58  ;;  %1313 = vmatpush1.bf16.msra.mxu1 %v886_v60  ;;  %v472_v58 = vld [vmem:[#allocation2 + $0x60] sm:$0xff]  ;;  %v474_v60 = vld [vmem:[#allocation2 + $0x70] sm:$0xff] }
 0x219   :  { %1150 = vmatprep.subr.bf16.mxu0 %v893_v61  ;;  %1314 = vmatprep.subr.bf16.mxu1 %v895_v62  ;;  %v481_v61 = vld [vmem:[#allocation2 + $0xa8] sm:$0xff]  ;;  %v483_v62 = vld [vmem:[#allocation2 + $0xb8] sm:$0xff] }
 0x21c   :  { %1151 = vmatpush1.bf16.msra.mxu0 %v892_v63  ;;  %1315 = vmatpush1.bf16.msra.mxu1 %v894_v0  ;;  %v480_v63 = vld [vmem:[#allocation2 + $0xa0] sm:$0xff]  ;;  %v482_v0 = vld [vmem:[#allocation2 + $0xb0] sm:$0xff] }
 0x21d   :  { %1152 = vmatprep.subr.bf16.mxu0 %v901_v1  ;;  %1316 = vmatprep.subr.bf16.mxu1 %v903_v2  ;;  %v489_v1 = vld [vmem:[#allocation2 + $0xe8] sm:$0xff]  ;;  %v491_v2 = vld [vmem:[#allocation2 + $0xf8] sm:$0xff] }
 0x220   :  { %1153 = vmatpush1.bf16.msra.mxu0 %v900_v3  ;;  %1317 = vmatpush1.bf16.msra.mxu1 %v902_v4  ;;  %v488_v3 = vld [vmem:[#allocation2 + $0xe0] sm:$0xff]  ;;  %v490_v4 = vld [vmem:[#allocation2 + $0xf0] sm:$0xff] }
 0x221   :  { %1154 = vmatprep.subr.bf16.mxu0 %v909_v5  ;;  %1318 = vmatprep.subr.bf16.mxu1 %v911_v6  ;;  %v497_v5 = vld [vmem:[#allocation2 + $0x128] sm:$0xff]  ;;  %v499_v6 = vld [vmem:[#allocation2 + $0x138] sm:$0xff] }
 0x224   :  { %1155 = vmatpush1.bf16.msra.mxu0 %v908_v7  ;;  %1319 = vmatpush1.bf16.msra.mxu1 %v910_v8  ;;  %v498_v7 = vld [vmem:[#allocation2 + $0x130] sm:$0xff]  ;;  %v505_v8 = vld [vmem:[#allocation2 + $0x168] sm:$0xff] }
 0x225   :  { %1156 = vmatprep.subr.bf16.mxu0 %v917_v9  ;;  %1320 = vmatprep.subr.bf16.mxu1 %v919_v10  ;;  %v507_v9 = vld [vmem:[#allocation2 + $0x178] sm:$0xff]  ;;  %v504_v10 = vld [vmem:[#allocation2 + $0x160] sm:$0xff] }
 0x228   :  { %1157 = vmatpush1.bf16.msra.mxu0 %v916_v11  ;;  %1321 = vmatpush1.bf16.msra.mxu1 %v918_v12  ;;  %v506_v11 = vld [vmem:[#allocation2 + $0x170] sm:$0xff]  ;;  %v513_v12 = vld [vmem:[#allocation2 + $0x1a8] sm:$0xff] }
 0x229   :  { %1158 = vmatprep.subr.bf16.mxu0 %v925_v13  ;;  %1322 = vmatprep.subr.bf16.mxu1 %v927_v14  ;;  %v515_v13 = vld [vmem:[#allocation2 + $0x1b8] sm:$0xff]  ;;  %v512_v14 = vld [vmem:[#allocation2 + $0x1a0] sm:$0xff] }
 0x22c   :  { %1159 = vmatpush1.bf16.msra.mxu0 %v924_v16  ;;  %1323 = vmatpush1.bf16.msra.mxu1 %v926_v18  ;;  %v514_v16 = vld [vmem:[#allocation2 + $0x1b0] sm:$0xff]  ;;  %v521_v18 = vld [vmem:[#allocation2 + $0x1e8] sm:$0xff] }
 0x22d   :  { %1160 = vmatprep.subr.bf16.mxu0 %v933_v21  ;;  %1324 = vmatprep.subr.bf16.mxu1 %v935_v22  ;;  %v523_v21 = vld [vmem:[#allocation2 + $0x1f8] sm:$0xff]  ;;  %v520_v22 = vld [vmem:[#allocation2 + $0x1e0] sm:$0xff] }
 0x230   :  { %1161 = vmatpush1.bf16.msra.mxu0 %v932_v24  ;;  %1325 = vmatpush1.bf16.msra.mxu1 %v934_v26  ;;  %v522_v24 = vld [vmem:[#allocation2 + $0x1f0] sm:$0xff]  ;;  %v529_v26 = vld [vmem:[#allocation2 + $0x228] sm:$0xff] }
 0x231   :  { %1162 = vmatprep.subr.bf16.mxu0 %v941_v29  ;;  %1326 = vmatprep.subr.bf16.mxu1 %v943_v30  ;;  %v531_v29 = vld [vmem:[#allocation2 + $0x238] sm:$0xff]  ;;  %v528_v30 = vld [vmem:[#allocation2 + $0x220] sm:$0xff] }
 0x234   :  { %1163 = vmatpush1.bf16.msra.mxu0 %v940_v31  ;;  %1327 = vmatpush1.bf16.msra.mxu1 %v942_v32  ;;  %v530_v31 = vld [vmem:[#allocation2 + $0x230] sm:$0xff]  ;;  %v537_v32 = vld [vmem:[#allocation2 + $0x268] sm:$0xff] }
 0x235   :  { %1164 = vmatprep.subr.bf16.mxu0 %v949_v33  ;;  %1328 = vmatprep.subr.bf16.mxu1 %v951_v34  ;;  %v539_v33 = vld [vmem:[#allocation2 + $0x278] sm:$0xff]  ;;  %v536_v34 = vld [vmem:[#allocation2 + $0x260] sm:$0xff] }
 0x238   :  { %1165 = vmatpush1.bf16.msra.mxu0 %v948_v35  ;;  %1329 = vmatpush1.bf16.msra.mxu1 %v950_v37  ;;  %v538_v35 = vld [vmem:[#allocation2 + $0x270] sm:$0xff]  ;;  %v545_v37 = vld [vmem:[#allocation2 + $0x2a8] sm:$0xff] }
 0x239   :  { %1166 = vmatprep.subr.bf16.mxu0 %v957_v41  ;;  %1330 = vmatprep.subr.bf16.mxu1 %v959_v42  ;;  %v547_v41 = vld [vmem:[#allocation2 + $0x2b8] sm:$0xff]  ;;  %v544_v42 = vld [vmem:[#allocation2 + $0x2a0] sm:$0xff] }
 0x23c   :  { %1167 = vmatpush1.bf16.msra.mxu0 %v956_v43  ;;  %1331 = vmatpush1.bf16.msra.mxu1 %v958_v44  ;;  %v546_v43 = vld [vmem:[#allocation2 + $0x2b0] sm:$0xff]  ;;  %v553_v44 = vld [vmem:[#allocation2 + $0x2e8] sm:$0xff] }
 0x23d   :  { %1168 = vmatprep.subr.bf16.mxu0 %v965_v45  ;;  %1332 = vmatprep.subr.bf16.mxu1 %v967_v46  ;;  %v555_v45 = vld [vmem:[#allocation2 + $0x2f8] sm:$0xff]  ;;  %v552_v46 = vld [vmem:[#allocation2 + $0x2e0] sm:$0xff] }
 0x240   :  { %1169 = vmatpush1.bf16.msra.mxu0 %v964_v47  ;;  %1333 = vmatpush1.bf16.msra.mxu1 %v966_v48  ;;  %v554_v47 = vld [vmem:[#allocation2 + $0x2f0] sm:$0xff]  ;;  %v561_v48 = vld [vmem:[#allocation2 + $0x328] sm:$0xff] }
 0x241   :  { %1343 = vmatprep.subr.bf16.mxu0 %v465_v50  ;;  %1507 = vmatprep.subr.bf16.mxu1 %v467_v51  ;;  %v563_v50 = vld [vmem:[#allocation2 + $0x338] sm:$0xff]  ;;  %v560_v51 = vld [vmem:[#allocation2 + $0x320] sm:$0xff] }
 0x243   :  { %1171 = vmatmul.mubr.bf16.vlgmr.msra.gmra.mrb[8].mxu0 %v3698_v25  ;;  %1335 = vmatmul.mubr.bf16.vlgmr.msra.gmra.mrb[8].mxu1 %v3698_v25 }
 0x244   :  { %1344 = vmatpush1.bf16.msra.mxu0 %v464_v52  ;;  %1508 = vmatpush1.bf16.msra.mxu1 %v466_v53  ;;  %v562_v52 = vld [vmem:[#allocation2 + $0x330] sm:$0xff]  ;;  %v569_v53 = vld [vmem:[#allocation2 + $0x368] sm:$0xff] }
 0x245   :  { %1345 = vmatprep.subr.bf16.mxu0 %v473_v56  ;;  %1509 = vmatprep.subr.bf16.mxu1 %v475_v57  ;;  %v571_v56 = vld [vmem:[#allocation2 + $0x378] sm:$0xff]  ;;  %v568_v57 = vld [vmem:[#allocation2 + $0x360] sm:$0xff] }
 0x246   :  { %1375 = vmatprep.mubr.bf16.mxu0 %v3692_v19  ;;  %1539 = vmatprep.mubr.bf16.mxu1 %v3692_v19  ;;  %v496_v19 = vld [vmem:[#allocation2 + $0x120] sm:$0xff] }
 0x248   :  { %1346 = vmatpush1.bf16.msra.mxu0 %v472_v58  ;;  %1510 = vmatpush1.bf16.msra.mxu1 %v474_v60  ;;  %v570_v58 = vld [vmem:[#allocation2 + $0x370] sm:$0xff]  ;;  %v577_v60 = vld [vmem:[#allocation2 + $0x3a8] sm:$0xff] }
 0x249   :  { %1347 = vmatprep.subr.bf16.mxu0 %v481_v61  ;;  %1511 = vmatprep.subr.bf16.mxu1 %v483_v62  ;;  %v579_v61 = vld [vmem:[#allocation2 + $0x3b8] sm:$0xff]  ;;  %v576_v62 = vld [vmem:[#allocation2 + $0x3a0] sm:$0xff] }
 0x24c   :  { %1348 = vmatpush1.bf16.msra.mxu0 %v480_v63  ;;  %1512 = vmatpush1.bf16.msra.mxu1 %v482_v0  ;;  %v578_v63 = vld [vmem:[#allocation2 + $0x3b0] sm:$0xff]  ;;  %v585_v0 = vld [vmem:[#allocation2 + $0x3e8] sm:$0xff] }
 0x24d   :  { %1349 = vmatprep.subr.bf16.mxu0 %v489_v1  ;;  %1513 = vmatprep.subr.bf16.mxu1 %v491_v2  ;;  %v587_v1 = vld [vmem:[#allocation2 + $0x3f8] sm:$0xff]  ;;  %v584_v2 = vld [vmem:[#allocation2 + $0x3e0] sm:$0xff] }
 0x250   :  { %1350 = vmatpush1.bf16.msra.mxu0 %v488_v3  ;;  %1514 = vmatpush1.bf16.msra.mxu1 %v490_v4  ;;  %v586_v3 = vld [vmem:[#allocation2 + $0x3f0] sm:$0xff]  ;;  %v593_v4 = vld [vmem:[#allocation2 + $0x428] sm:$0xff] }
 0x251   :  { %1351 = vmatprep.subr.bf16.mxu0 %v497_v5  ;;  %1515 = vmatprep.subr.bf16.mxu1 %v499_v6  ;;  %v595_v5 = vld [vmem:[#allocation2 + $0x438] sm:$0xff]  ;;  %v592_v6 = vld [vmem:[#allocation2 + $0x420] sm:$0xff] }
 0x254   :  { %1352 = vmatpush1.bf16.msra.mxu0 %v496_v19  ;;  %1516 = vmatpush1.bf16.msra.mxu1 %v498_v7  ;;  %v594_v19 = vld [vmem:[#allocation2 + $0x430] sm:$0xff]  ;;  %v601_v7 = vld [vmem:[#allocation2 + $0x468] sm:$0xff] }
 0x255   :  { %1353 = vmatprep.subr.bf16.mxu0 %v505_v8  ;;  %1517 = vmatprep.subr.bf16.mxu1 %v507_v9  ;;  %v603_v8 = vld [vmem:[#allocation2 + $0x478] sm:$0xff]  ;;  %v600_v9 = vld [vmem:[#allocation2 + $0x460] sm:$0xff] }
 0x258   :  { %1354 = vmatpush1.bf16.msra.mxu0 %v504_v10  ;;  %1518 = vmatpush1.bf16.msra.mxu1 %v506_v11  ;;  %v602_v10 = vld [vmem:[#allocation2 + $0x470] sm:$0xff]  ;;  %v609_v11 = vld [vmem:[#allocation2 + $0x4a8] sm:$0xff] }
 0x259   :  { %1355 = vmatprep.subr.bf16.mxu0 %v513_v12  ;;  %1519 = vmatprep.subr.bf16.mxu1 %v515_v13  ;;  %v611_v12 = vld [vmem:[#allocation2 + $0x4b8] sm:$0xff]  ;;  %v608_v13 = vld [vmem:[#allocation2 + $0x4a0] sm:$0xff] }
 0x25c   :  { %1356 = vmatpush1.bf16.msra.mxu0 %v512_v14  ;;  %1520 = vmatpush1.bf16.msra.mxu1 %v514_v16  ;;  %v610_v14 = vld [vmem:[#allocation2 + $0x4b0] sm:$0xff]  ;;  %v617_v16 = vld [vmem:[#allocation2 + $0x4e8] sm:$0xff] }
 0x25d   :  { %1357 = vmatprep.subr.bf16.mxu0 %v521_v18  ;;  %1521 = vmatprep.subr.bf16.mxu1 %v523_v21  ;;  %v616_v18 = vld [vmem:[#allocation2 + $0x4e0] sm:$0xff]  ;;  %v618_v21 = vld [vmem:[#allocation2 + $0x4f0] sm:$0xff] }
 0x260   :  { %1358 = vmatpush1.bf16.msra.mxu0 %v520_v22  ;;  %1522 = vmatpush1.bf16.msra.mxu1 %v522_v24  ;;  %v625_v22 = vld [vmem:[#allocation2 + $0x528] sm:$0xff]  ;;  %v627_v24 = vld [vmem:[#allocation2 + $0x538] sm:$0xff] }
 0x261   :  { %1359 = vmatprep.subr.bf16.mxu0 %v529_v26  ;;  %1523 = vmatprep.subr.bf16.mxu1 %v531_v29  ;;  %v626_v26 = vld [vmem:[#allocation2 + $0x530] sm:$0xff]  ;;  %v633_v29 = vld [vmem:[#allocation2 + $0x568] sm:$0xff] }
 0x264   :  { %1360 = vmatpush1.bf16.msra.mxu0 %v528_v30  ;;  %1524 = vmatpush1.bf16.msra.mxu1 %v530_v31  ;;  %v635_v30 = vld [vmem:[#allocation2 + $0x578] sm:$0xff]  ;;  %v632_v31 = vld [vmem:[#allocation2 + $0x560] sm:$0xff] }
 0x265   :  { %1361 = vmatprep.subr.bf16.mxu0 %v537_v32  ;;  %1525 = vmatprep.subr.bf16.mxu1 %v539_v33  ;;  %v634_v32 = vld [vmem:[#allocation2 + $0x570] sm:$0xff]  ;;  %v641_v33 = vld [vmem:[#allocation2 + $0x5a8] sm:$0xff] }
 0x268   :  { %1362 = vmatpush1.bf16.msra.mxu0 %v536_v34  ;;  %1526 = vmatpush1.bf16.msra.mxu1 %v538_v35  ;;  %v643_v34 = vld [vmem:[#allocation2 + $0x5b8] sm:$0xff]  ;;  %v640_v35 = vld [vmem:[#allocation2 + $0x5a0] sm:$0xff] }
 0x269   :  { %1363 = vmatprep.subr.bf16.mxu0 %v545_v37  ;;  %1527 = vmatprep.subr.bf16.mxu1 %v547_v41  ;;  %v642_v37 = vld [vmem:[#allocation2 + $0x5b0] sm:$0xff]  ;;  %v649_v41 = vld [vmem:[#allocation2 + $0x5e8] sm:$0xff] }
 0x26c   :  { %1364 = vmatpush1.bf16.msra.mxu0 %v544_v42  ;;  %1528 = vmatpush1.bf16.msra.mxu1 %v546_v43  ;;  %v651_v42 = vld [vmem:[#allocation2 + $0x5f8] sm:$0xff]  ;;  %v648_v43 = vld [vmem:[#allocation2 + $0x5e0] sm:$0xff] }
 0x26d   :  { %1365 = vmatprep.subr.bf16.mxu0 %v553_v44  ;;  %1529 = vmatprep.subr.bf16.mxu1 %v555_v45  ;;  %v650_v44 = vld [vmem:[#allocation2 + $0x5f0] sm:$0xff]  ;;  %v657_v45 = vld [vmem:[#allocation2 + $0x628] sm:$0xff] }
 0x270   :  { %1366 = vmatpush1.bf16.msra.mxu0 %v552_v46  ;;  %1530 = vmatpush1.bf16.msra.mxu1 %v554_v47  ;;  %v659_v46 = vld [vmem:[#allocation2 + $0x638] sm:$0xff]  ;;  %v656_v47 = vld [vmem:[#allocation2 + $0x620] sm:$0xff] }
 0x271   :  { %1367 = vmatprep.subr.bf16.mxu0 %v561_v48  ;;  %1531 = vmatprep.subr.bf16.mxu1 %v563_v50  ;;  %v658_v48 = vld [vmem:[#allocation2 + $0x630] sm:$0xff]  ;;  %v665_v50 = vld [vmem:[#allocation2 + $0x668] sm:$0xff] }
 0x274   :  { %1368 = vmatpush1.bf16.msra.mxu0 %v560_v51  ;;  %1532 = vmatpush1.bf16.msra.mxu1 %v562_v52  ;;  %v667_v51 = vld [vmem:[#allocation2 + $0x678] sm:$0xff]  ;;  %v664_v52 = vld [vmem:[#allocation2 + $0x660] sm:$0xff] }
 0x275   :  { %1369 = vmatprep.subr.bf16.mxu0 %v569_v53  ;;  %1533 = vmatprep.subr.bf16.mxu1 %v571_v56  ;;  %v666_v53 = vld [vmem:[#allocation2 + $0x670] sm:$0xff]  ;;  %v673_v56 = vld [vmem:[#allocation2 + $0x6a8] sm:$0xff] }
 0x278   :  { %1370 = vmatpush1.bf16.msra.mxu0 %v568_v57  ;;  %1534 = vmatpush1.bf16.msra.mxu1 %v570_v58  ;;  %v675_v57 = vld [vmem:[#allocation2 + $0x6b8] sm:$0xff]  ;;  %v672_v58 = vld [vmem:[#allocation2 + $0x6a0] sm:$0xff] }
 0x279   :  { %1371 = vmatprep.subr.bf16.mxu0 %v577_v60  ;;  %1535 = vmatprep.subr.bf16.mxu1 %v579_v61  ;;  %v674_v60 = vld [vmem:[#allocation2 + $0x6b0] sm:$0xff]  ;;  %v681_v61 = vld [vmem:[#allocation2 + $0x6e8] sm:$0xff] }
 0x27c   :  { %1372 = vmatpush1.bf16.msra.mxu0 %v576_v62  ;;  %1536 = vmatpush1.bf16.msra.mxu1 %v578_v63  ;;  %v683_v62 = vld [vmem:[#allocation2 + $0x6f8] sm:$0xff]  ;;  %v680_v63 = vld [vmem:[#allocation2 + $0x6e0] sm:$0xff] }
 0x27d   :  { %1373 = vmatprep.subr.bf16.mxu0 %v585_v0  ;;  %1537 = vmatprep.subr.bf16.mxu1 %v587_v1  ;;  %v682_v0 = vld [vmem:[#allocation2 + $0x6f0] sm:$0xff]  ;;  %v689_v1 = vld [vmem:[#allocation2 + $0x728] sm:$0xff] }
 0x280   :  { %1374 = vmatpush1.bf16.msra.mxu0 %v584_v2  ;;  %1538 = vmatpush1.bf16.msra.mxu1 %v586_v3  ;;  %v691_v2 = vld [vmem:[#allocation2 + $0x738] sm:$0xff]  ;;  %v688_v3 = vld [vmem:[#allocation2 + $0x720] sm:$0xff] }
 0x281   :  { %1384 = vmatprep.subr.bf16.mxu0 %v593_v4  ;;  %1548 = vmatprep.subr.bf16.mxu1 %v595_v5  ;;  %v690_v4 = vld [vmem:[#allocation2 + $0x730] sm:$0xff]  ;;  %v697_v5 = vld [vmem:[#allocation2 + $0x768] sm:$0xff] }
 0x283   :  { %1376 = vmatmul.mubr.bf16.vlgmr.msra.gmra.mrb[12].mxu0 %v3688_v15  ;;  %1540 = vmatmul.mubr.bf16.vlgmr.msra.gmra.mrb[12].mxu1 %v3688_v15  ;;  %v619_v15 = vld [vmem:[#allocation2 + $0x4f8] sm:$0xff] }
 0x284   :  { %1385 = vmatpush1.bf16.msra.mxu0 %v592_v6  ;;  %1549 = vmatpush1.bf16.msra.mxu1 %v594_v19  ;;  %v699_v6 = vld [vmem:[#allocation2 + $0x778] sm:$0xff]  ;;  %v696_v19 = vld [vmem:[#allocation2 + $0x760] sm:$0xff] }
 0x285   :  { %1386 = vmatprep.subr.bf16.mxu0 %v601_v7  ;;  %1550 = vmatprep.subr.bf16.mxu1 %v603_v8  ;;  %v698_v7 = vld [vmem:[#allocation2 + $0x770] sm:$0xff]  ;;  %v705_v8 = vld [vmem:[#allocation2 + $0x7a8] sm:$0xff] }
 0x286   :  { %1416 = vmatprep.mubr.bf16.mxu0 %v3694_v20  ;;  %1580 = vmatprep.mubr.bf16.mxu1 %v3694_v20  ;;  %v624_v20 = vld [vmem:[#allocation2 + $0x520] sm:$0xff] }
 0x288   :  { %1387 = vmatpush1.bf16.msra.mxu0 %v600_v9  ;;  %1551 = vmatpush1.bf16.msra.mxu1 %v602_v10  ;;  %v707_v9 = vld [vmem:[#allocation2 + $0x7b8] sm:$0xff]  ;;  %v704_v10 = vld [vmem:[#allocation2 + $0x7a0] sm:$0xff] }
 0x289   :  { %1388 = vmatprep.subr.bf16.mxu0 %v609_v11  ;;  %1552 = vmatprep.subr.bf16.mxu1 %v611_v12  ;;  %v706_v11 = vld [vmem:[#allocation2 + $0x7b0] sm:$0xff]  ;;  %v713_v12 = vld [vmem:[#allocation2 + $0x7e8] sm:$0xff] }
 0x28c   :  { %1389 = vmatpush1.bf16.msra.mxu0 %v608_v13  ;;  %1553 = vmatpush1.bf16.msra.mxu1 %v610_v14  ;;  %v715_v13 = vld [vmem:[#allocation2 + $0x7f8] sm:$0xff]  ;;  %v712_v14 = vld [vmem:[#allocation2 + $0x7e0] sm:$0xff] }
 0x28d   :  { %1390 = vmatprep.subr.bf16.mxu0 %v617_v16  ;;  %1554 = vmatprep.subr.bf16.mxu1 %v619_v15  ;;  %v714_v16 = vld [vmem:[#allocation2 + $0x7f0] sm:$0xff]  ;;  %v721_v15 = vld [vmem:[#allocation2 + $0x828] sm:$0xff] }
 0x290   :  { %1391 = vmatpush1.bf16.msra.mxu0 %v616_v18  ;;  %1555 = vmatpush1.bf16.msra.mxu1 %v618_v21  ;;  %v723_v18 = vld [vmem:[#allocation2 + $0x838] sm:$0xff]  ;;  %v720_v21 = vld [vmem:[#allocation2 + $0x820] sm:$0xff] }
 0x291   :  { %1392 = vmatprep.subr.bf16.mxu0 %v625_v22  ;;  %1556 = vmatprep.subr.bf16.mxu1 %v627_v24  ;;  %v722_v22 = vld [vmem:[#allocation2 + $0x830] sm:$0xff]  ;;  %v729_v24 = vld [vmem:[#allocation2 + $0x868] sm:$0xff] }
 0x294   :  { %1393 = vmatpush1.bf16.msra.mxu0 %v624_v20  ;;  %1557 = vmatpush1.bf16.msra.mxu1 %v626_v26  ;;  %v731_v20 = vld [vmem:[#allocation2 + $0x878] sm:$0xff]  ;;  %v728_v26 = vld [vmem:[#allocation2 + $0x860] sm:$0xff] }
 0x295   :  { %1394 = vmatprep.subr.bf16.mxu0 %v633_v29  ;;  %1558 = vmatprep.subr.bf16.mxu1 %v635_v30  ;;  %v730_v29 = vld [vmem:[#allocation2 + $0x870] sm:$0xff]  ;;  %v737_v30 = vld [vmem:[#allocation2 + $0x8a8] sm:$0xff] }
 0x298   :  { %1395 = vmatpush1.bf16.msra.mxu0 %v632_v31  ;;  %1559 = vmatpush1.bf16.msra.mxu1 %v634_v32  ;;  %v739_v31 = vld [vmem:[#allocation2 + $0x8b8] sm:$0xff]  ;;  %v736_v32 = vld [vmem:[#allocation2 + $0x8a0] sm:$0xff] }
 0x299   :  { %1396 = vmatprep.subr.bf16.mxu0 %v641_v33  ;;  %1560 = vmatprep.subr.bf16.mxu1 %v643_v34  ;;  %v738_v33 = vld [vmem:[#allocation2 + $0x8b0] sm:$0xff]  ;;  %v745_v34 = vld [vmem:[#allocation2 + $0x8e8] sm:$0xff] }
 0x29c   :  { %1397 = vmatpush1.bf16.msra.mxu0 %v640_v35  ;;  %1561 = vmatpush1.bf16.msra.mxu1 %v642_v37  ;;  %v744_v35 = vld [vmem:[#allocation2 + $0x8e0] sm:$0xff]  ;;  %v746_v37 = vld [vmem:[#allocation2 + $0x8f0] sm:$0xff] }
 0x29d   :  { %1398 = vmatprep.subr.bf16.mxu0 %v649_v41  ;;  %1562 = vmatprep.subr.bf16.mxu1 %v651_v42  ;;  %v753_v41 = vld [vmem:[#allocation2 + $0x928] sm:$0xff]  ;;  %v755_v42 = vld [vmem:[#allocation2 + $0x938] sm:$0xff] }
 0x2a0   :  { %1399 = vmatpush1.bf16.msra.mxu0 %v648_v43  ;;  %1563 = vmatpush1.bf16.msra.mxu1 %v650_v44  ;;  %v754_v43 = vld [vmem:[#allocation2 + $0x930] sm:$0xff]  ;;  %v761_v44 = vld [vmem:[#allocation2 + $0x968] sm:$0xff] }
 0x2a1   :  { %1400 = vmatprep.subr.bf16.mxu0 %v657_v45  ;;  %1564 = vmatprep.subr.bf16.mxu1 %v659_v46  ;;  %v763_v45 = vld [vmem:[#allocation2 + $0x978] sm:$0xff]  ;;  %v760_v46 = vld [vmem:[#allocation2 + $0x960] sm:$0xff] }
 0x2a4   :  { %1401 = vmatpush1.bf16.msra.mxu0 %v656_v47  ;;  %1565 = vmatpush1.bf16.msra.mxu1 %v658_v48  ;;  %v762_v47 = vld [vmem:[#allocation2 + $0x970] sm:$0xff]  ;;  %v769_v48 = vld [vmem:[#allocation2 + $0x9a8] sm:$0xff] }
 0x2a5   :  { %1402 = vmatprep.subr.bf16.mxu0 %v665_v50  ;;  %1566 = vmatprep.subr.bf16.mxu1 %v667_v51  ;;  %v771_v50 = vld [vmem:[#allocation2 + $0x9b8] sm:$0xff]  ;;  %v768_v51 = vld [vmem:[#allocation2 + $0x9a0] sm:$0xff] }
 0x2a8   :  { %1403 = vmatpush1.bf16.msra.mxu0 %v664_v52  ;;  %1567 = vmatpush1.bf16.msra.mxu1 %v666_v53  ;;  %v770_v52 = vld [vmem:[#allocation2 + $0x9b0] sm:$0xff]  ;;  %v777_v53 = vld [vmem:[#allocation2 + $0x9e8] sm:$0xff] }
 0x2a9   :  { %1404 = vmatprep.subr.bf16.mxu0 %v673_v56  ;;  %1568 = vmatprep.subr.bf16.mxu1 %v675_v57  ;;  %v779_v56 = vld [vmem:[#allocation2 + $0x9f8] sm:$0xff]  ;;  %v776_v57 = vld [vmem:[#allocation2 + $0x9e0] sm:$0xff] }
 0x2ac   :  { %1405 = vmatpush1.bf16.msra.mxu0 %v672_v58  ;;  %1569 = vmatpush1.bf16.msra.mxu1 %v674_v60  ;;  %v778_v58 = vld [vmem:[#allocation2 + $0x9f0] sm:$0xff]  ;;  %v785_v60 = vld [vmem:[#allocation2 + $0xa28] sm:$0xff] }
 0x2ad   :  { %1406 = vmatprep.subr.bf16.mxu0 %v681_v61  ;;  %1570 = vmatprep.subr.bf16.mxu1 %v683_v62  ;;  %v787_v61 = vld [vmem:[#allocation2 + $0xa38] sm:$0xff]  ;;  %v784_v62 = vld [vmem:[#allocation2 + $0xa20] sm:$0xff] }
 0x2b0   :  { %1407 = vmatpush1.bf16.msra.mxu0 %v680_v63  ;;  %1571 = vmatpush1.bf16.msra.mxu1 %v682_v0  ;;  %v786_v63 = vld [vmem:[#allocation2 + $0xa30] sm:$0xff]  ;;  %v793_v0 = vld [vmem:[#allocation2 + $0xa68] sm:$0xff] }
 0x2b1   :  { %1408 = vmatprep.subr.bf16.mxu0 %v689_v1  ;;  %1572 = vmatprep.subr.bf16.mxu1 %v691_v2  ;;  %v795_v1 = vld [vmem:[#allocation2 + $0xa78] sm:$0xff]  ;;  %v792_v2 = vld [vmem:[#allocation2 + $0xa60] sm:$0xff] }
 0x2b4   :  { %1409 = vmatpush1.bf16.msra.mxu0 %v688_v3  ;;  %1573 = vmatpush1.bf16.msra.mxu1 %v690_v4  ;;  %v794_v3 = vld [vmem:[#allocation2 + $0xa70] sm:$0xff]  ;;  %v801_v4 = vld [vmem:[#allocation2 + $0xaa8] sm:$0xff] }
 0x2b5   :  { %1410 = vmatprep.subr.bf16.mxu0 %v697_v5  ;;  %1574 = vmatprep.subr.bf16.mxu1 %v699_v6  ;;  %v803_v5 = vld [vmem:[#allocation2 + $0xab8] sm:$0xff]  ;;  %v800_v6 = vld [vmem:[#allocation2 + $0xaa0] sm:$0xff] }
 0x2b8   :  { %1411 = vmatpush1.bf16.msra.mxu0 %v696_v19  ;;  %1575 = vmatpush1.bf16.msra.mxu1 %v698_v7  ;;  %v802_v19 = vld [vmem:[#allocation2 + $0xab0] sm:$0xff]  ;;  %v809_v7 = vld [vmem:[#allocation2 + $0xae8] sm:$0xff] }
 0x2b9   :  { %1412 = vmatprep.subr.bf16.mxu0 %v705_v8  ;;  %1576 = vmatprep.subr.bf16.mxu1 %v707_v9  ;;  %v811_v8 = vld [vmem:[#allocation2 + $0xaf8] sm:$0xff]  ;;  %v808_v9 = vld [vmem:[#allocation2 + $0xae0] sm:$0xff] }
 0x2bc   :  { %1413 = vmatpush1.bf16.msra.mxu0 %v704_v10  ;;  %1577 = vmatpush1.bf16.msra.mxu1 %v706_v11  ;;  %v810_v10 = vld [vmem:[#allocation2 + $0xaf0] sm:$0xff]  ;;  %v817_v11 = vld [vmem:[#allocation2 + $0xb28] sm:$0xff] }
 0x2bd   :  { %1414 = vmatprep.subr.bf16.mxu0 %v713_v12  ;;  %1578 = vmatprep.subr.bf16.mxu1 %v715_v13  ;;  %v819_v12 = vld [vmem:[#allocation2 + $0xb38] sm:$0xff]  ;;  %v816_v13 = vld [vmem:[#allocation2 + $0xb20] sm:$0xff] }
 0x2c0   :  { %1415 = vmatpush1.bf16.msra.mxu0 %v712_v14  ;;  %1579 = vmatpush1.bf16.msra.mxu1 %v714_v16  ;;  %v818_v14 = vld [vmem:[#allocation2 + $0xb30] sm:$0xff]  ;;  %v825_v16 = vld [vmem:[#allocation2 + $0xb68] sm:$0xff] }
 0x2c1   :  { %1425 = vmatprep.subr.bf16.mxu0 %v721_v15  ;;  %1589 = vmatprep.subr.bf16.mxu1 %v723_v18  ;;  %v827_v15 = vld [vmem:[#allocation2 + $0xb78] sm:$0xff]  ;;  %v824_v18 = vld [vmem:[#allocation2 + $0xb60] sm:$0xff] }
 0x2c3   :  { %1417 = vmatmul.mubr.bf16.vlgmr.msra.gmra.mrb[12].mxu0 %v3690_v17  ;;  %1581 = vmatmul.mubr.bf16.vlgmr.msra.gmra.mrb[12].mxu1 %v3690_v17  ;;  %v747_v17 = vld [vmem:[#allocation2 + $0x8f8] sm:$0xff] }
 0x2c4   :  { %1426 = vmatpush1.bf16.msra.mxu0 %v720_v21  ;;  %1590 = vmatpush1.bf16.msra.mxu1 %v722_v22  ;;  %v826_v21 = vld [vmem:[#allocation2 + $0xb70] sm:$0xff]  ;;  %v833_v22 = vld [vmem:[#allocation2 + $0xba8] sm:$0xff] }
 0x2c5   :  { %1427 = vmatprep.subr.bf16.mxu0 %v729_v24  ;;  %1591 = vmatprep.subr.bf16.mxu1 %v731_v20  ;;  %v835_v24 = vld [vmem:[#allocation2 + $0xbb8] sm:$0xff]  ;;  %v832_v20 = vld [vmem:[#allocation2 + $0xba0] sm:$0xff] }
 0x2c6   :  { %1457 = vmatprep.mubr.bf16.mxu0 %v3700_v27  ;;  %1621 = vmatprep.mubr.bf16.mxu1 %v3700_v27  ;;  %v752_v27 = vld [vmem:[#allocation2 + $0x920] sm:$0xff] }
 0x2c8   :  { %1428 = vmatpush1.bf16.msra.mxu0 %v728_v26  ;;  %1592 = vmatpush1.bf16.msra.mxu1 %v730_v29  ;;  %v834_v26 = vld [vmem:[#allocation2 + $0xbb0] sm:$0xff]  ;;  %v841_v29 = vld [vmem:[#allocation2 + $0xbe8] sm:$0xff] }
 0x2c9   :  { %1429 = vmatprep.subr.bf16.mxu0 %v737_v30  ;;  %1593 = vmatprep.subr.bf16.mxu1 %v739_v31  ;;  %v843_v30 = vld [vmem:[#allocation2 + $0xbf8] sm:$0xff]  ;;  %v840_v31 = vld [vmem:[#allocation2 + $0xbe0] sm:$0xff] }
 0x2cc   :  { %1430 = vmatpush1.bf16.msra.mxu0 %v736_v32  ;;  %1594 = vmatpush1.bf16.msra.mxu1 %v738_v33  ;;  %v842_v32 = vld [vmem:[#allocation2 + $0xbf0] sm:$0xff]  ;;  %v849_v33 = vld [vmem:[#allocation2 + $0xc28] sm:$0xff] }
 0x2cd   :  { %1431 = vmatprep.subr.bf16.mxu0 %v745_v34  ;;  %1595 = vmatprep.subr.bf16.mxu1 %v747_v17  ;;  %v851_v34 = vld [vmem:[#allocation2 + $0xc38] sm:$0xff]  ;;  %v848_v17 = vld [vmem:[#allocation2 + $0xc20] sm:$0xff] }
 0x2d0   :  { %1432 = vmatpush1.bf16.msra.mxu0 %v744_v35  ;;  %1596 = vmatpush1.bf16.msra.mxu1 %v746_v37  ;;  %v850_v35 = vld [vmem:[#allocation2 + $0xc30] sm:$0xff]  ;;  %v857_v37 = vld [vmem:[#allocation2 + $0xc68] sm:$0xff] }
 0x2d1   :  { %1433 = vmatprep.subr.bf16.mxu0 %v753_v41  ;;  %1597 = vmatprep.subr.bf16.mxu1 %v755_v42  ;;  %v859_v41 = vld [vmem:[#allocation2 + $0xc78] sm:$0xff]  ;;  %v856_v42 = vld [vmem:[#allocation2 + $0xc60] sm:$0xff] }
 0x2d4   :  { %1434 = vmatpush1.bf16.msra.mxu0 %v752_v27  ;;  %1598 = vmatpush1.bf16.msra.mxu1 %v754_v43  ;;  %v858_v27 = vld [vmem:[#allocation2 + $0xc70] sm:$0xff]  ;;  %v865_v43 = vld [vmem:[#allocation2 + $0xca8] sm:$0xff] }
 0x2d5   :  { %1435 = vmatprep.subr.bf16.mxu0 %v761_v44  ;;  %1599 = vmatprep.subr.bf16.mxu1 %v763_v45  ;;  %v867_v44 = vld [vmem:[#allocation2 + $0xcb8] sm:$0xff]  ;;  %v864_v45 = vld [vmem:[#allocation2 + $0xca0] sm:$0xff] }
 0x2d8   :  { %1436 = vmatpush1.bf16.msra.mxu0 %v760_v46  ;;  %1600 = vmatpush1.bf16.msra.mxu1 %v762_v47  ;;  %v866_v46 = vld [vmem:[#allocation2 + $0xcb0] sm:$0xff]  ;;  %v873_v47 = vld [vmem:[#allocation2 + $0xce8] sm:$0xff] }
 0x2d9   :  { %1437 = vmatprep.subr.bf16.mxu0 %v769_v48  ;;  %1601 = vmatprep.subr.bf16.mxu1 %v771_v50  ;;  %v872_v48 = vld [vmem:[#allocation2 + $0xce0] sm:$0xff]  ;;  %v874_v50 = vld [vmem:[#allocation2 + $0xcf0] sm:$0xff] }
 0x2dc   :  { %1438 = vmatpush1.bf16.msra.mxu0 %v768_v51  ;;  %1602 = vmatpush1.bf16.msra.mxu1 %v770_v52  ;;  %v881_v51 = vld [vmem:[#allocation2 + $0xd28] sm:$0xff]  ;;  %v883_v52 = vld [vmem:[#allocation2 + $0xd38] sm:$0xff] }
 0x2dd   :  { %1439 = vmatprep.subr.bf16.mxu0 %v777_v53  ;;  %1603 = vmatprep.subr.bf16.mxu1 %v779_v56  ;;  %v3734_v53 = vld [vmem:[#allocation8 + $0x1] ss:$4 sm:$0xff] }
 0x2de   :  { %v882_v56 = vld [vmem:[#allocation2 + $0xd30] sm:$0xff] }
 0x2e0   :  { %1440 = vmatpush1.bf16.msra.mxu0 %v776_v57  ;;  %1604 = vmatpush1.bf16.msra.mxu1 %v778_v58  ;;  %v889_v57 = vld [vmem:[#allocation2 + $0xd68] sm:$0xff]  ;;  %v891_v58 = vld [vmem:[#allocation2 + $0xd78] sm:$0xff] }
 0x2e1   :  { %1441 = vmatprep.subr.bf16.mxu0 %v785_v60  ;;  %1605 = vmatprep.subr.bf16.mxu1 %v787_v61  ;;  %v978_v60 = vrot.slane %v3734_v53, %v3664_v36  ;;  %v986_v61 = vrot.slane %v3734_v53, %v3666_v38 }
 0x2e4   :  { %1442 = vmatpush1.bf16.msra.mxu0 %v784_v62  ;;  %1606 = vmatpush1.bf16.msra.mxu1 %v786_v63  ;;  %v982_v62 = vrot.slane %v3734_v53, %v3668_v39  ;;  %v990_v63 = vrot.slane %v3734_v53, %v3670_v40 }
 0x2e5   :  { %1443 = vmatprep.subr.bf16.mxu0 %v793_v0  ;;  %1607 = vmatprep.subr.bf16.mxu1 %v795_v1  ;;  %v888_v0 = vld [vmem:[#allocation2 + $0xd60] sm:$0xff]  ;;  %v890_v1 = vld [vmem:[#allocation2 + $0xd70] sm:$0xff] }
 0x2e8   :  { %1444 = vmatpush1.bf16.msra.mxu0 %v792_v2  ;;  %1608 = vmatpush1.bf16.msra.mxu1 %v794_v3 }
 0x2e9   :  { %1445 = vmatprep.subr.bf16.mxu0 %v801_v4  ;;  %1609 = vmatprep.subr.bf16.mxu1 %v803_v5  ;;  %v897_v4 = vld [vmem:[#allocation2 + $0xda8] sm:$0xff]  ;;  %v899_v5 = vld [vmem:[#allocation2 + $0xdb8] sm:$0xff] }
 0x2ec   :  { %1446 = vmatpush1.bf16.msra.mxu0 %v800_v6  ;;  %1610 = vmatpush1.bf16.msra.mxu1 %v802_v19 }
 0x2ed   :  { %1447 = vmatprep.subr.bf16.mxu0 %v809_v7  ;;  %1611 = vmatprep.subr.bf16.mxu1 %v811_v8 }
 0x2f0   :  { %1448 = vmatpush1.bf16.msra.mxu0 %v808_v9  ;;  %1612 = vmatpush1.bf16.msra.mxu1 %v810_v10 }
 0x2f1   :  { %1449 = vmatprep.subr.bf16.mxu0 %v817_v11  ;;  %1613 = vmatprep.subr.bf16.mxu1 %v819_v12 }
 0x2f4   :  { %1450 = vmatpush1.bf16.msra.mxu0 %v816_v13  ;;  %1614 = vmatpush1.bf16.msra.mxu1 %v818_v14 }
 0x2f5   :  { %1451 = vmatprep.subr.bf16.mxu0 %v825_v16  ;;  %1615 = vmatprep.subr.bf16.mxu1 %v827_v15  ;;  %v896_v16 = vld [vmem:[#allocation2 + $0xda0] sm:$0xff]  ;;  %v898_v15 = vld [vmem:[#allocation2 + $0xdb0] sm:$0xff] }
 0x2f8   :  { %1452 = vmatpush1.bf16.msra.mxu0 %v824_v18  ;;  %1616 = vmatpush1.bf16.msra.mxu1 %v826_v21  ;;  %v905_v18 = vld [vmem:[#allocation2 + $0xde8] sm:$0xff]  ;;  %v907_v21 = vld [vmem:[#allocation2 + $0xdf8] sm:$0xff] }
 0x2f9   :  { %1453 = vmatprep.subr.bf16.mxu0 %v833_v22  ;;  %1617 = vmatprep.subr.bf16.mxu1 %v835_v24  ;;  %v904_v22 = vld [vmem:[#allocation2 + $0xde0] sm:$0xff]  ;;  %v906_v24 = vld [vmem:[#allocation2 + $0xdf0] sm:$0xff] }
 0x2fc   :  { %1454 = vmatpush1.bf16.msra.mxu0 %v832_v20  ;;  %1618 = vmatpush1.bf16.msra.mxu1 %v834_v26  ;;  %v913_v20 = vld [vmem:[#allocation2 + $0xe28] sm:$0xff]  ;;  %v915_v26 = vld [vmem:[#allocation2 + $0xe38] sm:$0xff] }
 0x2fd   :  { %1455 = vmatprep.subr.bf16.mxu0 %v841_v29  ;;  %1619 = vmatprep.subr.bf16.mxu1 %v843_v30  ;;  %v912_v29 = vld [vmem:[#allocation2 + $0xe20] sm:$0xff]  ;;  %v914_v30 = vld [vmem:[#allocation2 + $0xe30] sm:$0xff] }
 0x300   :  { %1456 = vmatpush1.bf16.msra.mxu0 %v840_v31  ;;  %1620 = vmatpush1.bf16.msra.mxu1 %v842_v32  ;;  %v921_v31 = vld [vmem:[#allocation2 + $0xe68] sm:$0xff]  ;;  %v923_v32 = vld [vmem:[#allocation2 + $0xe78] sm:$0xff] }
 0x301   :  { %1466 = vmatprep.subr.bf16.mxu0 %v849_v33  ;;  %1630 = vmatprep.subr.bf16.mxu1 %v851_v34 }
 0x303   :  { %1458 = vmatmul.mubr.bf16.vlgmr.msra.gmra.mrb[12].mxu0 %v3696_v23  ;;  %1622 = vmatmul.mubr.bf16.vlgmr.msra.gmra.mrb[12].mxu1 %v3696_v23  ;;  %v875_v23 = vld [vmem:[#allocation2 + $0xcf8] sm:$0xff] }
 0x304   :  { %1467 = vmatpush1.bf16.msra.mxu0 %v848_v17  ;;  %1631 = vmatpush1.bf16.msra.mxu1 %v850_v35 }
 0x305   :  { %1468 = vmatprep.subr.bf16.mxu0 %v857_v37  ;;  %1632 = vmatprep.subr.bf16.mxu1 %v859_v41  ;;  %v920_v41 = vld [vmem:[#allocation2 + $0xe60] sm:$0xff] }
 0x306   :  { %1498 = vmatprep.mubr.bf16.mxu0 %v3702_v28  ;;  %1662 = vmatprep.mubr.bf16.mxu1 %v3702_v28  ;;  %v880_v28 = vld [vmem:[#allocation2 + $0xd20] sm:$0xff] }
 0x308   :  { %1469 = vmatpush1.bf16.msra.mxu0 %v856_v42  ;;  %1633 = vmatpush1.bf16.msra.mxu1 %v858_v27  ;;  %v922_v42 = vld [vmem:[#allocation2 + $0xe70] sm:$0xff] }
 0x309   :  { %1470 = vmatprep.subr.bf16.mxu0 %v865_v43  ;;  %1634 = vmatprep.subr.bf16.mxu1 %v867_v44  ;;  %v929_v44 = vld [vmem:[#allocation2 + $0xea8] sm:$0xff] }
 0x30c   :  { %1471 = vmatpush1.bf16.msra.mxu0 %v864_v45  ;;  %1635 = vmatpush1.bf16.msra.mxu1 %v866_v46  ;;  %v931_v45 = vld [vmem:[#allocation2 + $0xeb8] sm:$0xff] }
 0x30d   :  { %1472 = vmatprep.subr.bf16.mxu0 %v873_v47  ;;  %1636 = vmatprep.subr.bf16.mxu1 %v875_v23  ;;  %v928_v47 = vld [vmem:[#allocation2 + $0xea0] sm:$0xff]  ;;  %v930_v23 = vld [vmem:[#allocation2 + $0xeb0] sm:$0xff] }
 0x310   :  { %1473 = vmatpush1.bf16.msra.mxu0 %v872_v48  ;;  %1637 = vmatpush1.bf16.msra.mxu1 %v874_v50  ;;  %v937_v48 = vld [vmem:[#allocation2 + $0xee8] sm:$0xff]  ;;  %v939_v50 = vld [vmem:[#allocation2 + $0xef8] sm:$0xff] }
 0x311   :  { %1474 = vmatprep.subr.bf16.mxu0 %v881_v51  ;;  %1638 = vmatprep.subr.bf16.mxu1 %v883_v52  ;;  %v936_v51 = vld [vmem:[#allocation2 + $0xee0] sm:$0xff]  ;;  %v938_v52 = vld [vmem:[#allocation2 + $0xef0] sm:$0xff] }
 0x314   :  { %1475 = vmatpush1.bf16.msra.mxu0 %v880_v28  ;;  %1639 = vmatpush1.bf16.msra.mxu1 %v882_v56  ;;  %v945_v28 = vld [vmem:[#allocation2 + $0xf28] sm:$0xff]  ;;  %v947_v56 = vld [vmem:[#allocation2 + $0xf38] sm:$0xff] }
 0x315   :  { %1476 = vmatprep.subr.bf16.mxu0 %v889_v57  ;;  %1640 = vmatprep.subr.bf16.mxu1 %v891_v58  ;;  %v944_v57 = vld [vmem:[#allocation2 + $0xf20] sm:$0xff]  ;;  %v946_v58 = vld [vmem:[#allocation2 + $0xf30] sm:$0xff] }
 0x316   :  { %v1172_v2 = vpop.f32.mrb[8].mxu0  ;;  %v1336_v3 = vpop.f32.mrb[8].mxu1 }
 0x317   :  { %v3302_v6 = vadd.f32 %v1172_v2, %v978_v60  ;;  %v3304_v19 = vadd.f32 %v1336_v3, %v986_v61  ;;  %v1174_v7 = vpop.f32.mrb[9].mxu0  ;;  %v1338_v8 = vpop.f32.mrb[9].mxu1  ;;  %v953_v60 = vld [vmem:[#allocation2 + $0xf68] sm:$0xff]  ;;  %v955_v61 = vld [vmem:[#allocation2 + $0xf78] sm:$0xff]  ;;  %v960_v2 = vld [vmem:[#allocation2 + $0xfa0] sm:$0xff] }
 0x318   :  { %v3303_v9 = vadd.f32 %v1174_v7, %v982_v62  ;;  %v3305_v10 = vadd.f32 %v1338_v8, %v990_v63  ;;  %v1176_v11 = vpop.f32.mrb[10].mxu0  ;;  %v1340_v12 = vpop.f32.mrb[10].mxu1  ;;  %1477 = vmatpush1.bf16.msra.mxu0 %v888_v0  ;;  %1641 = vmatpush1.bf16.msra.mxu1 %v890_v1  ;;  %v952_v62 = vld [vmem:[#allocation2 + $0xf60] sm:$0xff]  ;;  %v954_v63 = vld [vmem:[#allocation2 + $0xf70] sm:$0xff]  ;;  %v961_v0 = vld [vmem:[#allocation2 + $0xfa8] sm:$0xff]  ;;  %v994_v7 = vrot.slane %v3734_v53, %v3676_v49 }
 0x319   :  { %3449 = vtanh.f32 %v3302_v6  ;;  %v1177_v13 = vpop.f32.mrb[11].mxu0  ;;  %v1341_v14 = vpop.f32.mrb[11].mxu1  ;;  %1478 = vmatprep.subr.bf16.mxu0 %v897_v4  ;;  %1642 = vmatprep.subr.bf16.mxu1 %v899_v5  ;;  %v963_v1 = vld [vmem:[#allocation2 + $0xfb8] sm:$0xff]  ;;  %v962_v3 = vld [vmem:[#allocation2 + $0xfb0] sm:$0xff]  ;;  %v969_v4 = vld [vmem:[#allocation2 + $0xfe8] sm:$0xff]  ;;  %v1002_v8 = vrot.slane %v3734_v53, %v3678_v54 }
 0x31a   :  { %3451 = vtanh.f32 %v3304_v19  ;;  %v971_v5 = vld [vmem:[#allocation2 + $0xff8] sm:$0xff]  ;;  %v968_v6 = vld [vmem:[#allocation2 + $0xfe0] sm:$0xff]  ;;  %v970_v19 = vld [vmem:[#allocation2 + $0xff0] sm:$0xff] }
 0x31b   :  { %3453 = vtanh.f32 %v3303_v9  ;;  %v998_v9 = vrot.slane %v3734_v53, %v3680_v55 }
 0x31c   :  { %3455 = vtanh.f32 %v3305_v10  ;;  %1479 = vmatpush1.bf16.msra.mxu0 %v896_v16  ;;  %1643 = vmatpush1.bf16.msra.mxu1 %v898_v15  ;;  %v1006_v10 = vrot.slane %v3734_v53, %v3682_v59 }
 0x31d   :  { %1480 = vmatprep.subr.bf16.mxu0 %v905_v18  ;;  %1644 = vmatprep.subr.bf16.mxu1 %v907_v21 }
 0x320   :  { %1481 = vmatpush1.bf16.msra.mxu0 %v904_v22  ;;  %1645 = vmatpush1.bf16.msra.mxu1 %v906_v24 }
 0x321   :  { %1482 = vmatprep.subr.bf16.mxu0 %v913_v20  ;;  %1646 = vmatprep.subr.bf16.mxu1 %v915_v26 }
 0x323   :  { %v3450_v33 = vpop.eup %3449 }
 0x324   :  { %v3452_v34 = vpop.eup %3451  ;;  %v3744_v17 = vpack.c.bf16 %v3450_v33, %v3450_v33  ;;  %1483 = vmatpush1.bf16.msra.mxu0 %v912_v29  ;;  %1647 = vmatpush1.bf16.msra.mxu1 %v914_v30 }
 0x325   :  { %v3454_v35 = vpop.eup %3453  ;;  %v3746_v37 = vpack.c.bf16 %v3452_v34, %v3452_v34  ;;  %1484 = vmatprep.subr.bf16.mxu0 %v921_v31  ;;  %1648 = vmatprep.subr.bf16.mxu1 %v923_v32 }
 0x326   :  { %v3456_v27 = vpop.eup %3455  ;;  %v3748_v43 = vpack.c.bf16 %v3454_v35, %v3454_v35 }
 0x327   :  { %v3750_v46 = vpack.c.bf16 %v3456_v27, %v3456_v27 }
 0x328   :  { %1485 = vmatpush1.bf16.msra.mxu0 %v920_v41  ;;  %1649 = vmatpush1.bf16.msra.mxu1 %v922_v42 }
 0x329   :  { %1486 = vmatprep.subr.bf16.mxu0 %v929_v44  ;;  %1650 = vmatprep.subr.bf16.mxu1 %v931_v45 }
 0x32c   :  { %1487 = vmatpush1.bf16.msra.mxu0 %v928_v47  ;;  %1651 = vmatpush1.bf16.msra.mxu1 %v930_v23 }
 0x32d   :  { %1488 = vmatprep.subr.bf16.mxu0 %v937_v48  ;;  %1652 = vmatprep.subr.bf16.mxu1 %v939_v50 }
 0x330   :  { %1489 = vmatpush1.bf16.msra.mxu0 %v936_v51  ;;  %1653 = vmatpush1.bf16.msra.mxu1 %v938_v52 }
 0x331   :  { %1490 = vmatprep.subr.bf16.mxu0 %v945_v28  ;;  %1654 = vmatprep.subr.bf16.mxu1 %v947_v56 }
 0x334   :  { %1491 = vmatpush1.bf16.msra.mxu0 %v944_v57  ;;  %1655 = vmatpush1.bf16.msra.mxu1 %v946_v58 }
 0x335   :  { %1492 = vmatprep.subr.bf16.mxu0 %v953_v60  ;;  %1656 = vmatprep.subr.bf16.mxu1 %v955_v61 }
 0x338   :  { %1493 = vmatpush1.bf16.msra.mxu0 %v952_v62  ;;  %1657 = vmatpush1.bf16.msra.mxu1 %v954_v63 }
 0x339   :  { %1494 = vmatprep.subr.bf16.mxu0 %v961_v0  ;;  %1658 = vmatprep.subr.bf16.mxu1 %v963_v1 }
 0x33c   :  { %1495 = vmatpush1.bf16.msra.mxu0 %v960_v2  ;;  %1659 = vmatpush1.bf16.msra.mxu1 %v962_v3 }
 0x33d   :  { %1496 = vmatprep.subr.bf16.mxu0 %v969_v4  ;;  %1660 = vmatprep.subr.bf16.mxu1 %v971_v5 }
 0x340   :  { %1497 = vmatpush1.bf16.msra.mxu0 %v968_v6  ;;  %1661 = vmatpush1.bf16.msra.mxu1 %v970_v19 }
 0x343   :  { %1499 = vmatmul.mubr.bf16.vlgmr.msra.gmra.mrb[12].mxu0 %v3698_v25  ;;  %1663 = vmatmul.mubr.bf16.vlgmr.msra.gmra.mrb[12].mxu1 %v3698_v25 }
 0x416   :  { %v1500_v11 = vpop.f32.mrb[12].mxu0  ;;  %v1664_v12 = vpop.f32.mrb[12].mxu1 }
 0x417   :  { %v3306_v13 = vadd.f32 %v1500_v11, %v994_v7  ;;  %v3308_v14 = vadd.f32 %v1664_v12, %v1002_v8  ;;  %v1502_v16 = vpop.f32.mrb[13].mxu0  ;;  %v1666_v15 = vpop.f32.mrb[13].mxu1 }
 0x418   :  { %v3307_v18 = vadd.f32 %v1502_v16, %v998_v9  ;;  %v3309_v25 = vadd.f32 %v1666_v15, %v1006_v10  ;;  %v1504_v21 = vpop.f32.mrb[14].mxu0  ;;  %v1668_v22 = vpop.f32.mrb[14].mxu1 }
 0x419   :  { %3457 = vtanh.f32 %v3306_v13  ;;  %v1505_v24 = vpop.f32.mrb[15].mxu0  ;;  %v1669_v20 = vpop.f32.mrb[15].mxu1 }
 0x41a   :  { %3459 = vtanh.f32 %v3308_v14 }
 0x41b   :  { %3461 = vtanh.f32 %v3307_v18 }
 0x41c   :  { %3463 = vtanh.f32 %v3309_v25 }
 0x423   :  { %v3458_v26 = vpop.eup %3457 }
 0x424   :  { %v3460_v29 = vpop.eup %3459  ;;  %v3762_v30 = vpack.c.bf16 %v3458_v26, %v3458_v26 }
 0x425   :  { %v3462_v53 = vpop.eup %3461  ;;  %v3764_v31 = vpack.c.bf16 %v3460_v29, %v3460_v29 }
 0x426   :  { %v3464_v32 = vpop.eup %3463  ;;  %v3766_v33 = vpack.c.bf16 %v3462_v53, %v3462_v53 }
 0x427   :  { %v3768_v34 = vpack.c.bf16 %v3464_v32, %v3464_v32 }
 0x428   :  { %3553 = dma.done.wait [#allocation5 + $0x1], 65536 }
 0x429   :  { %3554 = vsyncadd [#allocation5 + $0x1], 4294901760  ;;  %2282 = vmatprep.mubr.bf16.mxu0 %v3748_v43  ;;  %2446 = vmatprep.mubr.bf16.mxu1 %v3748_v43  ;;  %v1696_v35 = vld [vmem:[#allocation3 + $0x8] sm:$0xff]  ;;  %v1698_v41 = vld [vmem:[#allocation3 + $0x18] sm:$0xff] }
 0x42a   :  { %v1695_v42 = vld [vmem:[#allocation3] sm:$0xff]  ;;  %2250 = vmatprep.subr.bf16.mxu0 %v1696_v35  ;;  %2414 = vmatprep.subr.bf16.mxu1 %v1698_v41  ;;  %v1697_v27 = vld [vmem:[#allocation3 + $0x10] sm:$0xff]  ;;  %v1704_v44 = vld [vmem:[#allocation3 + $0x48] sm:$0xff] }
 0x42b   :  { %v1706_v45 = vld [vmem:[#allocation3 + $0x58] sm:$0xff]  ;;  %2251 = vmatpush1.bf16.msra.mxu0 %v1695_v42  ;;  %2415 = vmatpush1.bf16.msra.mxu1 %v1697_v27  ;;  %v1703_v47 = vld [vmem:[#allocation3 + $0x40] sm:$0xff]  ;;  %v1705_v23 = vld [vmem:[#allocation3 + $0x50] sm:$0xff] }
 0x42c   :  { %2252 = vmatprep.subr.bf16.mxu0 %v1704_v44  ;;  %2416 = vmatprep.subr.bf16.mxu1 %v1706_v45  ;;  %v1712_v48 = vld [vmem:[#allocation3 + $0x88] sm:$0xff]  ;;  %v1714_v50 = vld [vmem:[#allocation3 + $0x98] sm:$0xff]  ;;  %v1711_v51 = vld [vmem:[#allocation3 + $0x80] sm:$0xff] }
 0x42d   :  { %v1713_v52 = vld [vmem:[#allocation3 + $0x90] sm:$0xff]  ;;  %v1720_v28 = vld [vmem:[#allocation3 + $0xc8] sm:$0xff]  ;;  %v1722_v56 = vld [vmem:[#allocation3 + $0xd8] sm:$0xff] }
 0x42e   :  { %v1719_v57 = vld [vmem:[#allocation3 + $0xc0] sm:$0xff]  ;;  %v1721_v58 = vld [vmem:[#allocation3 + $0xd0] sm:$0xff]  ;;  %v1728_v60 = vld [vmem:[#allocation3 + $0x108] sm:$0xff] }
 0x42f   :  { %2253 = vmatpush1.bf16.msra.mxu0 %v1703_v47  ;;  %2417 = vmatpush1.bf16.msra.mxu1 %v1705_v23  ;;  %v1730_v61 = vld [vmem:[#allocation3 + $0x118] sm:$0xff]  ;;  %v1727_v62 = vld [vmem:[#allocation3 + $0x100] sm:$0xff]  ;;  %v1729_v63 = vld [vmem:[#allocation3 + $0x110] sm:$0xff] }
 0x430   :  { %2254 = vmatprep.subr.bf16.mxu0 %v1712_v48  ;;  %2418 = vmatprep.subr.bf16.mxu1 %v1714_v50  ;;  %v1736_v0 = vld [vmem:[#allocation3 + $0x148] sm:$0xff]  ;;  %v1738_v1 = vld [vmem:[#allocation3 + $0x158] sm:$0xff]  ;;  %v1735_v2 = vld [vmem:[#allocation3 + $0x140] sm:$0xff] }
 0x431   :  { %v1737_v3 = vld [vmem:[#allocation3 + $0x150] sm:$0xff]  ;;  %v1744_v4 = vld [vmem:[#allocation3 + $0x188] sm:$0xff]  ;;  %v1746_v5 = vld [vmem:[#allocation3 + $0x198] sm:$0xff] }
 0x432   :  { %v1743_v6 = vld [vmem:[#allocation3 + $0x180] sm:$0xff]  ;;  %v1745_v19 = vld [vmem:[#allocation3 + $0x190] sm:$0xff]  ;;  %v1752_v7 = vld [vmem:[#allocation3 + $0x1c8] sm:$0xff] }
 0x433   :  { %2255 = vmatpush1.bf16.msra.mxu0 %v1711_v51  ;;  %2419 = vmatpush1.bf16.msra.mxu1 %v1713_v52  ;;  %v1754_v8 = vld [vmem:[#allocation3 + $0x1d8] sm:$0xff]  ;;  %v1751_v9 = vld [vmem:[#allocation3 + $0x1c0] sm:$0xff]  ;;  %v1753_v10 = vld [vmem:[#allocation3 + $0x1d0] sm:$0xff] }
 0x434   :  { %2256 = vmatprep.subr.bf16.mxu0 %v1720_v28  ;;  %2420 = vmatprep.subr.bf16.mxu1 %v1722_v56  ;;  %v1760_v11 = vld [vmem:[#allocation3 + $0x208] sm:$0xff]  ;;  %v1762_v12 = vld [vmem:[#allocation3 + $0x218] sm:$0xff]  ;;  %v1759_v13 = vld [vmem:[#allocation3 + $0x200] sm:$0xff] }
 0x435   :  { %v1761_v14 = vld [vmem:[#allocation3 + $0x210] sm:$0xff]  ;;  %v1768_v16 = vld [vmem:[#allocation3 + $0x248] sm:$0xff]  ;;  %v1770_v15 = vld [vmem:[#allocation3 + $0x258] sm:$0xff] }
 0x436   :  { %v1767_v18 = vld [vmem:[#allocation3 + $0x240] sm:$0xff]  ;;  %v1769_v25 = vld [vmem:[#allocation3 + $0x250] sm:$0xff]  ;;  %v1776_v21 = vld [vmem:[#allocation3 + $0x288] sm:$0xff] }
 0x437   :  { %2257 = vmatpush1.bf16.msra.mxu0 %v1719_v57  ;;  %2421 = vmatpush1.bf16.msra.mxu1 %v1721_v58  ;;  %v1778_v22 = vld [vmem:[#allocation3 + $0x298] sm:$0xff]  ;;  %v1775_v24 = vld [vmem:[#allocation3 + $0x280] sm:$0xff]  ;;  %v1777_v20 = vld [vmem:[#allocation3 + $0x290] sm:$0xff] }
 0x438   :  { %2258 = vmatprep.subr.bf16.mxu0 %v1728_v60  ;;  %2422 = vmatprep.subr.bf16.mxu1 %v1730_v61  ;;  %v1784_v26 = vld [vmem:[#allocation3 + $0x2c8] sm:$0xff]  ;;  %v1786_v29 = vld [vmem:[#allocation3 + $0x2d8] sm:$0xff]  ;;  %v1783_v53 = vld [vmem:[#allocation3 + $0x2c0] sm:$0xff] }
 0x439   :  { %v1785_v32 = vld [vmem:[#allocation3 + $0x2d0] sm:$0xff]  ;;  %v1792_v35 = vld [vmem:[#allocation3 + $0x308] sm:$0xff]  ;;  %v1794_v41 = vld [vmem:[#allocation3 + $0x318] sm:$0xff] }
 0x43a   :  { %v1791_v42 = vld [vmem:[#allocation3 + $0x300] sm:$0xff]  ;;  %v1793_v27 = vld [vmem:[#allocation3 + $0x310] sm:$0xff]  ;;  %v1800_v44 = vld [vmem:[#allocation3 + $0x348] sm:$0xff] }
 0x43b   :  { %2259 = vmatpush1.bf16.msra.mxu0 %v1727_v62  ;;  %2423 = vmatpush1.bf16.msra.mxu1 %v1729_v63  ;;  %v1802_v45 = vld [vmem:[#allocation3 + $0x358] sm:$0xff]  ;;  %v1799_v47 = vld [vmem:[#allocation3 + $0x340] sm:$0xff]  ;;  %v1801_v23 = vld [vmem:[#allocation3 + $0x350] sm:$0xff] }
 0x43c   :  { %2260 = vmatprep.subr.bf16.mxu0 %v1736_v0  ;;  %2424 = vmatprep.subr.bf16.mxu1 %v1738_v1  ;;  %v1808_v48 = vld [vmem:[#allocation3 + $0x388] sm:$0xff]  ;;  %v1810_v50 = vld [vmem:[#allocation3 + $0x398] sm:$0xff]  ;;  %v1807_v51 = vld [vmem:[#allocation3 + $0x380] sm:$0xff] }
 0x43d   :  { %v1809_v52 = vld [vmem:[#allocation3 + $0x390] sm:$0xff]  ;;  %v1816_v28 = vld [vmem:[#allocation3 + $0x3c8] sm:$0xff]  ;;  %v1818_v56 = vld [vmem:[#allocation3 + $0x3d8] sm:$0xff] }
 0x43e   :  { %v1815_v57 = vld [vmem:[#allocation3 + $0x3c0] sm:$0xff]  ;;  %v1817_v58 = vld [vmem:[#allocation3 + $0x3d0] sm:$0xff]  ;;  %v1824_v60 = vld [vmem:[#allocation3 + $0x408] sm:$0xff] }
 0x43f   :  { %2261 = vmatpush1.bf16.msra.mxu0 %v1735_v2  ;;  %2425 = vmatpush1.bf16.msra.mxu1 %v1737_v3  ;;  %v1826_v61 = vld [vmem:[#allocation3 + $0x418] sm:$0xff]  ;;  %v1823_v62 = vld [vmem:[#allocation3 + $0x400] sm:$0xff]  ;;  %v1825_v63 = vld [vmem:[#allocation3 + $0x410] sm:$0xff] }
 0x440   :  { %2262 = vmatprep.subr.bf16.mxu0 %v1744_v4  ;;  %2426 = vmatprep.subr.bf16.mxu1 %v1746_v5  ;;  %v1832_v0 = vld [vmem:[#allocation3 + $0x448] sm:$0xff]  ;;  %v1834_v1 = vld [vmem:[#allocation3 + $0x458] sm:$0xff]  ;;  %v1831_v2 = vld [vmem:[#allocation3 + $0x440] sm:$0xff] }
 0x441   :  { %v1833_v3 = vld [vmem:[#allocation3 + $0x450] sm:$0xff]  ;;  %v1840_v4 = vld [vmem:[#allocation3 + $0x488] sm:$0xff]  ;;  %v1842_v5 = vld [vmem:[#allocation3 + $0x498] sm:$0xff] }
 0x443   :  { %2263 = vmatpush1.bf16.msra.mxu0 %v1743_v6  ;;  %2427 = vmatpush1.bf16.msra.mxu1 %v1745_v19  ;;  %v1839_v6 = vld [vmem:[#allocation3 + $0x480] sm:$0xff]  ;;  %v1841_v19 = vld [vmem:[#allocation3 + $0x490] sm:$0xff] }
 0x444   :  { %2264 = vmatprep.subr.bf16.mxu0 %v1752_v7  ;;  %2428 = vmatprep.subr.bf16.mxu1 %v1754_v8  ;;  %v1848_v7 = vld [vmem:[#allocation3 + $0x4c8] sm:$0xff]  ;;  %v1850_v8 = vld [vmem:[#allocation3 + $0x4d8] sm:$0xff] }
 0x447   :  { %2265 = vmatpush1.bf16.msra.mxu0 %v1751_v9  ;;  %2429 = vmatpush1.bf16.msra.mxu1 %v1753_v10  ;;  %v1847_v9 = vld [vmem:[#allocation3 + $0x4c0] sm:$0xff]  ;;  %v1849_v10 = vld [vmem:[#allocation3 + $0x4d0] sm:$0xff] }
 0x448   :  { %2266 = vmatprep.subr.bf16.mxu0 %v1760_v11  ;;  %2430 = vmatprep.subr.bf16.mxu1 %v1762_v12  ;;  %v1856_v11 = vld [vmem:[#allocation3 + $0x508] sm:$0xff]  ;;  %v1858_v12 = vld [vmem:[#allocation3 + $0x518] sm:$0xff] }
 0x44b   :  { %2267 = vmatpush1.bf16.msra.mxu0 %v1759_v13  ;;  %2431 = vmatpush1.bf16.msra.mxu1 %v1761_v14  ;;  %v1855_v13 = vld [vmem:[#allocation3 + $0x500] sm:$0xff]  ;;  %v1857_v14 = vld [vmem:[#allocation3 + $0x510] sm:$0xff] }
 0x44c   :  { %2268 = vmatprep.subr.bf16.mxu0 %v1768_v16  ;;  %2432 = vmatprep.subr.bf16.mxu1 %v1770_v15  ;;  %v1864_v16 = vld [vmem:[#allocation3 + $0x548] sm:$0xff]  ;;  %v1866_v15 = vld [vmem:[#allocation3 + $0x558] sm:$0xff] }
 0x44f   :  { %2269 = vmatpush1.bf16.msra.mxu0 %v1767_v18  ;;  %2433 = vmatpush1.bf16.msra.mxu1 %v1769_v25  ;;  %v1863_v18 = vld [vmem:[#allocation3 + $0x540] sm:$0xff]  ;;  %v1865_v25 = vld [vmem:[#allocation3 + $0x550] sm:$0xff] }
 0x450   :  { %2270 = vmatprep.subr.bf16.mxu0 %v1776_v21  ;;  %2434 = vmatprep.subr.bf16.mxu1 %v1778_v22  ;;  %v1872_v21 = vld [vmem:[#allocation3 + $0x588] sm:$0xff]  ;;  %v1874_v22 = vld [vmem:[#allocation3 + $0x598] sm:$0xff] }
 0x453   :  { %2271 = vmatpush1.bf16.msra.mxu0 %v1775_v24  ;;  %2435 = vmatpush1.bf16.msra.mxu1 %v1777_v20  ;;  %v1871_v24 = vld [vmem:[#allocation3 + $0x580] sm:$0xff]  ;;  %v1873_v20 = vld [vmem:[#allocation3 + $0x590] sm:$0xff] }
 0x454   :  { %2272 = vmatprep.subr.bf16.mxu0 %v1784_v26  ;;  %2436 = vmatprep.subr.bf16.mxu1 %v1786_v29  ;;  %v1880_v26 = vld [vmem:[#allocation3 + $0x5c8] sm:$0xff]  ;;  %v1882_v29 = vld [vmem:[#allocation3 + $0x5d8] sm:$0xff] }
 0x457   :  { %2273 = vmatpush1.bf16.msra.mxu0 %v1783_v53  ;;  %2437 = vmatpush1.bf16.msra.mxu1 %v1785_v32  ;;  %v1879_v53 = vld [vmem:[#allocation3 + $0x5c0] sm:$0xff]  ;;  %v1881_v32 = vld [vmem:[#allocation3 + $0x5d0] sm:$0xff] }
 0x458   :  { %2274 = vmatprep.subr.bf16.mxu0 %v1792_v35  ;;  %2438 = vmatprep.subr.bf16.mxu1 %v1794_v41  ;;  %v1888_v35 = vld [vmem:[#allocation3 + $0x608] sm:$0xff]  ;;  %v1890_v41 = vld [vmem:[#allocation3 + $0x618] sm:$0xff] }
 0x45b   :  { %2275 = vmatpush1.bf16.msra.mxu0 %v1791_v42  ;;  %2439 = vmatpush1.bf16.msra.mxu1 %v1793_v27  ;;  %v1887_v42 = vld [vmem:[#allocation3 + $0x600] sm:$0xff]  ;;  %v1889_v27 = vld [vmem:[#allocation3 + $0x610] sm:$0xff] }
 0x45c   :  { %2276 = vmatprep.subr.bf16.mxu0 %v1800_v44  ;;  %2440 = vmatprep.subr.bf16.mxu1 %v1802_v45  ;;  %v1896_v44 = vld [vmem:[#allocation3 + $0x648] sm:$0xff]  ;;  %v1898_v45 = vld [vmem:[#allocation3 + $0x658] sm:$0xff] }
 0x45f   :  { %2277 = vmatpush1.bf16.msra.mxu0 %v1799_v47  ;;  %2441 = vmatpush1.bf16.msra.mxu1 %v1801_v23  ;;  %v1895_v47 = vld [vmem:[#allocation3 + $0x640] sm:$0xff]  ;;  %v1897_v23 = vld [vmem:[#allocation3 + $0x650] sm:$0xff] }
 0x460   :  { %2278 = vmatprep.subr.bf16.mxu0 %v1808_v48  ;;  %2442 = vmatprep.subr.bf16.mxu1 %v1810_v50  ;;  %v1904_v48 = vld [vmem:[#allocation3 + $0x688] sm:$0xff]  ;;  %v1906_v50 = vld [vmem:[#allocation3 + $0x698] sm:$0xff] }
 0x463   :  { %2279 = vmatpush1.bf16.msra.mxu0 %v1807_v51  ;;  %2443 = vmatpush1.bf16.msra.mxu1 %v1809_v52  ;;  %v1903_v51 = vld [vmem:[#allocation3 + $0x680] sm:$0xff]  ;;  %v1905_v52 = vld [vmem:[#allocation3 + $0x690] sm:$0xff] }
 0x464   :  { %2280 = vmatprep.subr.bf16.mxu0 %v1816_v28  ;;  %2444 = vmatprep.subr.bf16.mxu1 %v1818_v56  ;;  %v1912_v28 = vld [vmem:[#allocation3 + $0x6c8] sm:$0xff]  ;;  %v1914_v56 = vld [vmem:[#allocation3 + $0x6d8] sm:$0xff] }
 0x467   :  { %2281 = vmatpush1.bf16.msra.mxu0 %v1815_v57  ;;  %2445 = vmatpush1.bf16.msra.mxu1 %v1817_v58  ;;  %v1911_v57 = vld [vmem:[#allocation3 + $0x6c0] sm:$0xff]  ;;  %v1913_v58 = vld [vmem:[#allocation3 + $0x6d0] sm:$0xff] }
 0x468   :  { %2291 = vmatprep.subr.bf16.mxu0 %v1824_v60  ;;  %2455 = vmatprep.subr.bf16.mxu1 %v1826_v61  ;;  %v1920_v60 = vld [vmem:[#allocation3 + $0x708] sm:$0xff]  ;;  %v1922_v61 = vld [vmem:[#allocation3 + $0x718] sm:$0xff] }
 0x46a   :  { %2283 = vmatmul.mubr.bf16.vlgmr.msra.gmra.mrb[16].mxu0 %v3744_v17  ;;  %2447 = vmatmul.mubr.bf16.vlgmr.msra.gmra.mrb[16].mxu1 %v3744_v17 }
 0x46b   :  { %2292 = vmatpush1.bf16.msra.mxu0 %v1823_v62  ;;  %2456 = vmatpush1.bf16.msra.mxu1 %v1825_v63  ;;  %v1919_v62 = vld [vmem:[#allocation3 + $0x700] sm:$0xff]  ;;  %v1921_v63 = vld [vmem:[#allocation3 + $0x710] sm:$0xff] }
 0x46c   :  { %2293 = vmatprep.subr.bf16.mxu0 %v1832_v0  ;;  %2457 = vmatprep.subr.bf16.mxu1 %v1834_v1  ;;  %v1928_v0 = vld [vmem:[#allocation3 + $0x748] sm:$0xff]  ;;  %v1930_v1 = vld [vmem:[#allocation3 + $0x758] sm:$0xff] }
 0x46d   :  { %2323 = vmatprep.mubr.bf16.mxu0 %v3750_v46  ;;  %2487 = vmatprep.mubr.bf16.mxu1 %v3750_v46 }
 0x46f   :  { %2294 = vmatpush1.bf16.msra.mxu0 %v1831_v2  ;;  %2458 = vmatpush1.bf16.msra.mxu1 %v1833_v3  ;;  %v1927_v2 = vld [vmem:[#allocation3 + $0x740] sm:$0xff]  ;;  %v1929_v3 = vld [vmem:[#allocation3 + $0x750] sm:$0xff] }
 0x470   :  { %2295 = vmatprep.subr.bf16.mxu0 %v1840_v4  ;;  %2459 = vmatprep.subr.bf16.mxu1 %v1842_v5  ;;  %v1936_v4 = vld [vmem:[#allocation3 + $0x788] sm:$0xff]  ;;  %v1938_v5 = vld [vmem:[#allocation3 + $0x798] sm:$0xff] }
 0x473   :  { %2296 = vmatpush1.bf16.msra.mxu0 %v1839_v6  ;;  %2460 = vmatpush1.bf16.msra.mxu1 %v1841_v19  ;;  %v1935_v6 = vld [vmem:[#allocation3 + $0x780] sm:$0xff]  ;;  %v1937_v19 = vld [vmem:[#allocation3 + $0x790] sm:$0xff] }
 0x474   :  { %2297 = vmatprep.subr.bf16.mxu0 %v1848_v7  ;;  %2461 = vmatprep.subr.bf16.mxu1 %v1850_v8  ;;  %v1944_v7 = vld [vmem:[#allocation3 + $0x7c8] sm:$0xff]  ;;  %v1946_v8 = vld [vmem:[#allocation3 + $0x7d8] sm:$0xff] }
 0x477   :  { %2298 = vmatpush1.bf16.msra.mxu0 %v1847_v9  ;;  %2462 = vmatpush1.bf16.msra.mxu1 %v1849_v10  ;;  %v1943_v9 = vld [vmem:[#allocation3 + $0x7c0] sm:$0xff]  ;;  %v1945_v10 = vld [vmem:[#allocation3 + $0x7d0] sm:$0xff] }
 0x478   :  { %2299 = vmatprep.subr.bf16.mxu0 %v1856_v11  ;;  %2463 = vmatprep.subr.bf16.mxu1 %v1858_v12  ;;  %v1952_v11 = vld [vmem:[#allocation3 + $0x808] sm:$0xff]  ;;  %v1954_v12 = vld [vmem:[#allocation3 + $0x818] sm:$0xff] }
 0x47b   :  { %2300 = vmatpush1.bf16.msra.mxu0 %v1855_v13  ;;  %2464 = vmatpush1.bf16.msra.mxu1 %v1857_v14  ;;  %v1951_v13 = vld [vmem:[#allocation3 + $0x800] sm:$0xff]  ;;  %v1953_v14 = vld [vmem:[#allocation3 + $0x810] sm:$0xff] }
 0x47c   :  { %2301 = vmatprep.subr.bf16.mxu0 %v1864_v16  ;;  %2465 = vmatprep.subr.bf16.mxu1 %v1866_v15  ;;  %v1960_v16 = vld [vmem:[#allocation3 + $0x848] sm:$0xff]  ;;  %v1962_v15 = vld [vmem:[#allocation3 + $0x858] sm:$0xff] }
 0x47f   :  { %2302 = vmatpush1.bf16.msra.mxu0 %v1863_v18  ;;  %2466 = vmatpush1.bf16.msra.mxu1 %v1865_v25  ;;  %v1959_v18 = vld [vmem:[#allocation3 + $0x840] sm:$0xff]  ;;  %v1961_v25 = vld [vmem:[#allocation3 + $0x850] sm:$0xff] }
 0x480   :  { %2303 = vmatprep.subr.bf16.mxu0 %v1872_v21  ;;  %2467 = vmatprep.subr.bf16.mxu1 %v1874_v22  ;;  %v1968_v21 = vld [vmem:[#allocation3 + $0x888] sm:$0xff]  ;;  %v1970_v22 = vld [vmem:[#allocation3 + $0x898] sm:$0xff] }
 0x483   :  { %2304 = vmatpush1.bf16.msra.mxu0 %v1871_v24  ;;  %2468 = vmatpush1.bf16.msra.mxu1 %v1873_v20  ;;  %v1967_v24 = vld [vmem:[#allocation3 + $0x880] sm:$0xff]  ;;  %v1969_v20 = vld [vmem:[#allocation3 + $0x890] sm:$0xff] }
 0x484   :  { %2305 = vmatprep.subr.bf16.mxu0 %v1880_v26  ;;  %2469 = vmatprep.subr.bf16.mxu1 %v1882_v29  ;;  %v1976_v26 = vld [vmem:[#allocation3 + $0x8c8] sm:$0xff]  ;;  %v1978_v29 = vld [vmem:[#allocation3 + $0x8d8] sm:$0xff] }
 0x487   :  { %2306 = vmatpush1.bf16.msra.mxu0 %v1879_v53  ;;  %2470 = vmatpush1.bf16.msra.mxu1 %v1881_v32  ;;  %v1975_v53 = vld [vmem:[#allocation3 + $0x8c0] sm:$0xff]  ;;  %v1977_v32 = vld [vmem:[#allocation3 + $0x8d0] sm:$0xff] }
 0x488   :  { %2307 = vmatprep.subr.bf16.mxu0 %v1888_v35  ;;  %2471 = vmatprep.subr.bf16.mxu1 %v1890_v41  ;;  %v1984_v35 = vld [vmem:[#allocation3 + $0x908] sm:$0xff]  ;;  %v1986_v41 = vld [vmem:[#allocation3 + $0x918] sm:$0xff] }
 0x48b   :  { %2308 = vmatpush1.bf16.msra.mxu0 %v1887_v42  ;;  %2472 = vmatpush1.bf16.msra.mxu1 %v1889_v27  ;;  %v1983_v42 = vld [vmem:[#allocation3 + $0x900] sm:$0xff]  ;;  %v1985_v27 = vld [vmem:[#allocation3 + $0x910] sm:$0xff] }
 0x48c   :  { %2309 = vmatprep.subr.bf16.mxu0 %v1896_v44  ;;  %2473 = vmatprep.subr.bf16.mxu1 %v1898_v45  ;;  %v1992_v44 = vld [vmem:[#allocation3 + $0x948] sm:$0xff]  ;;  %v1994_v45 = vld [vmem:[#allocation3 + $0x958] sm:$0xff] }
 0x48f   :  { %2310 = vmatpush1.bf16.msra.mxu0 %v1895_v47  ;;  %2474 = vmatpush1.bf16.msra.mxu1 %v1897_v23  ;;  %v1991_v47 = vld [vmem:[#allocation3 + $0x940] sm:$0xff]  ;;  %v1993_v23 = vld [vmem:[#allocation3 + $0x950] sm:$0xff] }
 0x490   :  { %2311 = vmatprep.subr.bf16.mxu0 %v1904_v48  ;;  %2475 = vmatprep.subr.bf16.mxu1 %v1906_v50  ;;  %v2000_v48 = vld [vmem:[#allocation3 + $0x988] sm:$0xff]  ;;  %v2002_v50 = vld [vmem:[#allocation3 + $0x998] sm:$0xff] }
 0x493   :  { %2312 = vmatpush1.bf16.msra.mxu0 %v1903_v51  ;;  %2476 = vmatpush1.bf16.msra.mxu1 %v1905_v52  ;;  %v1999_v51 = vld [vmem:[#allocation3 + $0x980] sm:$0xff]  ;;  %v2001_v52 = vld [vmem:[#allocation3 + $0x990] sm:$0xff] }
 0x494   :  { %2313 = vmatprep.subr.bf16.mxu0 %v1912_v28  ;;  %2477 = vmatprep.subr.bf16.mxu1 %v1914_v56  ;;  %v2008_v28 = vld [vmem:[#allocation3 + $0x9c8] sm:$0xff]  ;;  %v2010_v56 = vld [vmem:[#allocation3 + $0x9d8] sm:$0xff] }
 0x497   :  { %2314 = vmatpush1.bf16.msra.mxu0 %v1911_v57  ;;  %2478 = vmatpush1.bf16.msra.mxu1 %v1913_v58  ;;  %v2007_v57 = vld [vmem:[#allocation3 + $0x9c0] sm:$0xff]  ;;  %v2009_v58 = vld [vmem:[#allocation3 + $0x9d0] sm:$0xff] }
 0x498   :  { %2315 = vmatprep.subr.bf16.mxu0 %v1920_v60  ;;  %2479 = vmatprep.subr.bf16.mxu1 %v1922_v61  ;;  %v2016_v60 = vld [vmem:[#allocation3 + $0xa08] sm:$0xff]  ;;  %v2018_v61 = vld [vmem:[#allocation3 + $0xa18] sm:$0xff] }
 0x49b   :  { %2316 = vmatpush1.bf16.msra.mxu0 %v1919_v62  ;;  %2480 = vmatpush1.bf16.msra.mxu1 %v1921_v63  ;;  %v2015_v62 = vld [vmem:[#allocation3 + $0xa00] sm:$0xff]  ;;  %v2017_v63 = vld [vmem:[#allocation3 + $0xa10] sm:$0xff] }
 0x49c   :  { %2317 = vmatprep.subr.bf16.mxu0 %v1928_v0  ;;  %2481 = vmatprep.subr.bf16.mxu1 %v1930_v1  ;;  %v2024_v0 = vld [vmem:[#allocation3 + $0xa48] sm:$0xff]  ;;  %v2026_v1 = vld [vmem:[#allocation3 + $0xa58] sm:$0xff] }
 0x49f   :  { %2318 = vmatpush1.bf16.msra.mxu0 %v1927_v2  ;;  %2482 = vmatpush1.bf16.msra.mxu1 %v1929_v3  ;;  %v2023_v2 = vld [vmem:[#allocation3 + $0xa40] sm:$0xff]  ;;  %v2025_v3 = vld [vmem:[#allocation3 + $0xa50] sm:$0xff] }
 0x4a0   :  { %2319 = vmatprep.subr.bf16.mxu0 %v1936_v4  ;;  %2483 = vmatprep.subr.bf16.mxu1 %v1938_v5  ;;  %v2032_v4 = vld [vmem:[#allocation3 + $0xa88] sm:$0xff]  ;;  %v2034_v5 = vld [vmem:[#allocation3 + $0xa98] sm:$0xff] }
 0x4a3   :  { %2320 = vmatpush1.bf16.msra.mxu0 %v1935_v6  ;;  %2484 = vmatpush1.bf16.msra.mxu1 %v1937_v19  ;;  %v2031_v6 = vld [vmem:[#allocation3 + $0xa80] sm:$0xff]  ;;  %v2033_v19 = vld [vmem:[#allocation3 + $0xa90] sm:$0xff] }
 0x4a4   :  { %2321 = vmatprep.subr.bf16.mxu0 %v1944_v7  ;;  %2485 = vmatprep.subr.bf16.mxu1 %v1946_v8  ;;  %v2040_v7 = vld [vmem:[#allocation3 + $0xac8] sm:$0xff]  ;;  %v2042_v8 = vld [vmem:[#allocation3 + $0xad8] sm:$0xff] }
 0x4a7   :  { %2322 = vmatpush1.bf16.msra.mxu0 %v1943_v9  ;;  %2486 = vmatpush1.bf16.msra.mxu1 %v1945_v10  ;;  %v2039_v9 = vld [vmem:[#allocation3 + $0xac0] sm:$0xff]  ;;  %v2041_v10 = vld [vmem:[#allocation3 + $0xad0] sm:$0xff] }
 0x4a8   :  { %2332 = vmatprep.subr.bf16.mxu0 %v1952_v11  ;;  %2496 = vmatprep.subr.bf16.mxu1 %v1954_v12  ;;  %v2048_v11 = vld [vmem:[#allocation3 + $0xb08] sm:$0xff]  ;;  %v2050_v12 = vld [vmem:[#allocation3 + $0xb18] sm:$0xff] }
 0x4aa   :  { %2324 = vmatmul.mubr.bf16.vlgmr.msra.gmra.mrb[16].mxu0 %v3746_v37  ;;  %2488 = vmatmul.mubr.bf16.vlgmr.msra.gmra.mrb[16].mxu1 %v3746_v37 }
 0x4ab   :  { %2333 = vmatpush1.bf16.msra.mxu0 %v1951_v13  ;;  %2497 = vmatpush1.bf16.msra.mxu1 %v1953_v14  ;;  %v2047_v13 = vld [vmem:[#allocation3 + $0xb00] sm:$0xff]  ;;  %v2049_v14 = vld [vmem:[#allocation3 + $0xb10] sm:$0xff] }
 0x4ac   :  { %2334 = vmatprep.subr.bf16.mxu0 %v1960_v16  ;;  %2498 = vmatprep.subr.bf16.mxu1 %v1962_v15  ;;  %v2056_v16 = vld [vmem:[#allocation3 + $0xb48] sm:$0xff]  ;;  %v2058_v15 = vld [vmem:[#allocation3 + $0xb58] sm:$0xff] }
 0x4ad   :  { %2364 = vmatprep.mubr.bf16.mxu0 %v3766_v33  ;;  %2528 = vmatprep.mubr.bf16.mxu1 %v3766_v33 }
 0x4af   :  { %2335 = vmatpush1.bf16.msra.mxu0 %v1959_v18  ;;  %2499 = vmatpush1.bf16.msra.mxu1 %v1961_v25  ;;  %v2055_v18 = vld [vmem:[#allocation3 + $0xb40] sm:$0xff]  ;;  %v2057_v25 = vld [vmem:[#allocation3 + $0xb50] sm:$0xff] }
 0x4b0   :  { %2336 = vmatprep.subr.bf16.mxu0 %v1968_v21  ;;  %2500 = vmatprep.subr.bf16.mxu1 %v1970_v22  ;;  %v2064_v21 = vld [vmem:[#allocation3 + $0xb88] sm:$0xff]  ;;  %v2066_v22 = vld [vmem:[#allocation3 + $0xb98] sm:$0xff] }
 0x4b3   :  { %2337 = vmatpush1.bf16.msra.mxu0 %v1967_v24  ;;  %2501 = vmatpush1.bf16.msra.mxu1 %v1969_v20  ;;  %v2063_v24 = vld [vmem:[#allocation3 + $0xb80] sm:$0xff]  ;;  %v2065_v20 = vld [vmem:[#allocation3 + $0xb90] sm:$0xff] }
 0x4b4   :  { %2338 = vmatprep.subr.bf16.mxu0 %v1976_v26  ;;  %2502 = vmatprep.subr.bf16.mxu1 %v1978_v29  ;;  %v2072_v26 = vld [vmem:[#allocation3 + $0xbc8] sm:$0xff]  ;;  %v2074_v29 = vld [vmem:[#allocation3 + $0xbd8] sm:$0xff] }
 0x4b7   :  { %2339 = vmatpush1.bf16.msra.mxu0 %v1975_v53  ;;  %2503 = vmatpush1.bf16.msra.mxu1 %v1977_v32  ;;  %v2071_v53 = vld [vmem:[#allocation3 + $0xbc0] sm:$0xff]  ;;  %v2073_v32 = vld [vmem:[#allocation3 + $0xbd0] sm:$0xff] }
 0x4b8   :  { %2340 = vmatprep.subr.bf16.mxu0 %v1984_v35  ;;  %2504 = vmatprep.subr.bf16.mxu1 %v1986_v41  ;;  %v2080_v35 = vld [vmem:[#allocation3 + $0xc08] sm:$0xff]  ;;  %v2082_v41 = vld [vmem:[#allocation3 + $0xc18] sm:$0xff] }
 0x4bb   :  { %2341 = vmatpush1.bf16.msra.mxu0 %v1983_v42  ;;  %2505 = vmatpush1.bf16.msra.mxu1 %v1985_v27  ;;  %v2079_v42 = vld [vmem:[#allocation3 + $0xc00] sm:$0xff]  ;;  %v2081_v27 = vld [vmem:[#allocation3 + $0xc10] sm:$0xff] }
 0x4bc   :  { %2342 = vmatprep.subr.bf16.mxu0 %v1992_v44  ;;  %2506 = vmatprep.subr.bf16.mxu1 %v1994_v45  ;;  %v2088_v44 = vld [vmem:[#allocation3 + $0xc48] sm:$0xff]  ;;  %v2090_v45 = vld [vmem:[#allocation3 + $0xc58] sm:$0xff] }
 0x4bf   :  { %2343 = vmatpush1.bf16.msra.mxu0 %v1991_v47  ;;  %2507 = vmatpush1.bf16.msra.mxu1 %v1993_v23  ;;  %v2087_v47 = vld [vmem:[#allocation3 + $0xc40] sm:$0xff]  ;;  %v2089_v23 = vld [vmem:[#allocation3 + $0xc50] sm:$0xff] }
 0x4c0   :  { %2344 = vmatprep.subr.bf16.mxu0 %v2000_v48  ;;  %2508 = vmatprep.subr.bf16.mxu1 %v2002_v50  ;;  %v2096_v48 = vld [vmem:[#allocation3 + $0xc88] sm:$0xff]  ;;  %v2098_v50 = vld [vmem:[#allocation3 + $0xc98] sm:$0xff] }
 0x4c3   :  { %2345 = vmatpush1.bf16.msra.mxu0 %v1999_v51  ;;  %2509 = vmatpush1.bf16.msra.mxu1 %v2001_v52  ;;  %v2095_v51 = vld [vmem:[#allocation3 + $0xc80] sm:$0xff]  ;;  %v2097_v52 = vld [vmem:[#allocation3 + $0xc90] sm:$0xff] }
 0x4c4   :  { %2346 = vmatprep.subr.bf16.mxu0 %v2008_v28  ;;  %2510 = vmatprep.subr.bf16.mxu1 %v2010_v56  ;;  %v2104_v28 = vld [vmem:[#allocation3 + $0xcc8] sm:$0xff]  ;;  %v2106_v56 = vld [vmem:[#allocation3 + $0xcd8] sm:$0xff] }
 0x4c7   :  { %2347 = vmatpush1.bf16.msra.mxu0 %v2007_v57  ;;  %2511 = vmatpush1.bf16.msra.mxu1 %v2009_v58  ;;  %v2103_v57 = vld [vmem:[#allocation3 + $0xcc0] sm:$0xff]  ;;  %v2105_v58 = vld [vmem:[#allocation3 + $0xcd0] sm:$0xff] }
 0x4c8   :  { %2348 = vmatprep.subr.bf16.mxu0 %v2016_v60  ;;  %2512 = vmatprep.subr.bf16.mxu1 %v2018_v61  ;;  %v2112_v60 = vld [vmem:[#allocation3 + $0xd08] sm:$0xff]  ;;  %v2114_v61 = vld [vmem:[#allocation3 + $0xd18] sm:$0xff] }
 0x4cb   :  { %2349 = vmatpush1.bf16.msra.mxu0 %v2015_v62  ;;  %2513 = vmatpush1.bf16.msra.mxu1 %v2017_v63  ;;  %v2111_v62 = vld [vmem:[#allocation3 + $0xd00] sm:$0xff]  ;;  %v2113_v63 = vld [vmem:[#allocation3 + $0xd10] sm:$0xff] }
 0x4cc   :  { %2350 = vmatprep.subr.bf16.mxu0 %v2024_v0  ;;  %2514 = vmatprep.subr.bf16.mxu1 %v2026_v1  ;;  %v2120_v0 = vld [vmem:[#allocation3 + $0xd48] sm:$0xff]  ;;  %v2122_v1 = vld [vmem:[#allocation3 + $0xd58] sm:$0xff] }
 0x4cf   :  { %2351 = vmatpush1.bf16.msra.mxu0 %v2023_v2  ;;  %2515 = vmatpush1.bf16.msra.mxu1 %v2025_v3  ;;  %v2119_v2 = vld [vmem:[#allocation3 + $0xd40] sm:$0xff]  ;;  %v2121_v3 = vld [vmem:[#allocation3 + $0xd50] sm:$0xff] }
 0x4d0   :  { %2352 = vmatprep.subr.bf16.mxu0 %v2032_v4  ;;  %2516 = vmatprep.subr.bf16.mxu1 %v2034_v5  ;;  %v2128_v4 = vld [vmem:[#allocation3 + $0xd88] sm:$0xff]  ;;  %v2130_v5 = vld [vmem:[#allocation3 + $0xd98] sm:$0xff] }
 0x4d3   :  { %2353 = vmatpush1.bf16.msra.mxu0 %v2031_v6  ;;  %2517 = vmatpush1.bf16.msra.mxu1 %v2033_v19  ;;  %v2127_v6 = vld [vmem:[#allocation3 + $0xd80] sm:$0xff]  ;;  %v2129_v19 = vld [vmem:[#allocation3 + $0xd90] sm:$0xff] }
 0x4d4   :  { %2354 = vmatprep.subr.bf16.mxu0 %v2040_v7  ;;  %2518 = vmatprep.subr.bf16.mxu1 %v2042_v8  ;;  %v2136_v7 = vld [vmem:[#allocation3 + $0xdc8] sm:$0xff]  ;;  %v2138_v8 = vld [vmem:[#allocation3 + $0xdd8] sm:$0xff] }
 0x4d7   :  { %2355 = vmatpush1.bf16.msra.mxu0 %v2039_v9  ;;  %2519 = vmatpush1.bf16.msra.mxu1 %v2041_v10  ;;  %v2135_v9 = vld [vmem:[#allocation3 + $0xdc0] sm:$0xff]  ;;  %v2137_v10 = vld [vmem:[#allocation3 + $0xdd0] sm:$0xff] }
 0x4d8   :  { %2356 = vmatprep.subr.bf16.mxu0 %v2048_v11  ;;  %2520 = vmatprep.subr.bf16.mxu1 %v2050_v12  ;;  %v2144_v11 = vld [vmem:[#allocation3 + $0xe08] sm:$0xff]  ;;  %v2146_v12 = vld [vmem:[#allocation3 + $0xe18] sm:$0xff] }
 0x4db   :  { %2357 = vmatpush1.bf16.msra.mxu0 %v2047_v13  ;;  %2521 = vmatpush1.bf16.msra.mxu1 %v2049_v14  ;;  %v2143_v13 = vld [vmem:[#allocation3 + $0xe00] sm:$0xff]  ;;  %v2145_v14 = vld [vmem:[#allocation3 + $0xe10] sm:$0xff] }
 0x4dc   :  { %2358 = vmatprep.subr.bf16.mxu0 %v2056_v16  ;;  %2522 = vmatprep.subr.bf16.mxu1 %v2058_v15  ;;  %v2152_v16 = vld [vmem:[#allocation3 + $0xe48] sm:$0xff]  ;;  %v2154_v15 = vld [vmem:[#allocation3 + $0xe58] sm:$0xff] }
 0x4df   :  { %2359 = vmatpush1.bf16.msra.mxu0 %v2055_v18  ;;  %2523 = vmatpush1.bf16.msra.mxu1 %v2057_v25  ;;  %v2151_v18 = vld [vmem:[#allocation3 + $0xe40] sm:$0xff]  ;;  %v2153_v25 = vld [vmem:[#allocation3 + $0xe50] sm:$0xff] }
 0x4e0   :  { %2360 = vmatprep.subr.bf16.mxu0 %v2064_v21  ;;  %2524 = vmatprep.subr.bf16.mxu1 %v2066_v22  ;;  %v2160_v21 = vld [vmem:[#allocation3 + $0xe88] sm:$0xff]  ;;  %v2162_v22 = vld [vmem:[#allocation3 + $0xe98] sm:$0xff] }
 0x4e3   :  { %2361 = vmatpush1.bf16.msra.mxu0 %v2063_v24  ;;  %2525 = vmatpush1.bf16.msra.mxu1 %v2065_v20  ;;  %v2159_v24 = vld [vmem:[#allocation3 + $0xe80] sm:$0xff]  ;;  %v2161_v20 = vld [vmem:[#allocation3 + $0xe90] sm:$0xff] }
 0x4e4   :  { %2362 = vmatprep.subr.bf16.mxu0 %v2072_v26  ;;  %2526 = vmatprep.subr.bf16.mxu1 %v2074_v29  ;;  %v2168_v26 = vld [vmem:[#allocation3 + $0xec8] sm:$0xff]  ;;  %v2170_v29 = vld [vmem:[#allocation3 + $0xed8] sm:$0xff] }
 0x4e7   :  { %2363 = vmatpush1.bf16.msra.mxu0 %v2071_v53  ;;  %2527 = vmatpush1.bf16.msra.mxu1 %v2073_v32  ;;  %v2167_v53 = vld [vmem:[#allocation3 + $0xec0] sm:$0xff]  ;;  %v2169_v32 = vld [vmem:[#allocation3 + $0xed0] sm:$0xff] }
 0x4e8   :  { %2373 = vmatprep.subr.bf16.mxu0 %v2080_v35  ;;  %2537 = vmatprep.subr.bf16.mxu1 %v2082_v41  ;;  %v2176_v35 = vld [vmem:[#allocation3 + $0xf08] sm:$0xff]  ;;  %v2178_v41 = vld [vmem:[#allocation3 + $0xf18] sm:$0xff] }
 0x4ea   :  { %2365 = vmatmul.mubr.bf16.vlgmr.msra.gmra.mrb[16].mxu0 %v3762_v30  ;;  %2529 = vmatmul.mubr.bf16.vlgmr.msra.gmra.mrb[16].mxu1 %v3762_v30 }
 0x4eb   :  { %2374 = vmatpush1.bf16.msra.mxu0 %v2079_v42  ;;  %2538 = vmatpush1.bf16.msra.mxu1 %v2081_v27  ;;  %v2175_v42 = vld [vmem:[#allocation3 + $0xf00] sm:$0xff]  ;;  %v2177_v27 = vld [vmem:[#allocation3 + $0xf10] sm:$0xff] }
 0x4ec   :  { %2375 = vmatprep.subr.bf16.mxu0 %v2088_v44  ;;  %2539 = vmatprep.subr.bf16.mxu1 %v2090_v45  ;;  %v2184_v44 = vld [vmem:[#allocation3 + $0xf48] sm:$0xff]  ;;  %v2186_v45 = vld [vmem:[#allocation3 + $0xf58] sm:$0xff] }
 0x4ed   :  { %2405 = vmatprep.mubr.bf16.mxu0 %v3768_v34  ;;  %2569 = vmatprep.mubr.bf16.mxu1 %v3768_v34 }
 0x4ef   :  { %2376 = vmatpush1.bf16.msra.mxu0 %v2087_v47  ;;  %2540 = vmatpush1.bf16.msra.mxu1 %v2089_v23  ;;  %v2183_v47 = vld [vmem:[#allocation3 + $0xf40] sm:$0xff]  ;;  %v2185_v23 = vld [vmem:[#allocation3 + $0xf50] sm:$0xff] }
 0x4f0   :  { %2377 = vmatprep.subr.bf16.mxu0 %v2096_v48  ;;  %2541 = vmatprep.subr.bf16.mxu1 %v2098_v50  ;;  %v2192_v48 = vld [vmem:[#allocation3 + $0xf88] sm:$0xff]  ;;  %v2194_v50 = vld [vmem:[#allocation3 + $0xf98] sm:$0xff] }
 0x4f3   :  { %2378 = vmatpush1.bf16.msra.mxu0 %v2095_v51  ;;  %2542 = vmatpush1.bf16.msra.mxu1 %v2097_v52  ;;  %v2191_v51 = vld [vmem:[#allocation3 + $0xf80] sm:$0xff]  ;;  %v2193_v52 = vld [vmem:[#allocation3 + $0xf90] sm:$0xff] }
 0x4f4   :  { %2379 = vmatprep.subr.bf16.mxu0 %v2104_v28  ;;  %2543 = vmatprep.subr.bf16.mxu1 %v2106_v56  ;;  %v2200_v28 = vld [vmem:[#allocation3 + $0xfc8] sm:$0xff]  ;;  %v2202_v56 = vld [vmem:[#allocation3 + $0xfd8] sm:$0xff] }
 0x4f7   :  { %2380 = vmatpush1.bf16.msra.mxu0 %v2103_v57  ;;  %2544 = vmatpush1.bf16.msra.mxu1 %v2105_v58  ;;  %v2199_v57 = vld [vmem:[#allocation3 + $0xfc0] sm:$0xff]  ;;  %v2201_v58 = vld [vmem:[#allocation3 + $0xfd0] sm:$0xff] }
 0x4f8   :  { %2381 = vmatprep.subr.bf16.mxu0 %v2112_v60  ;;  %2545 = vmatprep.subr.bf16.mxu1 %v2114_v61  ;;  %v1700_v60 = vld [vmem:[#allocation3 + $0x28] sm:$0xff]  ;;  %v1702_v61 = vld [vmem:[#allocation3 + $0x38] sm:$0xff] }
 0x4fb   :  { %2382 = vmatpush1.bf16.msra.mxu0 %v2111_v62  ;;  %2546 = vmatpush1.bf16.msra.mxu1 %v2113_v63  ;;  %v1699_v62 = vld [vmem:[#allocation3 + $0x20] sm:$0xff]  ;;  %v1701_v63 = vld [vmem:[#allocation3 + $0x30] sm:$0xff] }
 0x4fc   :  { %2383 = vmatprep.subr.bf16.mxu0 %v2120_v0  ;;  %2547 = vmatprep.subr.bf16.mxu1 %v2122_v1  ;;  %v1708_v0 = vld [vmem:[#allocation3 + $0x68] sm:$0xff]  ;;  %v1710_v1 = vld [vmem:[#allocation3 + $0x78] sm:$0xff] }
 0x4ff   :  { %2384 = vmatpush1.bf16.msra.mxu0 %v2119_v2  ;;  %2548 = vmatpush1.bf16.msra.mxu1 %v2121_v3  ;;  %v1707_v2 = vld [vmem:[#allocation3 + $0x60] sm:$0xff]  ;;  %v1709_v3 = vld [vmem:[#allocation3 + $0x70] sm:$0xff] }
 0x500   :  { %2385 = vmatprep.subr.bf16.mxu0 %v2128_v4  ;;  %2549 = vmatprep.subr.bf16.mxu1 %v2130_v5  ;;  %v1716_v4 = vld [vmem:[#allocation3 + $0xa8] sm:$0xff]  ;;  %v1718_v5 = vld [vmem:[#allocation3 + $0xb8] sm:$0xff] }
 0x503   :  { %2386 = vmatpush1.bf16.msra.mxu0 %v2127_v6  ;;  %2550 = vmatpush1.bf16.msra.mxu1 %v2129_v19  ;;  %v1715_v6 = vld [vmem:[#allocation3 + $0xa0] sm:$0xff]  ;;  %v1717_v19 = vld [vmem:[#allocation3 + $0xb0] sm:$0xff] }
 0x504   :  { %2387 = vmatprep.subr.bf16.mxu0 %v2136_v7  ;;  %2551 = vmatprep.subr.bf16.mxu1 %v2138_v8  ;;  %v1724_v7 = vld [vmem:[#allocation3 + $0xe8] sm:$0xff]  ;;  %v1726_v8 = vld [vmem:[#allocation3 + $0xf8] sm:$0xff] }
 0x507   :  { %2388 = vmatpush1.bf16.msra.mxu0 %v2135_v9  ;;  %2552 = vmatpush1.bf16.msra.mxu1 %v2137_v10  ;;  %v1723_v9 = vld [vmem:[#allocation3 + $0xe0] sm:$0xff]  ;;  %v1725_v10 = vld [vmem:[#allocation3 + $0xf0] sm:$0xff] }
 0x508   :  { %2389 = vmatprep.subr.bf16.mxu0 %v2144_v11  ;;  %2553 = vmatprep.subr.bf16.mxu1 %v2146_v12  ;;  %v1732_v11 = vld [vmem:[#allocation3 + $0x128] sm:$0xff]  ;;  %v1734_v12 = vld [vmem:[#allocation3 + $0x138] sm:$0xff] }
 0x50b   :  { %2390 = vmatpush1.bf16.msra.mxu0 %v2143_v13  ;;  %2554 = vmatpush1.bf16.msra.mxu1 %v2145_v14  ;;  %v1733_v13 = vld [vmem:[#allocation3 + $0x130] sm:$0xff]  ;;  %v1740_v14 = vld [vmem:[#allocation3 + $0x168] sm:$0xff] }
 0x50c   :  { %2391 = vmatprep.subr.bf16.mxu0 %v2152_v16  ;;  %2555 = vmatprep.subr.bf16.mxu1 %v2154_v15  ;;  %v1742_v16 = vld [vmem:[#allocation3 + $0x178] sm:$0xff]  ;;  %v1739_v15 = vld [vmem:[#allocation3 + $0x160] sm:$0xff] }
 0x50f   :  { %2392 = vmatpush1.bf16.msra.mxu0 %v2151_v18  ;;  %2556 = vmatpush1.bf16.msra.mxu1 %v2153_v25  ;;  %v1741_v18 = vld [vmem:[#allocation3 + $0x170] sm:$0xff]  ;;  %v1748_v25 = vld [vmem:[#allocation3 + $0x1a8] sm:$0xff] }
 0x510   :  { %2393 = vmatprep.subr.bf16.mxu0 %v2160_v21  ;;  %2557 = vmatprep.subr.bf16.mxu1 %v2162_v22  ;;  %v1750_v21 = vld [vmem:[#allocation3 + $0x1b8] sm:$0xff]  ;;  %v1747_v22 = vld [vmem:[#allocation3 + $0x1a0] sm:$0xff] }
 0x513   :  { %2394 = vmatpush1.bf16.msra.mxu0 %v2159_v24  ;;  %2558 = vmatpush1.bf16.msra.mxu1 %v2161_v20  ;;  %v1749_v24 = vld [vmem:[#allocation3 + $0x1b0] sm:$0xff]  ;;  %v1756_v20 = vld [vmem:[#allocation3 + $0x1e8] sm:$0xff] }
 0x514   :  { %2395 = vmatprep.subr.bf16.mxu0 %v2168_v26  ;;  %2559 = vmatprep.subr.bf16.mxu1 %v2170_v29  ;;  %v1758_v26 = vld [vmem:[#allocation3 + $0x1f8] sm:$0xff]  ;;  %v1755_v29 = vld [vmem:[#allocation3 + $0x1e0] sm:$0xff] }
 0x517   :  { %2396 = vmatpush1.bf16.msra.mxu0 %v2167_v53  ;;  %2560 = vmatpush1.bf16.msra.mxu1 %v2169_v32  ;;  %v1757_v53 = vld [vmem:[#allocation3 + $0x1f0] sm:$0xff]  ;;  %v1764_v32 = vld [vmem:[#allocation3 + $0x228] sm:$0xff] }
 0x518   :  { %2397 = vmatprep.subr.bf16.mxu0 %v2176_v35  ;;  %2561 = vmatprep.subr.bf16.mxu1 %v2178_v41  ;;  %v1766_v35 = vld [vmem:[#allocation3 + $0x238] sm:$0xff]  ;;  %v1763_v41 = vld [vmem:[#allocation3 + $0x220] sm:$0xff] }
 0x51b   :  { %2398 = vmatpush1.bf16.msra.mxu0 %v2175_v42  ;;  %2562 = vmatpush1.bf16.msra.mxu1 %v2177_v27  ;;  %v1765_v42 = vld [vmem:[#allocation3 + $0x230] sm:$0xff]  ;;  %v1772_v27 = vld [vmem:[#allocation3 + $0x268] sm:$0xff] }
 0x51c   :  { %2399 = vmatprep.subr.bf16.mxu0 %v2184_v44  ;;  %2563 = vmatprep.subr.bf16.mxu1 %v2186_v45  ;;  %v1774_v44 = vld [vmem:[#allocation3 + $0x278] sm:$0xff]  ;;  %v1771_v45 = vld [vmem:[#allocation3 + $0x260] sm:$0xff] }
 0x51f   :  { %2400 = vmatpush1.bf16.msra.mxu0 %v2183_v47  ;;  %2564 = vmatpush1.bf16.msra.mxu1 %v2185_v23  ;;  %v1773_v47 = vld [vmem:[#allocation3 + $0x270] sm:$0xff]  ;;  %v1780_v23 = vld [vmem:[#allocation3 + $0x2a8] sm:$0xff] }
 0x520   :  { %2401 = vmatprep.subr.bf16.mxu0 %v2192_v48  ;;  %2565 = vmatprep.subr.bf16.mxu1 %v2194_v50  ;;  %v1782_v48 = vld [vmem:[#allocation3 + $0x2b8] sm:$0xff]  ;;  %v1779_v50 = vld [vmem:[#allocation3 + $0x2a0] sm:$0xff] }
 0x523   :  { %2402 = vmatpush1.bf16.msra.mxu0 %v2191_v51  ;;  %2566 = vmatpush1.bf16.msra.mxu1 %v2193_v52  ;;  %v1781_v51 = vld [vmem:[#allocation3 + $0x2b0] sm:$0xff]  ;;  %v1788_v52 = vld [vmem:[#allocation3 + $0x2e8] sm:$0xff] }
 0x524   :  { %2403 = vmatprep.subr.bf16.mxu0 %v2200_v28  ;;  %2567 = vmatprep.subr.bf16.mxu1 %v2202_v56  ;;  %v1790_v28 = vld [vmem:[#allocation3 + $0x2f8] sm:$0xff]  ;;  %v1787_v56 = vld [vmem:[#allocation3 + $0x2e0] sm:$0xff] }
 0x527   :  { %2404 = vmatpush1.bf16.msra.mxu0 %v2199_v57  ;;  %2568 = vmatpush1.bf16.msra.mxu1 %v2201_v58  ;;  %v1789_v57 = vld [vmem:[#allocation3 + $0x2f0] sm:$0xff]  ;;  %v1796_v58 = vld [vmem:[#allocation3 + $0x328] sm:$0xff] }
 0x528   :  { %2578 = vmatprep.subr.bf16.mxu0 %v1700_v60  ;;  %2742 = vmatprep.subr.bf16.mxu1 %v1702_v61  ;;  %v1798_v60 = vld [vmem:[#allocation3 + $0x338] sm:$0xff]  ;;  %v1795_v61 = vld [vmem:[#allocation3 + $0x320] sm:$0xff] }
 0x52a   :  { %2406 = vmatmul.mubr.bf16.vlgmr.msra.gmra.mrb[16].mxu0 %v3764_v31  ;;  %2570 = vmatmul.mubr.bf16.vlgmr.msra.gmra.mrb[16].mxu1 %v3764_v31 }
 0x52b   :  { %2579 = vmatpush1.bf16.msra.mxu0 %v1699_v62  ;;  %2743 = vmatpush1.bf16.msra.mxu1 %v1701_v63  ;;  %v1797_v62 = vld [vmem:[#allocation3 + $0x330] sm:$0xff]  ;;  %v1804_v63 = vld [vmem:[#allocation3 + $0x368] sm:$0xff] }
 0x52c   :  { %2580 = vmatprep.subr.bf16.mxu0 %v1708_v0  ;;  %2744 = vmatprep.subr.bf16.mxu1 %v1710_v1  ;;  %v1806_v0 = vld [vmem:[#allocation3 + $0x378] sm:$0xff]  ;;  %v1803_v1 = vld [vmem:[#allocation3 + $0x360] sm:$0xff] }
 0x52d   :  { %2610 = vmatprep.mubr.bf16.mxu0 %v3748_v43  ;;  %2774 = vmatprep.mubr.bf16.mxu1 %v3748_v43  ;;  %v1731_v43 = vld [vmem:[#allocation3 + $0x120] sm:$0xff] }
 0x52f   :  { %2581 = vmatpush1.bf16.msra.mxu0 %v1707_v2  ;;  %2745 = vmatpush1.bf16.msra.mxu1 %v1709_v3  ;;  %v1805_v2 = vld [vmem:[#allocation3 + $0x370] sm:$0xff]  ;;  %v1812_v3 = vld [vmem:[#allocation3 + $0x3a8] sm:$0xff] }
 0x530   :  { %2582 = vmatprep.subr.bf16.mxu0 %v1716_v4  ;;  %2746 = vmatprep.subr.bf16.mxu1 %v1718_v5  ;;  %v1814_v4 = vld [vmem:[#allocation3 + $0x3b8] sm:$0xff]  ;;  %v1811_v5 = vld [vmem:[#allocation3 + $0x3a0] sm:$0xff] }
 0x533   :  { %2583 = vmatpush1.bf16.msra.mxu0 %v1715_v6  ;;  %2747 = vmatpush1.bf16.msra.mxu1 %v1717_v19  ;;  %v1813_v6 = vld [vmem:[#allocation3 + $0x3b0] sm:$0xff]  ;;  %v1820_v19 = vld [vmem:[#allocation3 + $0x3e8] sm:$0xff] }
 0x534   :  { %2584 = vmatprep.subr.bf16.mxu0 %v1724_v7  ;;  %2748 = vmatprep.subr.bf16.mxu1 %v1726_v8  ;;  %v1822_v7 = vld [vmem:[#allocation3 + $0x3f8] sm:$0xff]  ;;  %v1819_v8 = vld [vmem:[#allocation3 + $0x3e0] sm:$0xff] }
 0x537   :  { %2585 = vmatpush1.bf16.msra.mxu0 %v1723_v9  ;;  %2749 = vmatpush1.bf16.msra.mxu1 %v1725_v10  ;;  %v1821_v9 = vld [vmem:[#allocation3 + $0x3f0] sm:$0xff]  ;;  %v1828_v10 = vld [vmem:[#allocation3 + $0x428] sm:$0xff] }
 0x538   :  { %2586 = vmatprep.subr.bf16.mxu0 %v1732_v11  ;;  %2750 = vmatprep.subr.bf16.mxu1 %v1734_v12  ;;  %v1830_v11 = vld [vmem:[#allocation3 + $0x438] sm:$0xff]  ;;  %v1827_v12 = vld [vmem:[#allocation3 + $0x420] sm:$0xff] }
 0x53b   :  { %2587 = vmatpush1.bf16.msra.mxu0 %v1731_v43  ;;  %2751 = vmatpush1.bf16.msra.mxu1 %v1733_v13  ;;  %v1829_v43 = vld [vmem:[#allocation3 + $0x430] sm:$0xff]  ;;  %v1836_v13 = vld [vmem:[#allocation3 + $0x468] sm:$0xff] }
 0x53c   :  { %2588 = vmatprep.subr.bf16.mxu0 %v1740_v14  ;;  %2752 = vmatprep.subr.bf16.mxu1 %v1742_v16  ;;  %v1838_v14 = vld [vmem:[#allocation3 + $0x478] sm:$0xff]  ;;  %v1835_v16 = vld [vmem:[#allocation3 + $0x460] sm:$0xff] }
 0x53f   :  { %2589 = vmatpush1.bf16.msra.mxu0 %v1739_v15  ;;  %2753 = vmatpush1.bf16.msra.mxu1 %v1741_v18  ;;  %v1837_v15 = vld [vmem:[#allocation3 + $0x470] sm:$0xff]  ;;  %v1844_v18 = vld [vmem:[#allocation3 + $0x4a8] sm:$0xff] }
 0x540   :  { %2590 = vmatprep.subr.bf16.mxu0 %v1748_v25  ;;  %2754 = vmatprep.subr.bf16.mxu1 %v1750_v21  ;;  %v1846_v25 = vld [vmem:[#allocation3 + $0x4b8] sm:$0xff]  ;;  %v1843_v21 = vld [vmem:[#allocation3 + $0x4a0] sm:$0xff] }
 0x543   :  { %2591 = vmatpush1.bf16.msra.mxu0 %v1747_v22  ;;  %2755 = vmatpush1.bf16.msra.mxu1 %v1749_v24  ;;  %v1845_v22 = vld [vmem:[#allocation3 + $0x4b0] sm:$0xff]  ;;  %v1852_v24 = vld [vmem:[#allocation3 + $0x4e8] sm:$0xff] }
 0x544   :  { %2592 = vmatprep.subr.bf16.mxu0 %v1756_v20  ;;  %2756 = vmatprep.subr.bf16.mxu1 %v1758_v26  ;;  %v1851_v20 = vld [vmem:[#allocation3 + $0x4e0] sm:$0xff]  ;;  %v1853_v26 = vld [vmem:[#allocation3 + $0x4f0] sm:$0xff] }
 0x547   :  { %2593 = vmatpush1.bf16.msra.mxu0 %v1755_v29  ;;  %2757 = vmatpush1.bf16.msra.mxu1 %v1757_v53  ;;  %v1860_v29 = vld [vmem:[#allocation3 + $0x528] sm:$0xff]  ;;  %v1862_v53 = vld [vmem:[#allocation3 + $0x538] sm:$0xff] }
 0x548   :  { %2594 = vmatprep.subr.bf16.mxu0 %v1764_v32  ;;  %2758 = vmatprep.subr.bf16.mxu1 %v1766_v35  ;;  %v1861_v32 = vld [vmem:[#allocation3 + $0x530] sm:$0xff]  ;;  %v1868_v35 = vld [vmem:[#allocation3 + $0x568] sm:$0xff] }
 0x54b   :  { %2595 = vmatpush1.bf16.msra.mxu0 %v1763_v41  ;;  %2759 = vmatpush1.bf16.msra.mxu1 %v1765_v42  ;;  %v1870_v41 = vld [vmem:[#allocation3 + $0x578] sm:$0xff]  ;;  %v1867_v42 = vld [vmem:[#allocation3 + $0x560] sm:$0xff] }
 0x54c   :  { %2596 = vmatprep.subr.bf16.mxu0 %v1772_v27  ;;  %2760 = vmatprep.subr.bf16.mxu1 %v1774_v44  ;;  %v1869_v27 = vld [vmem:[#allocation3 + $0x570] sm:$0xff]  ;;  %v1876_v44 = vld [vmem:[#allocation3 + $0x5a8] sm:$0xff] }
 0x54f   :  { %2597 = vmatpush1.bf16.msra.mxu0 %v1771_v45  ;;  %2761 = vmatpush1.bf16.msra.mxu1 %v1773_v47  ;;  %v1878_v45 = vld [vmem:[#allocation3 + $0x5b8] sm:$0xff]  ;;  %v1875_v47 = vld [vmem:[#allocation3 + $0x5a0] sm:$0xff] }
 0x550   :  { %2598 = vmatprep.subr.bf16.mxu0 %v1780_v23  ;;  %2762 = vmatprep.subr.bf16.mxu1 %v1782_v48  ;;  %v1877_v23 = vld [vmem:[#allocation3 + $0x5b0] sm:$0xff]  ;;  %v1884_v48 = vld [vmem:[#allocation3 + $0x5e8] sm:$0xff] }
 0x553   :  { %2599 = vmatpush1.bf16.msra.mxu0 %v1779_v50  ;;  %2763 = vmatpush1.bf16.msra.mxu1 %v1781_v51  ;;  %v1886_v50 = vld [vmem:[#allocation3 + $0x5f8] sm:$0xff]  ;;  %v1883_v51 = vld [vmem:[#allocation3 + $0x5e0] sm:$0xff] }
 0x554   :  { %2600 = vmatprep.subr.bf16.mxu0 %v1788_v52  ;;  %2764 = vmatprep.subr.bf16.mxu1 %v1790_v28  ;;  %v1885_v52 = vld [vmem:[#allocation3 + $0x5f0] sm:$0xff]  ;;  %v1892_v28 = vld [vmem:[#allocation3 + $0x628] sm:$0xff] }
 0x557   :  { %2601 = vmatpush1.bf16.msra.mxu0 %v1787_v56  ;;  %2765 = vmatpush1.bf16.msra.mxu1 %v1789_v57  ;;  %v1894_v56 = vld [vmem:[#allocation3 + $0x638] sm:$0xff]  ;;  %v1891_v57 = vld [vmem:[#allocation3 + $0x620] sm:$0xff] }
 0x558   :  { %2602 = vmatprep.subr.bf16.mxu0 %v1796_v58  ;;  %2766 = vmatprep.subr.bf16.mxu1 %v1798_v60  ;;  %v1893_v58 = vld [vmem:[#allocation3 + $0x630] sm:$0xff]  ;;  %v1900_v60 = vld [vmem:[#allocation3 + $0x668] sm:$0xff] }
 0x55b   :  { %2603 = vmatpush1.bf16.msra.mxu0 %v1795_v61  ;;  %2767 = vmatpush1.bf16.msra.mxu1 %v1797_v62  ;;  %v1902_v61 = vld [vmem:[#allocation3 + $0x678] sm:$0xff]  ;;  %v1899_v62 = vld [vmem:[#allocation3 + $0x660] sm:$0xff] }
 0x55c   :  { %2604 = vmatprep.subr.bf16.mxu0 %v1804_v63  ;;  %2768 = vmatprep.subr.bf16.mxu1 %v1806_v0  ;;  %v1901_v63 = vld [vmem:[#allocation3 + $0x670] sm:$0xff]  ;;  %v1908_v0 = vld [vmem:[#allocation3 + $0x6a8] sm:$0xff] }
 0x55f   :  { %2605 = vmatpush1.bf16.msra.mxu0 %v1803_v1  ;;  %2769 = vmatpush1.bf16.msra.mxu1 %v1805_v2  ;;  %v1910_v1 = vld [vmem:[#allocation3 + $0x6b8] sm:$0xff]  ;;  %v1907_v2 = vld [vmem:[#allocation3 + $0x6a0] sm:$0xff] }
 0x560   :  { %2606 = vmatprep.subr.bf16.mxu0 %v1812_v3  ;;  %2770 = vmatprep.subr.bf16.mxu1 %v1814_v4  ;;  %v1909_v3 = vld [vmem:[#allocation3 + $0x6b0] sm:$0xff]  ;;  %v1916_v4 = vld [vmem:[#allocation3 + $0x6e8] sm:$0xff] }
 0x563   :  { %2607 = vmatpush1.bf16.msra.mxu0 %v1811_v5  ;;  %2771 = vmatpush1.bf16.msra.mxu1 %v1813_v6  ;;  %v1918_v5 = vld [vmem:[#allocation3 + $0x6f8] sm:$0xff]  ;;  %v1915_v6 = vld [vmem:[#allocation3 + $0x6e0] sm:$0xff] }
 0x564   :  { %2608 = vmatprep.subr.bf16.mxu0 %v1820_v19  ;;  %2772 = vmatprep.subr.bf16.mxu1 %v1822_v7  ;;  %v1917_v19 = vld [vmem:[#allocation3 + $0x6f0] sm:$0xff]  ;;  %v1924_v7 = vld [vmem:[#allocation3 + $0x728] sm:$0xff] }
 0x567   :  { %2609 = vmatpush1.bf16.msra.mxu0 %v1819_v8  ;;  %2773 = vmatpush1.bf16.msra.mxu1 %v1821_v9  ;;  %v1926_v8 = vld [vmem:[#allocation3 + $0x738] sm:$0xff]  ;;  %v1923_v9 = vld [vmem:[#allocation3 + $0x720] sm:$0xff] }
 0x568   :  { %2619 = vmatprep.subr.bf16.mxu0 %v1828_v10  ;;  %2783 = vmatprep.subr.bf16.mxu1 %v1830_v11  ;;  %v1925_v10 = vld [vmem:[#allocation3 + $0x730] sm:$0xff]  ;;  %v1932_v11 = vld [vmem:[#allocation3 + $0x768] sm:$0xff] }
 0x56a   :  { %2611 = vmatmul.mubr.bf16.vlgmr.msra.gmra.mrb[20].mxu0 %v3744_v17  ;;  %2775 = vmatmul.mubr.bf16.vlgmr.msra.gmra.mrb[20].mxu1 %v3744_v17  ;;  %v1854_v17 = vld [vmem:[#allocation3 + $0x4f8] sm:$0xff] }
 0x56b   :  { %2620 = vmatpush1.bf16.msra.mxu0 %v1827_v12  ;;  %2784 = vmatpush1.bf16.msra.mxu1 %v1829_v43  ;;  %v1934_v12 = vld [vmem:[#allocation3 + $0x778] sm:$0xff]  ;;  %v1931_v43 = vld [vmem:[#allocation3 + $0x760] sm:$0xff] }
 0x56c   :  { %2621 = vmatprep.subr.bf16.mxu0 %v1836_v13  ;;  %2785 = vmatprep.subr.bf16.mxu1 %v1838_v14  ;;  %v1933_v13 = vld [vmem:[#allocation3 + $0x770] sm:$0xff]  ;;  %v1940_v14 = vld [vmem:[#allocation3 + $0x7a8] sm:$0xff] }
 0x56d   :  { %2651 = vmatprep.mubr.bf16.mxu0 %v3750_v46  ;;  %2815 = vmatprep.mubr.bf16.mxu1 %v3750_v46  ;;  %v1859_v46 = vld [vmem:[#allocation3 + $0x520] sm:$0xff] }
 0x56f   :  { %2622 = vmatpush1.bf16.msra.mxu0 %v1835_v16  ;;  %2786 = vmatpush1.bf16.msra.mxu1 %v1837_v15  ;;  %v1942_v16 = vld [vmem:[#allocation3 + $0x7b8] sm:$0xff]  ;;  %v1939_v15 = vld [vmem:[#allocation3 + $0x7a0] sm:$0xff] }
 0x570   :  { %2623 = vmatprep.subr.bf16.mxu0 %v1844_v18  ;;  %2787 = vmatprep.subr.bf16.mxu1 %v1846_v25  ;;  %v1941_v18 = vld [vmem:[#allocation3 + $0x7b0] sm:$0xff]  ;;  %v1948_v25 = vld [vmem:[#allocation3 + $0x7e8] sm:$0xff] }
 0x573   :  { %2624 = vmatpush1.bf16.msra.mxu0 %v1843_v21  ;;  %2788 = vmatpush1.bf16.msra.mxu1 %v1845_v22  ;;  %v1950_v21 = vld [vmem:[#allocation3 + $0x7f8] sm:$0xff]  ;;  %v1947_v22 = vld [vmem:[#allocation3 + $0x7e0] sm:$0xff] }
 0x574   :  { %2625 = vmatprep.subr.bf16.mxu0 %v1852_v24  ;;  %2789 = vmatprep.subr.bf16.mxu1 %v1854_v17  ;;  %v1949_v24 = vld [vmem:[#allocation3 + $0x7f0] sm:$0xff]  ;;  %v1956_v17 = vld [vmem:[#allocation3 + $0x828] sm:$0xff] }
 0x577   :  { %2626 = vmatpush1.bf16.msra.mxu0 %v1851_v20  ;;  %2790 = vmatpush1.bf16.msra.mxu1 %v1853_v26  ;;  %v1958_v20 = vld [vmem:[#allocation3 + $0x838] sm:$0xff]  ;;  %v1955_v26 = vld [vmem:[#allocation3 + $0x820] sm:$0xff] }
 0x578   :  { %2627 = vmatprep.subr.bf16.mxu0 %v1860_v29  ;;  %2791 = vmatprep.subr.bf16.mxu1 %v1862_v53  ;;  %v1957_v29 = vld [vmem:[#allocation3 + $0x830] sm:$0xff]  ;;  %v1964_v53 = vld [vmem:[#allocation3 + $0x868] sm:$0xff] }
 0x57b   :  { %2628 = vmatpush1.bf16.msra.mxu0 %v1859_v46  ;;  %2792 = vmatpush1.bf16.msra.mxu1 %v1861_v32  ;;  %v1966_v46 = vld [vmem:[#allocation3 + $0x878] sm:$0xff]  ;;  %v1963_v32 = vld [vmem:[#allocation3 + $0x860] sm:$0xff] }
 0x57c   :  { %2629 = vmatprep.subr.bf16.mxu0 %v1868_v35  ;;  %2793 = vmatprep.subr.bf16.mxu1 %v1870_v41  ;;  %v1965_v35 = vld [vmem:[#allocation3 + $0x870] sm:$0xff]  ;;  %v1972_v41 = vld [vmem:[#allocation3 + $0x8a8] sm:$0xff] }
 0x57f   :  { %2630 = vmatpush1.bf16.msra.mxu0 %v1867_v42  ;;  %2794 = vmatpush1.bf16.msra.mxu1 %v1869_v27  ;;  %v1974_v42 = vld [vmem:[#allocation3 + $0x8b8] sm:$0xff]  ;;  %v1971_v27 = vld [vmem:[#allocation3 + $0x8a0] sm:$0xff] }
 0x580   :  { %2631 = vmatprep.subr.bf16.mxu0 %v1876_v44  ;;  %2795 = vmatprep.subr.bf16.mxu1 %v1878_v45  ;;  %v1973_v44 = vld [vmem:[#allocation3 + $0x8b0] sm:$0xff]  ;;  %v1980_v45 = vld [vmem:[#allocation3 + $0x8e8] sm:$0xff] }
 0x583   :  { %2632 = vmatpush1.bf16.msra.mxu0 %v1875_v47  ;;  %2796 = vmatpush1.bf16.msra.mxu1 %v1877_v23  ;;  %v1979_v47 = vld [vmem:[#allocation3 + $0x8e0] sm:$0xff]  ;;  %v1981_v23 = vld [vmem:[#allocation3 + $0x8f0] sm:$0xff] }
 0x584   :  { %2633 = vmatprep.subr.bf16.mxu0 %v1884_v48  ;;  %2797 = vmatprep.subr.bf16.mxu1 %v1886_v50  ;;  %v1988_v48 = vld [vmem:[#allocation3 + $0x928] sm:$0xff]  ;;  %v1990_v50 = vld [vmem:[#allocation3 + $0x938] sm:$0xff] }
 0x587   :  { %2634 = vmatpush1.bf16.msra.mxu0 %v1883_v51  ;;  %2798 = vmatpush1.bf16.msra.mxu1 %v1885_v52  ;;  %v1989_v51 = vld [vmem:[#allocation3 + $0x930] sm:$0xff]  ;;  %v1996_v52 = vld [vmem:[#allocation3 + $0x968] sm:$0xff] }
 0x588   :  { %2635 = vmatprep.subr.bf16.mxu0 %v1892_v28  ;;  %2799 = vmatprep.subr.bf16.mxu1 %v1894_v56  ;;  %v1998_v28 = vld [vmem:[#allocation3 + $0x978] sm:$0xff]  ;;  %v1995_v56 = vld [vmem:[#allocation3 + $0x960] sm:$0xff] }
 0x58b   :  { %2636 = vmatpush1.bf16.msra.mxu0 %v1891_v57  ;;  %2800 = vmatpush1.bf16.msra.mxu1 %v1893_v58  ;;  %v1997_v57 = vld [vmem:[#allocation3 + $0x970] sm:$0xff]  ;;  %v2004_v58 = vld [vmem:[#allocation3 + $0x9a8] sm:$0xff] }
 0x58c   :  { %2637 = vmatprep.subr.bf16.mxu0 %v1900_v60  ;;  %2801 = vmatprep.subr.bf16.mxu1 %v1902_v61  ;;  %v2006_v60 = vld [vmem:[#allocation3 + $0x9b8] sm:$0xff]  ;;  %v2003_v61 = vld [vmem:[#allocation3 + $0x9a0] sm:$0xff] }
 0x58f   :  { %2638 = vmatpush1.bf16.msra.mxu0 %v1899_v62  ;;  %2802 = vmatpush1.bf16.msra.mxu1 %v1901_v63  ;;  %v2005_v62 = vld [vmem:[#allocation3 + $0x9b0] sm:$0xff]  ;;  %v2012_v63 = vld [vmem:[#allocation3 + $0x9e8] sm:$0xff] }
 0x590   :  { %2639 = vmatprep.subr.bf16.mxu0 %v1908_v0  ;;  %2803 = vmatprep.subr.bf16.mxu1 %v1910_v1  ;;  %v2014_v0 = vld [vmem:[#allocation3 + $0x9f8] sm:$0xff]  ;;  %v2011_v1 = vld [vmem:[#allocation3 + $0x9e0] sm:$0xff] }
 0x593   :  { %2640 = vmatpush1.bf16.msra.mxu0 %v1907_v2  ;;  %2804 = vmatpush1.bf16.msra.mxu1 %v1909_v3  ;;  %v2013_v2 = vld [vmem:[#allocation3 + $0x9f0] sm:$0xff]  ;;  %v2020_v3 = vld [vmem:[#allocation3 + $0xa28] sm:$0xff] }
 0x594   :  { %2641 = vmatprep.subr.bf16.mxu0 %v1916_v4  ;;  %2805 = vmatprep.subr.bf16.mxu1 %v1918_v5  ;;  %v2022_v4 = vld [vmem:[#allocation3 + $0xa38] sm:$0xff]  ;;  %v2019_v5 = vld [vmem:[#allocation3 + $0xa20] sm:$0xff] }
 0x597   :  { %2642 = vmatpush1.bf16.msra.mxu0 %v1915_v6  ;;  %2806 = vmatpush1.bf16.msra.mxu1 %v1917_v19  ;;  %v2021_v6 = vld [vmem:[#allocation3 + $0xa30] sm:$0xff]  ;;  %v2028_v19 = vld [vmem:[#allocation3 + $0xa68] sm:$0xff] }
 0x598   :  { %2643 = vmatprep.subr.bf16.mxu0 %v1924_v7  ;;  %2807 = vmatprep.subr.bf16.mxu1 %v1926_v8  ;;  %v2030_v7 = vld [vmem:[#allocation3 + $0xa78] sm:$0xff]  ;;  %v2027_v8 = vld [vmem:[#allocation3 + $0xa60] sm:$0xff] }
 0x59b   :  { %2644 = vmatpush1.bf16.msra.mxu0 %v1923_v9  ;;  %2808 = vmatpush1.bf16.msra.mxu1 %v1925_v10  ;;  %v2029_v9 = vld [vmem:[#allocation3 + $0xa70] sm:$0xff]  ;;  %v2036_v10 = vld [vmem:[#allocation3 + $0xaa8] sm:$0xff] }
 0x59c   :  { %2645 = vmatprep.subr.bf16.mxu0 %v1932_v11  ;;  %2809 = vmatprep.subr.bf16.mxu1 %v1934_v12  ;;  %v2038_v11 = vld [vmem:[#allocation3 + $0xab8] sm:$0xff]  ;;  %v2035_v12 = vld [vmem:[#allocation3 + $0xaa0] sm:$0xff] }
 0x59f   :  { %2646 = vmatpush1.bf16.msra.mxu0 %v1931_v43  ;;  %2810 = vmatpush1.bf16.msra.mxu1 %v1933_v13  ;;  %v2037_v43 = vld [vmem:[#allocation3 + $0xab0] sm:$0xff]  ;;  %v2044_v13 = vld [vmem:[#allocation3 + $0xae8] sm:$0xff] }
 0x5a0   :  { %2647 = vmatprep.subr.bf16.mxu0 %v1940_v14  ;;  %2811 = vmatprep.subr.bf16.mxu1 %v1942_v16  ;;  %v2046_v14 = vld [vmem:[#allocation3 + $0xaf8] sm:$0xff]  ;;  %v2043_v16 = vld [vmem:[#allocation3 + $0xae0] sm:$0xff] }
 0x5a3   :  { %2648 = vmatpush1.bf16.msra.mxu0 %v1939_v15  ;;  %2812 = vmatpush1.bf16.msra.mxu1 %v1941_v18  ;;  %v2045_v15 = vld [vmem:[#allocation3 + $0xaf0] sm:$0xff]  ;;  %v2052_v18 = vld [vmem:[#allocation3 + $0xb28] sm:$0xff] }
 0x5a4   :  { %2649 = vmatprep.subr.bf16.mxu0 %v1948_v25  ;;  %2813 = vmatprep.subr.bf16.mxu1 %v1950_v21  ;;  %v2054_v25 = vld [vmem:[#allocation3 + $0xb38] sm:$0xff]  ;;  %v2051_v21 = vld [vmem:[#allocation3 + $0xb20] sm:$0xff] }
 0x5a7   :  { %2650 = vmatpush1.bf16.msra.mxu0 %v1947_v22  ;;  %2814 = vmatpush1.bf16.msra.mxu1 %v1949_v24  ;;  %v2053_v22 = vld [vmem:[#allocation3 + $0xb30] sm:$0xff]  ;;  %v2060_v24 = vld [vmem:[#allocation3 + $0xb68] sm:$0xff] }
 0x5a8   :  { %2660 = vmatprep.subr.bf16.mxu0 %v1956_v17  ;;  %2824 = vmatprep.subr.bf16.mxu1 %v1958_v20  ;;  %v2062_v17 = vld [vmem:[#allocation3 + $0xb78] sm:$0xff]  ;;  %v2059_v20 = vld [vmem:[#allocation3 + $0xb60] sm:$0xff] }
 0x5aa   :  { %2652 = vmatmul.mubr.bf16.vlgmr.msra.gmra.mrb[20].mxu0 %v3746_v37  ;;  %2816 = vmatmul.mubr.bf16.vlgmr.msra.gmra.mrb[20].mxu1 %v3746_v37  ;;  %v1982_v37 = vld [vmem:[#allocation3 + $0x8f8] sm:$0xff] }
 0x5ab   :  { %2661 = vmatpush1.bf16.msra.mxu0 %v1955_v26  ;;  %2825 = vmatpush1.bf16.msra.mxu1 %v1957_v29  ;;  %v2061_v26 = vld [vmem:[#allocation3 + $0xb70] sm:$0xff]  ;;  %v2068_v29 = vld [vmem:[#allocation3 + $0xba8] sm:$0xff] }
 0x5ac   :  { %2662 = vmatprep.subr.bf16.mxu0 %v1964_v53  ;;  %2826 = vmatprep.subr.bf16.mxu1 %v1966_v46  ;;  %v2070_v53 = vld [vmem:[#allocation3 + $0xbb8] sm:$0xff]  ;;  %v2067_v46 = vld [vmem:[#allocation3 + $0xba0] sm:$0xff] }
 0x5ad   :  { %2692 = vmatprep.mubr.bf16.mxu0 %v3766_v33  ;;  %2856 = vmatprep.mubr.bf16.mxu1 %v3766_v33  ;;  %v1987_v33 = vld [vmem:[#allocation3 + $0x920] sm:$0xff] }
 0x5af   :  { %2663 = vmatpush1.bf16.msra.mxu0 %v1963_v32  ;;  %2827 = vmatpush1.bf16.msra.mxu1 %v1965_v35  ;;  %v2069_v32 = vld [vmem:[#allocation3 + $0xbb0] sm:$0xff]  ;;  %v2076_v35 = vld [vmem:[#allocation3 + $0xbe8] sm:$0xff] }
 0x5b0   :  { %2664 = vmatprep.subr.bf16.mxu0 %v1972_v41  ;;  %2828 = vmatprep.subr.bf16.mxu1 %v1974_v42  ;;  %v2078_v41 = vld [vmem:[#allocation3 + $0xbf8] sm:$0xff]  ;;  %v2075_v42 = vld [vmem:[#allocation3 + $0xbe0] sm:$0xff] }
 0x5b3   :  { %2665 = vmatpush1.bf16.msra.mxu0 %v1971_v27  ;;  %2829 = vmatpush1.bf16.msra.mxu1 %v1973_v44  ;;  %v2077_v27 = vld [vmem:[#allocation3 + $0xbf0] sm:$0xff]  ;;  %v2084_v44 = vld [vmem:[#allocation3 + $0xc28] sm:$0xff] }
 0x5b4   :  { %2666 = vmatprep.subr.bf16.mxu0 %v1980_v45  ;;  %2830 = vmatprep.subr.bf16.mxu1 %v1982_v37  ;;  %v2086_v45 = vld [vmem:[#allocation3 + $0xc38] sm:$0xff]  ;;  %v2083_v37 = vld [vmem:[#allocation3 + $0xc20] sm:$0xff] }
 0x5b7   :  { %2667 = vmatpush1.bf16.msra.mxu0 %v1979_v47  ;;  %2831 = vmatpush1.bf16.msra.mxu1 %v1981_v23  ;;  %v2085_v47 = vld [vmem:[#allocation3 + $0xc30] sm:$0xff]  ;;  %v2092_v23 = vld [vmem:[#allocation3 + $0xc68] sm:$0xff] }
 0x5b8   :  { %2668 = vmatprep.subr.bf16.mxu0 %v1988_v48  ;;  %2832 = vmatprep.subr.bf16.mxu1 %v1990_v50  ;;  %v2094_v48 = vld [vmem:[#allocation3 + $0xc78] sm:$0xff]  ;;  %v2091_v50 = vld [vmem:[#allocation3 + $0xc60] sm:$0xff] }
 0x5bb   :  { %2669 = vmatpush1.bf16.msra.mxu0 %v1987_v33  ;;  %2833 = vmatpush1.bf16.msra.mxu1 %v1989_v51  ;;  %v2093_v33 = vld [vmem:[#allocation3 + $0xc70] sm:$0xff]  ;;  %v2100_v51 = vld [vmem:[#allocation3 + $0xca8] sm:$0xff] }
 0x5bc   :  { %2670 = vmatprep.subr.bf16.mxu0 %v1996_v52  ;;  %2834 = vmatprep.subr.bf16.mxu1 %v1998_v28  ;;  %v2102_v52 = vld [vmem:[#allocation3 + $0xcb8] sm:$0xff]  ;;  %v2099_v28 = vld [vmem:[#allocation3 + $0xca0] sm:$0xff] }
 0x5bf   :  { %2671 = vmatpush1.bf16.msra.mxu0 %v1995_v56  ;;  %2835 = vmatpush1.bf16.msra.mxu1 %v1997_v57  ;;  %v2101_v56 = vld [vmem:[#allocation3 + $0xcb0] sm:$0xff]  ;;  %v2108_v57 = vld [vmem:[#allocation3 + $0xce8] sm:$0xff] }
 0x5c0   :  { %2672 = vmatprep.subr.bf16.mxu0 %v2004_v58  ;;  %2836 = vmatprep.subr.bf16.mxu1 %v2006_v60  ;;  %v2107_v58 = vld [vmem:[#allocation3 + $0xce0] sm:$0xff]  ;;  %v2109_v60 = vld [vmem:[#allocation3 + $0xcf0] sm:$0xff] }
 0x5c3   :  { %2673 = vmatpush1.bf16.msra.mxu0 %v2003_v61  ;;  %2837 = vmatpush1.bf16.msra.mxu1 %v2005_v62  ;;  %v2116_v61 = vld [vmem:[#allocation3 + $0xd28] sm:$0xff]  ;;  %v2118_v62 = vld [vmem:[#allocation3 + $0xd38] sm:$0xff] }
 0x5c4   :  { %2674 = vmatprep.subr.bf16.mxu0 %v2012_v63  ;;  %2838 = vmatprep.subr.bf16.mxu1 %v2014_v0  ;;  %v3800_v63 = vld [vmem:[#allocation8 + $0x2] ss:$4 sm:$0xff] }
 0x5c5   :  { %v2117_v0 = vld [vmem:[#allocation3 + $0xd30] sm:$0xff] }
 0x5c7   :  { %2675 = vmatpush1.bf16.msra.mxu0 %v2011_v1  ;;  %2839 = vmatpush1.bf16.msra.mxu1 %v2013_v2  ;;  %v2124_v1 = vld [vmem:[#allocation3 + $0xd68] sm:$0xff]  ;;  %v2126_v2 = vld [vmem:[#allocation3 + $0xd78] sm:$0xff] }
 0x5c8   :  { %2676 = vmatprep.subr.bf16.mxu0 %v2020_v3  ;;  %2840 = vmatprep.subr.bf16.mxu1 %v2022_v4  ;;  %v2213_v3 = vrot.slane %v3800_v63, %v3664_v36  ;;  %v2221_v4 = vrot.slane %v3800_v63, %v3666_v38 }
 0x5cb   :  { %2677 = vmatpush1.bf16.msra.mxu0 %v2019_v5  ;;  %2841 = vmatpush1.bf16.msra.mxu1 %v2021_v6  ;;  %v2217_v5 = vrot.slane %v3800_v63, %v3668_v39  ;;  %v2225_v6 = vrot.slane %v3800_v63, %v3670_v40 }
 0x5cc   :  { %2678 = vmatprep.subr.bf16.mxu0 %v2028_v19  ;;  %2842 = vmatprep.subr.bf16.mxu1 %v2030_v7  ;;  %v2123_v19 = vld [vmem:[#allocation3 + $0xd60] sm:$0xff]  ;;  %v2125_v7 = vld [vmem:[#allocation3 + $0xd70] sm:$0xff] }
 0x5cf   :  { %2679 = vmatpush1.bf16.msra.mxu0 %v2027_v8  ;;  %2843 = vmatpush1.bf16.msra.mxu1 %v2029_v9 }
 0x5d0   :  { %2680 = vmatprep.subr.bf16.mxu0 %v2036_v10  ;;  %2844 = vmatprep.subr.bf16.mxu1 %v2038_v11  ;;  %v2132_v10 = vld [vmem:[#allocation3 + $0xda8] sm:$0xff]  ;;  %v2134_v11 = vld [vmem:[#allocation3 + $0xdb8] sm:$0xff] }
 0x5d3   :  { %2681 = vmatpush1.bf16.msra.mxu0 %v2035_v12  ;;  %2845 = vmatpush1.bf16.msra.mxu1 %v2037_v43 }
 0x5d4   :  { %2682 = vmatprep.subr.bf16.mxu0 %v2044_v13  ;;  %2846 = vmatprep.subr.bf16.mxu1 %v2046_v14 }
 0x5d7   :  { %2683 = vmatpush1.bf16.msra.mxu0 %v2043_v16  ;;  %2847 = vmatpush1.bf16.msra.mxu1 %v2045_v15 }
 0x5d8   :  { %2684 = vmatprep.subr.bf16.mxu0 %v2052_v18  ;;  %2848 = vmatprep.subr.bf16.mxu1 %v2054_v25  ;;  %v2131_v18 = vld [vmem:[#allocation3 + $0xda0] sm:$0xff]  ;;  %v2133_v25 = vld [vmem:[#allocation3 + $0xdb0] sm:$0xff] }
 0x5db   :  { %2685 = vmatpush1.bf16.msra.mxu0 %v2051_v21  ;;  %2849 = vmatpush1.bf16.msra.mxu1 %v2053_v22  ;;  %v2140_v21 = vld [vmem:[#allocation3 + $0xde8] sm:$0xff]  ;;  %v2142_v22 = vld [vmem:[#allocation3 + $0xdf8] sm:$0xff] }
 0x5dc   :  { %2686 = vmatprep.subr.bf16.mxu0 %v2060_v24  ;;  %2850 = vmatprep.subr.bf16.mxu1 %v2062_v17  ;;  %v2139_v24 = vld [vmem:[#allocation3 + $0xde0] sm:$0xff]  ;;  %v2141_v17 = vld [vmem:[#allocation3 + $0xdf0] sm:$0xff] }
 0x5df   :  { %2687 = vmatpush1.bf16.msra.mxu0 %v2059_v20  ;;  %2851 = vmatpush1.bf16.msra.mxu1 %v2061_v26  ;;  %v2148_v20 = vld [vmem:[#allocation3 + $0xe28] sm:$0xff]  ;;  %v2150_v26 = vld [vmem:[#allocation3 + $0xe38] sm:$0xff] }
 0x5e0   :  { %2688 = vmatprep.subr.bf16.mxu0 %v2068_v29  ;;  %2852 = vmatprep.subr.bf16.mxu1 %v2070_v53  ;;  %v2147_v29 = vld [vmem:[#allocation3 + $0xe20] sm:$0xff]  ;;  %v2149_v53 = vld [vmem:[#allocation3 + $0xe30] sm:$0xff] }
 0x5e3   :  { %2689 = vmatpush1.bf16.msra.mxu0 %v2067_v46  ;;  %2853 = vmatpush1.bf16.msra.mxu1 %v2069_v32  ;;  %v2156_v46 = vld [vmem:[#allocation3 + $0xe68] sm:$0xff]  ;;  %v2158_v32 = vld [vmem:[#allocation3 + $0xe78] sm:$0xff] }
 0x5e4   :  { %2690 = vmatprep.subr.bf16.mxu0 %v2076_v35  ;;  %2854 = vmatprep.subr.bf16.mxu1 %v2078_v41 }
 0x5e7   :  { %2691 = vmatpush1.bf16.msra.mxu0 %v2075_v42  ;;  %2855 = vmatpush1.bf16.msra.mxu1 %v2077_v27 }
 0x5e8   :  { %2701 = vmatprep.subr.bf16.mxu0 %v2084_v44  ;;  %2865 = vmatprep.subr.bf16.mxu1 %v2086_v45  ;;  %v2155_v45 = vld [vmem:[#allocation3 + $0xe60] sm:$0xff] }
 0x5ea   :  { %2693 = vmatmul.mubr.bf16.vlgmr.msra.gmra.mrb[20].mxu0 %v3762_v30  ;;  %2857 = vmatmul.mubr.bf16.vlgmr.msra.gmra.mrb[20].mxu1 %v3762_v30  ;;  %v2110_v30 = vld [vmem:[#allocation3 + $0xcf8] sm:$0xff] }
 0x5eb   :  { %2702 = vmatpush1.bf16.msra.mxu0 %v2083_v37  ;;  %2866 = vmatpush1.bf16.msra.mxu1 %v2085_v47  ;;  %v2157_v37 = vld [vmem:[#allocation3 + $0xe70] sm:$0xff] }
 0x5ec   :  { %2703 = vmatprep.subr.bf16.mxu0 %v2092_v23  ;;  %2867 = vmatprep.subr.bf16.mxu1 %v2094_v48  ;;  %v2164_v48 = vld [vmem:[#allocation3 + $0xea8] sm:$0xff] }
 0x5ed   :  { %2733 = vmatprep.mubr.bf16.mxu0 %v3768_v34  ;;  %2897 = vmatprep.mubr.bf16.mxu1 %v3768_v34  ;;  %v2115_v34 = vld [vmem:[#allocation3 + $0xd20] sm:$0xff] }
 0x5ef   :  { %2704 = vmatpush1.bf16.msra.mxu0 %v2091_v50  ;;  %2868 = vmatpush1.bf16.msra.mxu1 %v2093_v33  ;;  %v2166_v50 = vld [vmem:[#allocation3 + $0xeb8] sm:$0xff] }
 0x5f0   :  { %2705 = vmatprep.subr.bf16.mxu0 %v2100_v51  ;;  %2869 = vmatprep.subr.bf16.mxu1 %v2102_v52  ;;  %v2163_v51 = vld [vmem:[#allocation3 + $0xea0] sm:$0xff]  ;;  %v2165_v52 = vld [vmem:[#allocation3 + $0xeb0] sm:$0xff] }
 0x5f3   :  { %2706 = vmatpush1.bf16.msra.mxu0 %v2099_v28  ;;  %2870 = vmatpush1.bf16.msra.mxu1 %v2101_v56  ;;  %v2172_v28 = vld [vmem:[#allocation3 + $0xee8] sm:$0xff]  ;;  %v2174_v56 = vld [vmem:[#allocation3 + $0xef8] sm:$0xff] }
 0x5f4   :  { %2707 = vmatprep.subr.bf16.mxu0 %v2108_v57  ;;  %2871 = vmatprep.subr.bf16.mxu1 %v2110_v30  ;;  %v2171_v57 = vld [vmem:[#allocation3 + $0xee0] sm:$0xff]  ;;  %v2173_v30 = vld [vmem:[#allocation3 + $0xef0] sm:$0xff] }
 0x5f7   :  { %2708 = vmatpush1.bf16.msra.mxu0 %v2107_v58  ;;  %2872 = vmatpush1.bf16.msra.mxu1 %v2109_v60  ;;  %v2180_v58 = vld [vmem:[#allocation3 + $0xf28] sm:$0xff]  ;;  %v2182_v60 = vld [vmem:[#allocation3 + $0xf38] sm:$0xff] }
 0x5f8   :  { %2709 = vmatprep.subr.bf16.mxu0 %v2116_v61  ;;  %2873 = vmatprep.subr.bf16.mxu1 %v2118_v62  ;;  %v2179_v61 = vld [vmem:[#allocation3 + $0xf20] sm:$0xff]  ;;  %v2181_v62 = vld [vmem:[#allocation3 + $0xf30] sm:$0xff] }
 0x5fb   :  { %2710 = vmatpush1.bf16.msra.mxu0 %v2115_v34  ;;  %2874 = vmatpush1.bf16.msra.mxu1 %v2117_v0  ;;  %v2188_v34 = vld [vmem:[#allocation3 + $0xf68] sm:$0xff]  ;;  %v2190_v0 = vld [vmem:[#allocation3 + $0xf78] sm:$0xff] }
 0x5fc   :  { %2711 = vmatprep.subr.bf16.mxu0 %v2124_v1  ;;  %2875 = vmatprep.subr.bf16.mxu1 %v2126_v2  ;;  %v2187_v1 = vld [vmem:[#allocation3 + $0xf60] sm:$0xff]  ;;  %v2189_v2 = vld [vmem:[#allocation3 + $0xf70] sm:$0xff] }
 0x5fd   :  { %v2407_v8 = vpop.f32.mrb[16].mxu0  ;;  %v2571_v9 = vpop.f32.mrb[16].mxu1 }
 0x5fe   :  { %v3310_v36 = vadd.f32 %v2407_v8, %v2213_v3  ;;  %v3312_v12 = vadd.f32 %v2571_v9, %v2221_v4  ;;  %v2409_v43 = vpop.f32.mrb[17].mxu0  ;;  %v2573_v38 = vpop.f32.mrb[17].mxu1  ;;  %v2196_v3 = vld [vmem:[#allocation3 + $0xfa8] sm:$0xff]  ;;  %v2198_v4 = vld [vmem:[#allocation3 + $0xfb8] sm:$0xff]  ;;  %v2203_v8 = vld [vmem:[#allocation3 + $0xfe0] sm:$0xff] }
 0x5ff   :  { %v3311_v13 = vadd.f32 %v2409_v43, %v2217_v5  ;;  %v3313_v14 = vadd.f32 %v2573_v38, %v2225_v6  ;;  %v2411_v16 = vpop.f32.mrb[18].mxu0  ;;  %v2575_v15 = vpop.f32.mrb[18].mxu1  ;;  %2712 = vmatpush1.bf16.msra.mxu0 %v2123_v19  ;;  %2876 = vmatpush1.bf16.msra.mxu1 %v2125_v7  ;;  %v2195_v5 = vld [vmem:[#allocation3 + $0xfa0] sm:$0xff]  ;;  %v2197_v6 = vld [vmem:[#allocation3 + $0xfb0] sm:$0xff]  ;;  %v2204_v19 = vld [vmem:[#allocation3 + $0xfe8] sm:$0xff] }
 0x600   :  { %3465 = vtanh.f32 %v3310_v36  ;;  %v2412_v39 = vpop.f32.mrb[19].mxu0  ;;  %v2576_v40 = vpop.f32.mrb[19].mxu1  ;;  %2713 = vmatprep.subr.bf16.mxu0 %v2132_v10  ;;  %2877 = vmatprep.subr.bf16.mxu1 %v2134_v11  ;;  %v2206_v7 = vld [vmem:[#allocation3 + $0xff8] sm:$0xff]  ;;  %v2205_v9 = vld [vmem:[#allocation3 + $0xff0] sm:$0xff]  ;;  %v2229_v10 = vrot.slane %v3800_v63, %v3676_v49  ;;  %v2237_v11 = vrot.slane %v3800_v63, %v3678_v54  ;;  %v2233_v36 = vrot.slane %v3800_v63, %v3680_v55 }
 0x601   :  { %3467 = vtanh.f32 %v3312_v12  ;;  %v2241_v12 = vrot.slane %v3800_v63, %v3682_v59 }
 0x602   :  { %3469 = vtanh.f32 %v3311_v13 }
 0x603   :  { %3471 = vtanh.f32 %v3313_v14  ;;  %2714 = vmatpush1.bf16.msra.mxu0 %v2131_v18  ;;  %2878 = vmatpush1.bf16.msra.mxu1 %v2133_v25 }
 0x604   :  { %2715 = vmatprep.subr.bf16.mxu0 %v2140_v21  ;;  %2879 = vmatprep.subr.bf16.mxu1 %v2142_v22 }
 0x607   :  { %2716 = vmatpush1.bf16.msra.mxu0 %v2139_v24  ;;  %2880 = vmatpush1.bf16.msra.mxu1 %v2141_v17 }
 0x608   :  { %2717 = vmatprep.subr.bf16.mxu0 %v2148_v20  ;;  %2881 = vmatprep.subr.bf16.mxu1 %v2150_v26 }
 0x60a   :  { %v3810_v35 = vpop.eup %3465 }
 0x60b   :  { %v3812_v41 = vpop.eup %3467  ;;  %v2914_v42 = vpack.c.bf16 %v3810_v35, %v3810_v35  ;;  %2718 = vmatpush1.bf16.msra.mxu0 %v2147_v29  ;;  %2882 = vmatpush1.bf16.msra.mxu1 %v2149_v53 }
 0x60c   :  { %v3816_v27 = vpop.eup %3469  ;;  %v2916_v44 = vpack.c.bf16 %v3812_v41, %v3812_v41  ;;  %2719 = vmatprep.subr.bf16.mxu0 %v2156_v46  ;;  %2883 = vmatprep.subr.bf16.mxu1 %v2158_v32 }
 0x60d   :  { %v3820_v47 = vpop.eup %3471  ;;  %v2915_v23 = vpack.c.bf16 %v3816_v27, %v3816_v27 }
 0x60e   :  { %v2917_v33 = vpack.c.bf16 %v3820_v47, %v3820_v47 }
 0x60f   :  { %2720 = vmatpush1.bf16.msra.mxu0 %v2155_v45  ;;  %2884 = vmatpush1.bf16.msra.mxu1 %v2157_v37 }
 0x610   :  { %2721 = vmatprep.subr.bf16.mxu0 %v2164_v48  ;;  %2885 = vmatprep.subr.bf16.mxu1 %v2166_v50 }
 0x613   :  { %2722 = vmatpush1.bf16.msra.mxu0 %v2163_v51  ;;  %2886 = vmatpush1.bf16.msra.mxu1 %v2165_v52 }
 0x614   :  { %2723 = vmatprep.subr.bf16.mxu0 %v2172_v28  ;;  %2887 = vmatprep.subr.bf16.mxu1 %v2174_v56 }
 0x617   :  { %2724 = vmatpush1.bf16.msra.mxu0 %v2171_v57  ;;  %2888 = vmatpush1.bf16.msra.mxu1 %v2173_v30 }
 0x618   :  { %2725 = vmatprep.subr.bf16.mxu0 %v2180_v58  ;;  %2889 = vmatprep.subr.bf16.mxu1 %v2182_v60 }
 0x61b   :  { %2726 = vmatpush1.bf16.msra.mxu0 %v2179_v61  ;;  %2890 = vmatpush1.bf16.msra.mxu1 %v2181_v62 }
 0x61c   :  { %2727 = vmatprep.subr.bf16.mxu0 %v2188_v34  ;;  %2891 = vmatprep.subr.bf16.mxu1 %v2190_v0 }
 0x61f   :  { %2728 = vmatpush1.bf16.msra.mxu0 %v2187_v1  ;;  %2892 = vmatpush1.bf16.msra.mxu1 %v2189_v2 }
 0x620   :  { %2729 = vmatprep.subr.bf16.mxu0 %v2196_v3  ;;  %2893 = vmatprep.subr.bf16.mxu1 %v2198_v4 }
 0x623   :  { %2730 = vmatpush1.bf16.msra.mxu0 %v2195_v5  ;;  %2894 = vmatpush1.bf16.msra.mxu1 %v2197_v6 }
 0x624   :  { %2731 = vmatprep.subr.bf16.mxu0 %v2204_v19  ;;  %2895 = vmatprep.subr.bf16.mxu1 %v2206_v7 }
 0x627   :  { %2732 = vmatpush1.bf16.msra.mxu0 %v2203_v8  ;;  %2896 = vmatpush1.bf16.msra.mxu1 %v2205_v9 }
 0x62a   :  { %2734 = vmatmul.mubr.bf16.vlgmr.msra.gmra.mrb[20].mxu0 %v3764_v31  ;;  %2898 = vmatmul.mubr.bf16.vlgmr.msra.gmra.mrb[20].mxu1 %v3764_v31 }
 0x6fd   :  { %v2735_v43 = vpop.f32.mrb[20].mxu0  ;;  %v2899_v38 = vpop.f32.mrb[20].mxu1 }
 0x6fe   :  { %v3314_v13 = vadd.f32 %v2735_v43, %v2229_v10  ;;  %v3316_v14 = vadd.f32 %v2899_v38, %v2237_v11  ;;  %v2737_v16 = vpop.f32.mrb[21].mxu0  ;;  %v2901_v15 = vpop.f32.mrb[21].mxu1 }
 0x6ff   :  { %v3315_v39 = vadd.f32 %v2737_v16, %v2233_v36  ;;  %v3317_v31 = vadd.f32 %v2901_v15, %v2241_v12  ;;  %v2739_v40 = vpop.f32.mrb[22].mxu0  ;;  %v2903_v18 = vpop.f32.mrb[22].mxu1 }
 0x700   :  { %3473 = vtanh.f32 %v3314_v13  ;;  %v2740_v49 = vpop.f32.mrb[23].mxu0  ;;  %v2904_v25 = vpop.f32.mrb[23].mxu1 }
 0x701   :  { %3475 = vtanh.f32 %v3316_v14 }
 0x702   :  { %3477 = vtanh.f32 %v3315_v39 }
 0x703   :  { %3479 = vtanh.f32 %v3317_v31 }
 0x70a   :  { %v3836_v54 = vpop.eup %3473 }
 0x70b   :  { %v3838_v55 = vpop.eup %3475  ;;  %v2918_v59 = vpack.c.bf16 %v3836_v54, %v3836_v54 }
 0x70c   :  { %v3842_v63 = vpop.eup %3477  ;;  %v2920_v21 = vpack.c.bf16 %v3838_v55, %v3838_v55 }
 0x70d   :  { %v3846_v22 = vpop.eup %3479  ;;  %v2919_v24 = vpack.c.bf16 %v3842_v63, %v3842_v63 }
 0x70e   :  { %v2921_v17 = vpack.c.bf16 %v3846_v22, %v3846_v22 }
 0x70f   :  { %3555 = dma.done.wait [#allocation5 + $0x2], 8192 }
 0x710   :  { %3556 = vsyncadd [#allocation5 + $0x2], 4294959104  ;;  %3031 = vmatprep.mubr.bf16.mxu0 %v2915_v23  ;;  %3071 = vmatprep.mubr.bf16.mxu1 %v2917_v33  ;;  %v2938_v20 = vld [vmem:[#allocation4 + $0x40] sm:$0xff]  ;;  %v2939_v46 = vld [vmem:[#allocation4 + $0x48] sm:$0xff] }
 0x711   :  { %v2954_v26 = vld [vmem:[#allocation4 + $0xc0] sm:$0xff]  ;;  %3214 = vmatprep.subr.bf16.mxu0 %v2938_v20  ;;  %v2955_v32 = vld [vmem:[#allocation4 + $0xc8] sm:$0xff]  ;;  %v2940_v27 = vld [vmem:[#allocation4 + $0x50] sm:$0xff] }
 0x712   :  { %v2930_v29 = vld [vmem:[#allocation4] sm:$0xff]  ;;  %3236 = vmatprep.subr.bf16.mxu1 %v2954_v26  ;;  %v2931_v45 = vld [vmem:[#allocation4 + $0x8] sm:$0xff]  ;;  %v2956_v23 = vld [vmem:[#allocation4 + $0xd0] sm:$0xff] }
 0x713   :  { %v2946_v53 = vld [vmem:[#allocation4 + $0x80] sm:$0xff]  ;;  %3215 = vmatpush3.bf16.msra.mxu0 %v2930_v29  ;;  %v2947_v37 = vld [vmem:[#allocation4 + $0x88] sm:$0xff]  ;;  %v2932_v47 = vld [vmem:[#allocation4 + $0x10] sm:$0xff] }
 0x714   :  { %3237 = vmatpush3.bf16.msra.mxu1 %v2946_v53  ;;  %3216 = vmatprep.subr.bf16.mxu0 %v2939_v46  ;;  %v2948_v48 = vld [vmem:[#allocation4 + $0x90] sm:$0xff]  ;;  %v2941_v50 = vld [vmem:[#allocation4 + $0x58] sm:$0xff]  ;;  %v2942_v28 = vld [vmem:[#allocation4 + $0x60] sm:$0xff] }
 0x715   :  { %3238 = vmatprep.subr.bf16.mxu1 %v2955_v32  ;;  %v2957_v33 = vld [vmem:[#allocation4 + $0xd8] sm:$0xff]  ;;  %v2958_v56 = vld [vmem:[#allocation4 + $0xe0] sm:$0xff]  ;;  %v2943_v58 = vld [vmem:[#allocation4 + $0x68] sm:$0xff] }
 0x716   :  { %v2933_v51 = vld [vmem:[#allocation4 + $0x18] sm:$0xff]  ;;  %v2934_v57 = vld [vmem:[#allocation4 + $0x20] sm:$0xff]  ;;  %v2959_v60 = vld [vmem:[#allocation4 + $0xe8] sm:$0xff] }
 0x717   :  { %3217 = vmatpush3.bf16.msra.mxu0 %v2931_v45  ;;  %v2949_v52 = vld [vmem:[#allocation4 + $0x98] sm:$0xff]  ;;  %v2950_v30 = vld [vmem:[#allocation4 + $0xa0] sm:$0xff]  ;;  %v2935_v61 = vld [vmem:[#allocation4 + $0x28] sm:$0xff] }
 0x718   :  { %3239 = vmatpush3.bf16.msra.mxu1 %v2947_v37  ;;  %3218 = vmatprep.subr.bf16.mxu0 %v2940_v27  ;;  %v2951_v62 = vld [vmem:[#allocation4 + $0xa8] sm:$0xff]  ;;  %v2944_v34 = vld [vmem:[#allocation4 + $0x70] sm:$0xff]  ;;  %v2945_v3 = vld [vmem:[#allocation4 + $0x78] sm:$0xff] }
 0x719   :  { %3240 = vmatprep.subr.bf16.mxu1 %v2956_v23  ;;  %v2960_v0 = vld [vmem:[#allocation4 + $0xf0] sm:$0xff]  ;;  %v2961_v4 = vld [vmem:[#allocation4 + $0xf8] sm:$0xff]  ;;  %v2970_v19 = vld [vmem:[#allocation4 + $0x140] sm:$0xff] }
 0x71a   :  { %v2936_v1 = vld [vmem:[#allocation4 + $0x30] sm:$0xff]  ;;  %v2937_v5 = vld [vmem:[#allocation4 + $0x38] sm:$0xff]  ;;  %v2986_v7 = vld [vmem:[#allocation4 + $0x1c0] sm:$0xff] }
 0x71b   :  { %3219 = vmatpush3.bf16.msra.mxu0 %v2932_v47  ;;  %v2952_v2 = vld [vmem:[#allocation4 + $0xb0] sm:$0xff]  ;;  %v2953_v6 = vld [vmem:[#allocation4 + $0xb8] sm:$0xff]  ;;  %v2962_v8 = vld [vmem:[#allocation4 + $0x100] sm:$0xff] }
 0x71c   :  { %3241 = vmatpush3.bf16.msra.mxu1 %v2948_v48  ;;  %3220 = vmatprep.subr.bf16.mxu0 %v2941_v50  ;;  %v2978_v9 = vld [vmem:[#allocation4 + $0x180] sm:$0xff]  ;;  %v2971_v10 = vld [vmem:[#allocation4 + $0x148] sm:$0xff]  ;;  %v2972_v43 = vld [vmem:[#allocation4 + $0x150] sm:$0xff] }
 0x71d   :  { %3242 = vmatprep.subr.bf16.mxu1 %v2957_v33  ;;  %v2987_v11 = vld [vmem:[#allocation4 + $0x1c8] sm:$0xff]  ;;  %v2988_v38 = vld [vmem:[#allocation4 + $0x1d0] sm:$0xff]  ;;  %v2965_v13 = vld [vmem:[#allocation4 + $0x118] sm:$0xff] }
 0x71e   :  { %v2963_v36 = vld [vmem:[#allocation4 + $0x108] sm:$0xff]  ;;  %v2964_v35 = vld [vmem:[#allocation4 + $0x110] sm:$0xff]  ;;  %v2981_v14 = vld [vmem:[#allocation4 + $0x198] sm:$0xff] }
 0x71f   :  { %3221 = vmatpush3.bf16.msra.mxu0 %v2933_v51  ;;  %v2979_v12 = vld [vmem:[#allocation4 + $0x188] sm:$0xff]  ;;  %v2980_v41 = vld [vmem:[#allocation4 + $0x190] sm:$0xff]  ;;  %v2974_v16 = vld [vmem:[#allocation4 + $0x160] sm:$0xff] }
 0x720   :  { %3243 = vmatpush3.bf16.msra.mxu1 %v2949_v52  ;;  %3222 = vmatprep.subr.bf16.mxu0 %v2942_v28  ;;  %v2990_v15 = vld [vmem:[#allocation4 + $0x1e0] sm:$0xff]  ;;  %v2975_v40 = vld [vmem:[#allocation4 + $0x168] sm:$0xff]  ;;  %v2976_v63 = vld [vmem:[#allocation4 + $0x170] sm:$0xff] }
 0x721   :  { %3244 = vmatprep.subr.bf16.mxu1 %v2958_v56  ;;  %v2966_v39 = vld [vmem:[#allocation4 + $0x120] sm:$0xff]  ;;  %v2991_v18 = vld [vmem:[#allocation4 + $0x1e8] sm:$0xff]  ;;  %v2992_v22 = vld [vmem:[#allocation4 + $0x1f0] sm:$0xff] }
 0x722   :  { %v2982_v31 = vld [vmem:[#allocation4 + $0x1a0] sm:$0xff]  ;;  %v2967_v49 = vld [vmem:[#allocation4 + $0x128] sm:$0xff]  ;;  %v2977_v20 = vld [vmem:[#allocation4 + $0x178] sm:$0xff] }
 0x723   :  { %3223 = vmatpush3.bf16.msra.mxu0 %v2934_v57  ;;  %v2983_v25 = vld [vmem:[#allocation4 + $0x1a8] sm:$0xff]  ;;  %v2993_v26 = vld [vmem:[#allocation4 + $0x1f8] sm:$0xff]  ;;  %v3210_v45 = vld [vmem:[#allocation8 + $0x3] ss:$0 sm:$0xff] }
 0x724   :  { %3245 = vmatpush3.bf16.msra.mxu1 %v2950_v30  ;;  %3224 = vmatprep.subr.bf16.mxu0 %v2943_v58  ;;  %v2969_v29 = vld [vmem:[#allocation4 + $0x138] sm:$0xff] }
 0x725   :  { %3246 = vmatprep.subr.bf16.mxu1 %v2959_v60  ;;  %v2985_v53 = vld [vmem:[#allocation4 + $0x1b8] sm:$0xff] }
 0x727   :  { %3225 = vmatpush3.bf16.msra.mxu0 %v2935_v61 }
 0x728   :  { %3247 = vmatpush3.bf16.msra.mxu1 %v2951_v62  ;;  %3226 = vmatprep.subr.bf16.mxu0 %v2944_v34 }
 0x729   :  { %3248 = vmatprep.subr.bf16.mxu1 %v2960_v0 }
 0x72b   :  { %3227 = vmatpush3.bf16.msra.mxu0 %v2936_v1 }
 0x72c   :  { %3249 = vmatpush3.bf16.msra.mxu1 %v2952_v2  ;;  %3228 = vmatprep.subr.bf16.mxu0 %v2945_v3 }
 0x72d   :  { %3250 = vmatprep.subr.bf16.mxu1 %v2961_v4 }
 0x72f   :  { %3229 = vmatpush3.bf16.msra.mxu0 %v2937_v5 }
 0x730   :  { %3251 = vmatpush3.bf16.msra.mxu1 %v2953_v6  ;;  %3258 = vmatprep.subr.bf16.mxu0 %v2970_v19 }
 0x731   :  { %3280 = vmatprep.subr.bf16.mxu1 %v2986_v7 }
 0x732   :  { %3032 = vmatmul.mubr.bf16.vlgmr.msra.gmra.mrb[24].mxu0 %v2914_v42  ;;  %v2973_v42 = vld [vmem:[#allocation4 + $0x158] sm:$0xff] }
 0x733   :  { %3072 = vmatmul.mubr.bf16.vlgmr.msra.gmra.mrb[24].mxu1 %v2916_v44  ;;  %3259 = vmatpush3.bf16.msra.mxu0 %v2962_v8  ;;  %v2989_v44 = vld [vmem:[#allocation4 + $0x1d8] sm:$0xff] }
 0x734   :  { %3281 = vmatpush3.bf16.msra.mxu1 %v2978_v9  ;;  %3260 = vmatprep.subr.bf16.mxu0 %v2971_v10 }
 0x735   :  { %3282 = vmatprep.subr.bf16.mxu1 %v2987_v11  ;;  %3111 = vmatprep.mubr.bf16.mxu0 %v2919_v24  ;;  %v2968_v24 = vld [vmem:[#allocation4 + $0x130] sm:$0xff] }
 0x736   :  { %3151 = vmatprep.mubr.bf16.mxu1 %v2921_v17  ;;  %v2984_v17 = vld [vmem:[#allocation4 + $0x1b0] sm:$0xff] }
 0x737   :  { %3261 = vmatpush3.bf16.msra.mxu0 %v2963_v36 }
 0x738   :  { %3283 = vmatpush3.bf16.msra.mxu1 %v2979_v12  ;;  %3262 = vmatprep.subr.bf16.mxu0 %v2972_v43 }
 0x739   :  { %3284 = vmatprep.subr.bf16.mxu1 %v2988_v38 }
 0x73b   :  { %3263 = vmatpush3.bf16.msra.mxu0 %v2964_v35 }
 0x73c   :  { %3285 = vmatpush3.bf16.msra.mxu1 %v2980_v41  ;;  %3264 = vmatprep.subr.bf16.mxu0 %v2973_v42 }
 0x73d   :  { %3286 = vmatprep.subr.bf16.mxu1 %v2989_v44 }
 0x73f   :  { %3265 = vmatpush3.bf16.msra.mxu0 %v2965_v13 }
 0x740   :  { %3287 = vmatpush3.bf16.msra.mxu1 %v2981_v14  ;;  %3266 = vmatprep.subr.bf16.mxu0 %v2974_v16 }
 0x741   :  { %3288 = vmatprep.subr.bf16.mxu1 %v2990_v15 }
 0x743   :  { %3267 = vmatpush3.bf16.msra.mxu0 %v2966_v39 }
 0x744   :  { %3289 = vmatpush3.bf16.msra.mxu1 %v2982_v31  ;;  %3268 = vmatprep.subr.bf16.mxu0 %v2975_v40 }
 0x745   :  { %3290 = vmatprep.subr.bf16.mxu1 %v2991_v18 }
 0x747   :  { %3269 = vmatpush3.bf16.msra.mxu0 %v2967_v49 }
 0x748   :  { %3291 = vmatpush3.bf16.msra.mxu1 %v2983_v25  ;;  %3270 = vmatprep.subr.bf16.mxu0 %v2976_v63 }
 0x749   :  { %3292 = vmatprep.subr.bf16.mxu1 %v2992_v22 }
 0x74b   :  { %3271 = vmatpush3.bf16.msra.mxu0 %v2968_v24 }
 0x74c   :  { %3293 = vmatpush3.bf16.msra.mxu1 %v2984_v17  ;;  %3272 = vmatprep.subr.bf16.mxu0 %v2977_v20 }
 0x74d   :  { %3294 = vmatprep.subr.bf16.mxu1 %v2993_v26 }
 0x74f   :  { %3273 = vmatpush3.bf16.msra.mxu0 %v2969_v29 }
 0x750   :  { %3295 = vmatpush3.bf16.msra.mxu1 %v2985_v53 }
 0x752   :  { %3112 = vmatmul.mubr.bf16.vlgmr.msra.gmra.mrb[28].mxu0 %v2918_v59 }
 0x753   :  { %3152 = vmatmul.mubr.bf16.vlgmr.msra.gmra.mrb[28].mxu1 %v2920_v21 }
 0x805   :  { %v3230_v46 = vpop.f32.mrb[24].mxu0 }
 0x806   :  { %v3252_v32 = vpop.f32.mrb[24].mxu1  ;;  %v3231_v37 = vpop.f32.mrb[25].mxu0 }
 0x807   :  { %v3253_v27 = vpop.f32.mrb[25].mxu1  ;;  %v3232_v23 = vadd.f32 %v3231_v37, %v3230_v46  ;;  %v3233_v48 = vpop.f32.mrb[26].mxu0 }
 0x808   :  { %v3254_v47 = vadd.f32 %v3253_v27, %v3252_v32  ;;  %v3255_v50 = vpop.f32.mrb[26].mxu1  ;;  %v3234_v33 = vpop.f32.mrb[27].mxu0 }
 0x809   :  { %v3256_v51 = vpop.f32.mrb[27].mxu1  ;;  %v3034_v52 = vadd.f32 %v3232_v23, %v3210_v45 }
 0x80b   :  { %v3074_v28 = vadd.f32 %v3254_v47, %v3034_v52 }
 0x825   :  { %v3274_v56 = vpop.f32.mrb[28].mxu0 }
 0x826   :  { %v3296_v54 = vpop.f32.mrb[28].mxu1  ;;  %v3275_v59 = vpop.f32.mrb[29].mxu0 }
 0x827   :  { %v3297_v57 = vpop.f32.mrb[29].mxu1  ;;  %v3276_v30 = vadd.f32 %v3275_v59, %v3274_v56  ;;  %v3277_v21 = vpop.f32.mrb[30].mxu0 }
 0x828   :  { %v3298_v55 = vadd.f32 %v3297_v57, %v3296_v54  ;;  %v3299_v58 = vpop.f32.mrb[30].mxu1  ;;  %v3278_v60 = vpop.f32.mrb[31].mxu0 }
 0x829   :  { %v3300_v61 = vpop.f32.mrb[31].mxu1  ;;  %v3114_v62 = vadd.f32 %v3276_v30, %v3074_v28 }
 0x82b   :  { %v3154_v34 = vadd.f32 %v3298_v55, %v3114_v62 }
 0x82d   :  { %3159 = vst [vmem:[%s3885_s6] sm:$0xff] %v3154_v34 }
 0x82e   :  { %3164 = vsyncpa [#allocation7], 1 }
 0x82f   :  { %3165 = vsyncpa [#allocation9], 1 }
 0x830   :  { %3166 = vsyncmov [#allocation5] }
 0x833   :  { %s3167_s30 = vpop.sfrf %3166 }
 0x834   :  { %p3211_p10 = scmp.ne.s32.totalorder %s3167_s30, 0 }
 0x836   :  { %3171 = shalt.err (%p3211_p10)  }
 0x837   :  { %3173 = vsyncmov [#allocation5 + $0x1] }
 0x83a   :  { %s3174_s2 = vpop.sfrf %3173 }
 0x83b   :  { %p3212_p11 = scmp.ne.s32.totalorder %s3174_s2, 0 }
 0x83d   :  { %3178 = shalt.err (%p3212_p11)  }
 0x83e   :  { %3180 = vsyncmov [#allocation5 + $0x2] }
 0x841   :  { %s3181_s7 = vpop.sfrf %3180 }
 0x842   :  { %p3213_p12 = scmp.ne.s32.totalorder %s3181_s7, 0 }
 0x844   :  { %3185 = shalt.err (%p3213_p12)  }

</bundles_post_ra>
